<compile_context>
chip_gen: v5e
topology: v5e:2x2
jax: 0.10.0
libtpu: 0.0.40
codegen_flags: <defaults>
</compile_context>

<pallas_src>
import functools

import jax
import jax.numpy as jnp
from jax.experimental import pallas as pl
from jax.experimental.pallas import tpu as pltpu


def _round_up(n, m):
    return ((n + m - 1) // m) * m


def _sigmoid(x):
    # exp -> EUP; approx reciprocal -> EUP (frees VPU slots).
    return pl.reciprocal(1.0 + jnp.exp(-x), approx=True)


# ---------------------------------------------------------------------------
# Fused kernel: [conv-as-matmul + Sigmoid] -> Linear+Sigmoid -> Linear+Sigmoid -> Linear
# ---------------------------------------------------------------------------
def _fused_forward_kernel(x_ref, t_ref, bc_ref,
                          w1_ref, b1_ref, w2_ref, b2_ref, w3_ref, b3_ref, o_ref):
    x = x_ref[...]                                                    # (bm, H*W)
    conv = _sigmoid(jnp.dot(x, t_ref[...],
                            preferred_element_type=jnp.float32) + bc_ref[...])
    h = _sigmoid(jnp.dot(conv, w1_ref[...],
                         preferred_element_type=jnp.float32) + b1_ref[...])
    h = _sigmoid(jnp.dot(h, w2_ref[...],
                         preferred_element_type=jnp.float32) + b2_ref[...])
    o_ref[...] = jnp.dot(h, w3_ref[...],
                         preferred_element_type=jnp.float32) + b3_ref[...]


def fused_forward(x_flat, prep, *, block_m=256):
    """x_flat: (M, H*W) f32.  Returns (M, Ep) f32 (padded embedding columns are exactly 0)."""
    T, bc, w1p, b1p, w2p, b2p, w3p, b3p = prep
    M, HW = x_flat.shape
    D1p = T.shape[1]
    H1 = w1p.shape[1]
    H2p = w2p.shape[1]
    Ep = w3p.shape[1]

    # Largest multiple-of-8 row tile (up to block_m); pad rows so the tile divides M.
    bm = min(block_m, _round_up(M, 8))
    M_pad = _round_up(M, bm)
    if M_pad != M:
        x_flat = jnp.pad(x_flat, ((0, M_pad - M), (0, 0)))

    out = pl.pallas_call(
        _fused_forward_kernel,
        out_shape=jax.ShapeDtypeStruct((M_pad, Ep), jnp.float32),
        grid_spec=pltpu.PrefetchScalarGridSpec(
            num_scalar_prefetch=0,
            grid=(M_pad // bm,),
            in_specs=[
                pl.BlockSpec((bm, HW), lambda i: (i, 0)),     # activation row tile
                pl.BlockSpec((HW, D1p), lambda i: (0, 0)),    # conv Toeplitz matrix (resident)
                pl.BlockSpec((1, D1p), lambda i: (0, 0)),     # conv bias (flattened)
                pl.BlockSpec((D1p, H1), lambda i: (0, 0)),    # W1 (resident)
                pl.BlockSpec((1, H1), lambda i: (0, 0)),      # b1
                pl.BlockSpec((H1, H2p), lambda i: (0, 0)),    # W2
                pl.BlockSpec((1, H2p), lambda i: (0, 0)),     # b2
                pl.BlockSpec((H2p, Ep), lambda i: (0, 0)),    # W3
                pl.BlockSpec((1, Ep), lambda i: (0, 0)),      # b3
            ],
            out_specs=pl.BlockSpec((bm, Ep), lambda i: (i, 0)),
        ),
        compiler_params=pltpu.CompilerParams(
            dimension_semantics=("parallel",),   # row tiles independent (both TCs when M grows)
        ),
    )(x_flat, T, bc, w1p, b1p, w2p, b2p, w3p, b3p)
    return out[:M]


# ---------------------------------------------------------------------------
# One-time parameter preparation (hoisted out of the hot path)
# ---------------------------------------------------------------------------
def prepare_params(params, H, W, *, lane=128):
    """Build the conv Toeplitz matrix and lane-pad all weights/biases. Returns device arrays."""
    wt, bt, w1, b1, w2, b2, w3, b3 = params
    _, CO, K, _ = wt.shape
    OH, OW = H + K - 1, W + K - 1
    D1 = CO * OH * OW
    assert w1.shape[0] == D1, (w1.shape, D1)

    # Toeplitz: T[h*W+w, co*OH*OW + oh*OW + ow] = wt[0, co, oh-h, ow-w] when in-range else 0.
    Wk = wt[0].astype(jnp.float32)                                 # (CO, K, K)
    dh = jnp.arange(OH)[None, :] - jnp.arange(H)[:, None]          # (H, OH)
    dw = jnp.arange(OW)[None, :] - jnp.arange(W)[:, None]          # (W, OW)
    vh, vw = (dh >= 0) & (dh < K), (dw >= 0) & (dw < K)
    dh_c, dw_c = jnp.clip(dh, 0, K - 1), jnp.clip(dw, 0, K - 1)
    A = Wk[:, dh_c, :]                                             # (CO, H, OH, K)
    T5 = A[:, :, :, dw_c]                                          # (CO, H, OH, W, OW)
    mask = vh[None, :, :, None, None] & vw[None, None, None, :, :]
    T5 = jnp.where(mask, T5, 0.0)
    T = jnp.transpose(T5, (1, 3, 0, 2, 4)).reshape(H * W, D1)      # (H*W, D1)
    bias_flat = jnp.repeat(bt.astype(jnp.float32), OH * OW)        # (D1,)

    H1, H2, E = w1.shape[1], w2.shape[1], w3.shape[1]
    D1p, H2p, Ep = _round_up(D1, lane), _round_up(H2, lane), _round_up(E, lane)

    # Zero-pad to lane multiples.  Padded conv/h2 activations come out as sigmoid(0)=0.5 but the
    # matching weight rows are zero, so the padding contributes exactly nothing downstream.
    T = jnp.pad(T, ((0, 0), (0, D1p - D1)))
    bias_flat = jnp.pad(bias_flat, (0, D1p - D1))
    w1p = jnp.pad(w1.astype(jnp.float32), ((0, D1p - D1), (0, 0)))
    b1p = b1.astype(jnp.float32)
    w2p = jnp.pad(w2.astype(jnp.float32), ((0, 0), (0, H2p - H2)))
    b2p = jnp.pad(b2.astype(jnp.float32), (0, H2p - H2))
    w3p = jnp.pad(w3.astype(jnp.float32), ((0, H2p - H2), (0, Ep - E)))
    b3p = jnp.pad(b3.astype(jnp.float32), (0, Ep - E))

    return (T, bias_flat[None, :], w1p, b1p[None, :], w2p, b2p[None, :], w3p, b3p[None, :])


# ---------------------------------------------------------------------------
# Full module forward
# ---------------------------------------------------------------------------
def siamese_triplet_forward(input1, input2, input3, prep, *, emb_dim):
    B = input1.shape[0]
    # Shared weights -> stack the triplet into one batch and run the fused kernel once.
    x = jnp.concatenate([input1, input2, input3], axis=0)           # (3B, 1, H, W)
    x_flat = x.reshape(x.shape[0], -1).astype(jnp.float32)          # (3B, H*W)
    # TODO(synk): base_model is an arbitrary external nn.Module (constructor arg); identity here.
    emb = fused_forward(x_flat, prep)[:, :emb_dim]                  # cnn1 -> flatten -> fc1
    return emb[:B], emb[B:2 * B], emb[2 * B:]


# ---------------------------------------------------------------------------
# Pure-JAX reference (for validation)
# ---------------------------------------------------------------------------
def _reference_forward_once(x, params):
    wt, bt, w1, b1, w2, b2, w3, b3 = params
    B, _, H, W = x.shape
    _, CO, K, _ = wt.shape
    OH, OW = H + K - 1, W + K - 1
    out = jnp.zeros((B, CO, OH, OW), jnp.float32) + bt[None, :, None, None]
    for kh in range(K):                                   # scatter formulation of conv_transpose
        for kw in range(K):
            out = out.at[:, :, kh:kh + H, kw:kw + W].add(
                x[:, 0:1, :, :] * wt[0, :, kh, kw][None, :, None, None])
    conv = jax.nn.sigmoid(out)
    feat = conv.reshape(B, -1)
    hp = jax.lax.Precision.HIGHEST
    h = jax.nn.sigmoid(jnp.dot(feat, w1, precision=hp) + b1)
    h = jax.nn.sigmoid(jnp.dot(h, w2, precision=hp) + b2)
    return jnp.dot(h, w3, precision=hp) + b3


if __name__ == "__main__":
    key = jax.random.PRNGKey(0)
    ks = jax.random.split(key, 11)

    B, H, W = 2, 16, 16          # input1/2/3: (B, 1, 16, 16)
    K, CO, EMB = 10, 3, 2        # ConvTranspose2d(1, 3, 10, stride=1); embedding_dim=2
    H1, H2 = 256, 126
    OH, OW = H + K - 1, W + K - 1
    D1 = CO * OH * OW            # LazyLinear in_features inferred = 3*25*25 = 1875

    input1 = jax.random.normal(ks[0], (B, 1, H, W), jnp.float32)
    input2 = jax.random.normal(ks[1], (B, 1, H, W), jnp.float32)
    input3 = jax.random.normal(ks[2], (B, 1, H, W), jnp.float32)

    wt = jax.random.normal(ks[3], (1, CO, K, K), jnp.float32) * 0.1     # (in, out, kH, kW)
    bt = jax.random.normal(ks[4], (CO,), jnp.float32) * 0.1
    w1 = jax.random.normal(ks[5], (D1, H1), jnp.float32) * (1.0 / jnp.sqrt(D1))
    b1 = jax.random.normal(ks[6], (H1,), jnp.float32) * 0.1
    w2 = jax.random.normal(ks[7], (H1, H2), jnp.float32) * (1.0 / jnp.sqrt(H1))
    b2 = jax.random.normal(ks[8], (H2,), jnp.float32) * 0.1
    w3 = jax.random.normal(ks[9], (H2, EMB), jnp.float32) * (1.0 / jnp.sqrt(H2))
    b3 = jax.random.normal(ks[10], (EMB,), jnp.float32) * 0.1
    params = (wt, bt, w1, b1, w2, b2, w3, b3)

    # One-time prep (Toeplitz build, padding, casts) — hoisted out of the jitted forward.
    prep = jax.tree.map(jax.block_until_ready, prepare_params(params, H, W))

    fwd = jax.jit(functools.partial(siamese_triplet_forward, emb_dim=EMB))
    o1, o2, o3 = fwd(input1, input2, input3, prep)
    o1 = jax.block_until_ready(o1)
    o2 = jax.block_until_ready(o2)
    o3 = jax.block_until_ready(o3)

    r1 = _reference_forward_once(input1, params)
    r2 = _reference_forward_once(input2, params)
    r3 = _reference_forward_once(input3, params)
    for got, ref in ((o1, r1), (o2, r2), (o3, r3)):
        assert got.shape == (B, EMB), got.shape
        assert jnp.allclose(got, ref, rtol=5e-3, atol=5e-3), (got, ref)

    print("KERNEL_OK")
</pallas_src>

<mosaic_0001>
module attributes {stable_mosaic.version = 11 : i64} {
  func.func @_fused_forward_kernel(%arg0: i32, %arg1: memref<8x256xf32, #tpu.memory_space<vmem>>, %arg2: memref<256x1920xf32, #tpu.memory_space<vmem>>, %arg3: memref<1x1920xf32, #tpu.memory_space<vmem>>, %arg4: memref<1920x256xf32, #tpu.memory_space<vmem>>, %arg5: memref<1x256xf32, #tpu.memory_space<vmem>>, %arg6: memref<256x128xf32, #tpu.memory_space<vmem>>, %arg7: memref<1x128xf32, #tpu.memory_space<vmem>>, %arg8: memref<128x128xf32, #tpu.memory_space<vmem>>, %arg9: memref<1x128xf32, #tpu.memory_space<vmem>>, %arg10: memref<8x128xf32, #tpu.memory_space<vmem>>) attributes {dimension_semantics = [#tpu.dimension_semantics<parallel>], iteration_bounds = array<i64: 1>, scalar_prefetch = 0 : i64, scratch_operands = 0 : i64, tpu.core_type = #tpu.core_type<tc>, window_params = [{transform_indices = @transform_0, window_bounds = array<i64: 8, 256>}, {pipeline_mode = #tpu.pipeline_mode<synchronous>, transform_indices = @transform_1, window_bounds = array<i64: 256, 1920>}, {pipeline_mode = #tpu.pipeline_mode<synchronous>, transform_indices = @transform_2, window_bounds = array<i64: 1, 1920>}, {pipeline_mode = #tpu.pipeline_mode<synchronous>, transform_indices = @transform_3, window_bounds = array<i64: 1920, 256>}, {pipeline_mode = #tpu.pipeline_mode<synchronous>, transform_indices = @transform_4, window_bounds = array<i64: 1, 256>}, {pipeline_mode = #tpu.pipeline_mode<synchronous>, transform_indices = @transform_5, window_bounds = array<i64: 256, 128>}, {pipeline_mode = #tpu.pipeline_mode<synchronous>, transform_indices = @transform_6, window_bounds = array<i64: 1, 128>}, {pipeline_mode = #tpu.pipeline_mode<synchronous>, transform_indices = @transform_7, window_bounds = array<i64: 128, 128>}, {pipeline_mode = #tpu.pipeline_mode<synchronous>, transform_indices = @transform_8, window_bounds = array<i64: 1, 128>}, {transform_indices = @transform_9, window_bounds = array<i64: 8, 128>}]} {
    %c0 = arith.constant 0 : index
    %c0_0 = arith.constant 0 : index
    %0 = vector.load %arg1[%c0, %c0_0] : memref<8x256xf32, #tpu.memory_space<vmem>>, vector<8x256xf32>
    %c0_1 = arith.constant 0 : index
    %c0_2 = arith.constant 0 : index
    %1 = vector.load %arg2[%c0_1, %c0_2] : memref<256x1920xf32, #tpu.memory_space<vmem>>, vector<256x1920xf32>
    %cst = arith.constant dense<0.000000e+00> : vector<8x1920xf32>
    %2 = tpu.matmul %0, %1, %cst {dimension_numbers = #tpu.dot_dimension_numbers<[1], [0], [0], [1], [0, 0, 1, 1], [], []>} : vector<8x256xf32>, vector<256x1920xf32>, vector<8x1920xf32> -> vector<8x1920xf32>
    %c0_3 = arith.constant 0 : index
    %c0_4 = arith.constant 0 : index
    %3 = vector.load %arg3[%c0_3, %c0_4] : memref<1x1920xf32, #tpu.memory_space<vmem>>, vector<1x1920xf32>
    %4 = vector.broadcast %3 : vector<1x1920xf32> to vector<8x1920xf32>
    %5 = arith.addf %2, %4 : vector<8x1920xf32>
    %cst_5 = arith.constant 0.000000e+00 : f32
    %6 = vector.broadcast %cst_5 : f32 to vector<8x1920xf32>
    %7 = arith.subf %6, %5 : vector<8x1920xf32>
    %8 = math.exp %7 : vector<8x1920xf32>
    %cst_6 = arith.constant 1.000000e+00 : f32
    %9 = vector.broadcast %cst_6 : f32 to vector<8x1920xf32>
    %10 = arith.addf %9, %8 : vector<8x1920xf32>
    %11 = tpu.reciprocal %10 {approx = true} : vector<8x1920xf32> -> vector<8x1920xf32>
    %c0_7 = arith.constant 0 : index
    %c0_8 = arith.constant 0 : index
    %12 = vector.load %arg4[%c0_7, %c0_8] : memref<1920x256xf32, #tpu.memory_space<vmem>>, vector<1920x256xf32>
    %cst_9 = arith.constant dense<0.000000e+00> : vector<8x256xf32>
    %13 = tpu.matmul %11, %12, %cst_9 {dimension_numbers = #tpu.dot_dimension_numbers<[1], [0], [0], [1], [0, 0, 1, 1], [], []>} : vector<8x1920xf32>, vector<1920x256xf32>, vector<8x256xf32> -> vector<8x256xf32>
    %c0_10 = arith.constant 0 : index
    %c0_11 = arith.constant 0 : index
    %14 = vector.load %arg5[%c0_10, %c0_11] : memref<1x256xf32, #tpu.memory_space<vmem>>, vector<1x256xf32>
    %15 = vector.broadcast %14 : vector<1x256xf32> to vector<8x256xf32>
    %16 = arith.addf %13, %15 : vector<8x256xf32>
    %cst_12 = arith.constant 0.000000e+00 : f32
    %17 = vector.broadcast %cst_12 : f32 to vector<8x256xf32>
    %18 = arith.subf %17, %16 : vector<8x256xf32>
    %19 = math.exp %18 : vector<8x256xf32>
    %cst_13 = arith.constant 1.000000e+00 : f32
    %20 = vector.broadcast %cst_13 : f32 to vector<8x256xf32>
    %21 = arith.addf %20, %19 : vector<8x256xf32>
    %22 = tpu.reciprocal %21 {approx = true} : vector<8x256xf32> -> vector<8x256xf32>
    %c0_14 = arith.constant 0 : index
    %c0_15 = arith.constant 0 : index
    %23 = vector.load %arg6[%c0_14, %c0_15] : memref<256x128xf32, #tpu.memory_space<vmem>>, vector<256x128xf32>
    %cst_16 = arith.constant dense<0.000000e+00> : vector<8x128xf32>
    %24 = tpu.matmul %22, %23, %cst_16 {dimension_numbers = #tpu.dot_dimension_numbers<[1], [0], [0], [1], [0, 0, 1, 1], [], []>} : vector<8x256xf32>, vector<256x128xf32>, vector<8x128xf32> -> vector<8x128xf32>
    %c0_17 = arith.constant 0 : index
    %c0_18 = arith.constant 0 : index
    %25 = vector.load %arg7[%c0_17, %c0_18] : memref<1x128xf32, #tpu.memory_space<vmem>>, vector<1x128xf32>
    %26 = vector.broadcast %25 : vector<1x128xf32> to vector<8x128xf32>
    %27 = arith.addf %24, %26 : vector<8x128xf32>
    %cst_19 = arith.constant 0.000000e+00 : f32
    %28 = vector.broadcast %cst_19 : f32 to vector<8x128xf32>
    %29 = arith.subf %28, %27 : vector<8x128xf32>
    %30 = math.exp %29 : vector<8x128xf32>
    %cst_20 = arith.constant 1.000000e+00 : f32
    %31 = vector.broadcast %cst_20 : f32 to vector<8x128xf32>
    %32 = arith.addf %31, %30 : vector<8x128xf32>
    %33 = tpu.reciprocal %32 {approx = true} : vector<8x128xf32> -> vector<8x128xf32>
    %c0_21 = arith.constant 0 : index
    %c0_22 = arith.constant 0 : index
    %34 = vector.load %arg8[%c0_21, %c0_22] : memref<128x128xf32, #tpu.memory_space<vmem>>, vector<128x128xf32>
    %cst_23 = arith.constant dense<0.000000e+00> : vector<8x128xf32>
    %35 = tpu.matmul %33, %34, %cst_23 {dimension_numbers = #tpu.dot_dimension_numbers<[1], [0], [0], [1], [0, 0, 1, 1], [], []>} : vector<8x128xf32>, vector<128x128xf32>, vector<8x128xf32> -> vector<8x128xf32>
    %c0_24 = arith.constant 0 : index
    %c0_25 = arith.constant 0 : index
    %36 = vector.load %arg9[%c0_24, %c0_25] : memref<1x128xf32, #tpu.memory_space<vmem>>, vector<1x128xf32>
    %37 = vector.broadcast %36 : vector<1x128xf32> to vector<8x128xf32>
    %38 = arith.addf %35, %37 : vector<8x128xf32>
    %c0_26 = arith.constant 0 : index
    %c0_27 = arith.constant 0 : index
    %39 = vector.load %arg10[%c0_26, %c0_27] : memref<8x128xf32, #tpu.memory_space<vmem>>, vector<8x128xf32>
    tpu.vector_store %arg10[%c0_26, %c0_27], %38 {strides = array<i32>} : memref<8x128xf32, #tpu.memory_space<vmem>>, vector<8x128xf32>,
    return
  }
  func.func @transform_0(%arg0: i32) -> (i32, i32) {
    %c0_i32 = arith.constant 0 : i32
    %c0_i32_0 = arith.constant 0 : i32
    return %arg0, %c0_i32 : i32, i32
  }
  func.func @transform_1(%arg0: i32) -> (i32, i32) {
    %c0_i32 = arith.constant 0 : i32
    %c0_i32_0 = arith.constant 0 : i32
    %c0_i32_1 = arith.constant 0 : i32
    return %c0_i32, %c0_i32_0 : i32, i32
  }
  func.func @transform_2(%arg0: i32) -> (i32, i32) {
    %c0_i32 = arith.constant 0 : i32
    %c0_i32_0 = arith.constant 0 : i32
    %c0_i32_1 = arith.constant 0 : i32
    return %c0_i32, %c0_i32_0 : i32, i32
  }
  func.func @transform_3(%arg0: i32) -> (i32, i32) {
    %c0_i32 = arith.constant 0 : i32
    %c0_i32_0 = arith.constant 0 : i32
    %c0_i32_1 = arith.constant 0 : i32
    return %c0_i32, %c0_i32_0 : i32, i32
  }
  func.func @transform_4(%arg0: i32) -> (i32, i32) {
    %c0_i32 = arith.constant 0 : i32
    %c0_i32_0 = arith.constant 0 : i32
    %c0_i32_1 = arith.constant 0 : i32
    return %c0_i32, %c0_i32_0 : i32, i32
  }
  func.func @transform_5(%arg0: i32) -> (i32, i32) {
    %c0_i32 = arith.constant 0 : i32
    %c0_i32_0 = arith.constant 0 : i32
    %c0_i32_1 = arith.constant 0 : i32
    return %c0_i32, %c0_i32_0 : i32, i32
  }
  func.func @transform_6(%arg0: i32) -> (i32, i32) {
    %c0_i32 = arith.constant 0 : i32
    %c0_i32_0 = arith.constant 0 : i32
    %c0_i32_1 = arith.constant 0 : i32
    return %c0_i32, %c0_i32_0 : i32, i32
  }
  func.func @transform_7(%arg0: i32) -> (i32, i32) {
    %c0_i32 = arith.constant 0 : i32
    %c0_i32_0 = arith.constant 0 : i32
    %c0_i32_1 = arith.constant 0 : i32
    return %c0_i32, %c0_i32_0 : i32, i32
  }
  func.func @transform_8(%arg0: i32) -> (i32, i32) {
    %c0_i32 = arith.constant 0 : i32
    %c0_i32_0 = arith.constant 0 : i32
    %c0_i32_1 = arith.constant 0 : i32
    return %c0_i32, %c0_i32_0 : i32, i32
  }
  func.func @transform_9(%arg0: i32) -> (i32, i32) {
    %c0_i32 = arith.constant 0 : i32
    %c0_i32_0 = arith.constant 0 : i32
    return %arg0, %c0_i32 : i32, i32
  }
}

</mosaic_0001>

<bundles_post_ra>
// kernel: siamese_triplet_forward.1
= control target key start
LH: loop header
LB: loop body
LE: loop exit
PB: predicated region body
PF: predicated region fallthrough
CT: control target
= control target key end

     0   :  { %14 = vsyncpa [#allocation3], 0  ;;  %s3086_s0 = inlined_call_operand.vmem [shape: f32[8,256], index: 0, kind: input, shape index: {}]   ;;  %s3087_s1 = inlined_call_operand.hbm [shape: f32[256,1920], index: 1, kind: input, shape index: {}]   ;;  %s3088_s2 = inlined_call_operand.hbm [shape: f32[1,1920], index: 2, kind: input, shape index: {}]   ;;  %s3089_s3 = inlined_call_operand.hbm [shape: f32[1920,256], index: 3, kind: input, shape index: {}]   ;;  %s3090_s4 = inlined_call_operand.hbm [shape: f32[1,256], index: 4, kind: input, shape index: {}]   ;;  %s3091_s5 = inlined_call_operand.hbm [shape: f32[256,128], index: 5, kind: input, shape index: {}]   ;;  %s3092_s6 = inlined_call_operand.hbm [shape: f32[1,128], index: 6, kind: input, shape index: {}]   ;;  %s3093_s7 = inlined_call_operand.hbm [shape: f32[128,128], index: 7, kind: input, shape index: {}]   ;;  %s3094_s8 = inlined_call_operand.hbm [shape: f32[1,128], index: 8, kind: input, shape index: {}]   ;;  %s3095_s9 = inlined_call_operand.vmem [shape: f32[8,128], index: 9, kind: output, shape index: {}]  }
   0x1   :  { %15 = vsyncpa [#allocation5], 0 }
   0x2   :  { %16 = vsyncpa [#allocation8], 0 }
   0x3   :  { %17 = vsyncpa [#allocation11], 0  ;;  %s39_s11 = sshll.u32 %s3088_s2, 4  ;;  %s40_s11 = int_to_ptr.hbm [resolvable:$true] %s39_s11 }
   0x4   :  { %18 = vsyncpa [#allocation14], 0  ;;  %s2859_s12 = smov [#allocation4]   ;;  %s63_s16 = sshll.u32 %s3090_s4, 4  ;;  %s64_s16 = int_to_ptr.hbm [resolvable:$true] %s63_s16 }
   0x5   :  { %s41_s13 = sshll.u32 %s2859_s12, 4  ;;  %s2860_s17 = smov [#allocation7]   ;;  %s42_s13 = int_to_ptr.vmem [resolvable:$true] %s41_s13 }
   0x6   :  { %44 = dma.hbm_to_vmem [thread:$0]  %s40_s11, 240, %s42_s13, [#allocation5]  }
   0x7   :  { %s65_s18 = sshll.u32 %s2860_s17, 4  ;;  %s87_s21 = sshll.u32 %s3092_s6, 4  ;;  %s66_s18 = int_to_ptr.vmem [resolvable:$true] %s65_s18  ;;  %s88_s21 = int_to_ptr.hbm [resolvable:$true] %s87_s21 }
   0x8   :  { %68 = dma.hbm_to_vmem [thread:$0]  %s64_s16, 32, %s66_s18, [#allocation8]  }
   0x9   :  { %s25_s23 = sshll.u32 %s3087_s1, 4  ;;  %s2861_s24 = smov [#allocation10]   ;;  %s26_s23 = int_to_ptr.hbm [resolvable:$true] %s25_s23 }
   0xa   :  { %s89_s25 = sshll.u32 %s2861_s24, 4  ;;  %s2862_s4 = smov [#allocation2]   ;;  %s90_s25 = int_to_ptr.vmem [resolvable:$true] %s89_s25 }
   0xb   :  { %92 = dma.hbm_to_vmem [thread:$0]  %s88_s21, 16, %s90_s25, [#allocation11]  }
   0xc   :  { %s27_s26 = sshll.u32 %s2862_s4, 4  ;;  %s2863_s27 = smov 1920   ;;  %s28_s26 = int_to_ptr.vmem [resolvable:$true] %s27_s26 }
   0xd   :  { %s2864_s28 = smov 120   ;;  %s49_s30 = sshll.u32 %s3089_s3, 4  ;;  %s50_s30 = int_to_ptr.hbm [resolvable:$true] %s49_s30 }
   0xe   :  { %33 = dma.hbm_to_vmem [thread:$0]  %s26_s23, 61440, %s28_s26, [#allocation3], %s2863_s27, %s2863_s27, %s2864_s28  }
   0xf   :  { %s2865_s10 = smov [#allocation6]   ;;  %s73_s13 = sshll.u32 %s3091_s5, 4  ;;  %s74_s13 = int_to_ptr.hbm [resolvable:$true] %s73_s13 }
  0x10   :  { %s51_s11 = sshll.u32 %s2865_s10, 4  ;;  %s2866_s14 = smov 256   ;;  %s52_s11 = int_to_ptr.vmem [resolvable:$true] %s51_s11 }
  0x11   :  { %s2867_s15 = smov 16   ;;  %s2868_s16 = smov [#allocation9]  }
  0x12   :  { %57 = dma.hbm_to_vmem [thread:$0]  %s50_s30, 61440, %s52_s11, [#allocation5], %s2866_s14, %s2866_s14, %s2867_s15  }
  0x13   :  { %s75_s17 = sshll.u32 %s2868_s16, 4  ;;  %s2869_s18 = smov 128   ;;  %s76_s17 = int_to_ptr.vmem [resolvable:$true] %s75_s17 }
  0x14   :  { %s2870_s19 = smov 8   ;;  %s97_s21 = sshll.u32 %s3093_s7, 4  ;;  %s98_s21 = int_to_ptr.hbm [resolvable:$true] %s97_s21 }
  0x15   :  { %81 = dma.hbm_to_vmem [thread:$0]  %s74_s13, 4096, %s76_s17, [#allocation8], %s2869_s18, %s2869_s18, %s2870_s19  }
  0x16   :  { %s2871_s2 = smov [#allocation12]   ;;  %s111_s24 = sshll.u32 %s3094_s8, 4  ;;  %s112_s24 = int_to_ptr.hbm [resolvable:$true] %s111_s24 }
  0x17   :  { %s99_s22 = sshll.u32 %s2871_s2, 4  ;;  %s2872_s25 = smov [#allocation13]   ;;  %s100_s22 = int_to_ptr.vmem [resolvable:$true] %s99_s22 }
  0x18   :  { %105 = dma.hbm_to_vmem [thread:$0]  %s98_s21, 2048, %s100_s22, [#allocation11], %s2869_s18, %s2869_s18, %s2870_s19  }
  0x19   :  { %s113_s4 = sshll.u32 %s2872_s25, 4  ;;  %s114_s4 = int_to_ptr.vmem [resolvable:$true] %s113_s4 }
  0x1a   :  { %116 = dma.hbm_to_vmem [thread:$0]  %s112_s24, 16, %s114_s4, [#allocation14]  }
  0x1b   :  { %2849 = dma.done.wait [#allocation3], 61440  }
  0x1c   :  { %2850 = vsyncadd [#allocation3], 4294905856 }
  0x1d   :  { %2851 = dma.done.wait [#allocation5], 61680  }
  0x1e   :  { %2852 = vsyncadd [#allocation5], 4294905616 }
  0x1f   :  { %2853 = dma.done.wait [#allocation8], 4128  }
  0x20   :  { %2854 = vsyncadd [#allocation8], 4294963168 }
  0x21   :  { %2855 = dma.done.wait [#allocation11], 2064  }
  0x22   :  { %2856 = vsyncadd [#allocation11], 4294965232 }
  0x23   :  { %2857 = dma.done.wait [#allocation14], 16  }
  0x24   :  { %2858 = vsyncadd [#allocation14], 4294967280  ;;  %v376_v0 = vld [vmem:[#allocation2 + $0x708] sm:$0xff]  ;;  %v377_v2 = vld [vmem:[#allocation2 + $0x710] sm:$0xff] }
  0x25   :  { %v616_v1 = vld [vmem:[#allocation2 + $0xe88] sm:$0xff]  ;;  %665 = vmatpush.msra.mxu0 %v376_v0  ;;  %v617_v3 = vld [vmem:[#allocation2 + $0xe90] sm:$0xff]  ;;  %705 = vmatpush.msra.mxu2 %v377_v2  ;;  %v362_v6 = vld [vmem:[#allocation2 + $0x698] sm:$0xff] }
  0x26   :  { %685 = vmatpush.msra.mxu1 %v616_v1  ;;  %v361_v4 = vld [vmem:[#allocation2 + $0x690] sm:$0xff]  ;;  %725 = vmatpush.msra.mxu3 %v617_v3  ;;  %v602_v7 = vld [vmem:[#allocation2 + $0xe18] sm:$0xff]  ;;  %v347_v10 = vld [vmem:[#allocation2 + $0x620] sm:$0xff] }
  0x27   :  { %v601_v5 = vld [vmem:[#allocation2 + $0xe10] sm:$0xff]  ;;  %v346_v8 = vld [vmem:[#allocation2 + $0x618] sm:$0xff]  ;;  %666 = vmatpush.msra.mxu0 %v361_v4  ;;  %v587_v11 = vld [vmem:[#allocation2 + $0xda0] sm:$0xff]  ;;  %706 = vmatpush.msra.mxu2 %v362_v6 }
  0x28   :  { %686 = vmatpush.msra.mxu1 %v601_v5  ;;  %v586_v9 = vld [vmem:[#allocation2 + $0xd98] sm:$0xff]  ;;  %726 = vmatpush.msra.mxu3 %v602_v7  ;;  %v331_v12 = vld [vmem:[#allocation2 + $0x5a0] sm:$0xff]  ;;  %v332_v14 = vld [vmem:[#allocation2 + $0x5a8] sm:$0xff] }
  0x29   :  { %v571_v13 = vld [vmem:[#allocation2 + $0xd20] sm:$0xff]  ;;  %667 = vmatpush.msra.mxu0 %v346_v8  ;;  %v572_v15 = vld [vmem:[#allocation2 + $0xd28] sm:$0xff]  ;;  %707 = vmatpush.msra.mxu2 %v347_v10  ;;  %v317_v18 = vld [vmem:[#allocation2 + $0x530] sm:$0xff] }
  0x2a   :  { %687 = vmatpush.msra.mxu1 %v586_v9  ;;  %727 = vmatpush.msra.mxu3 %v587_v11  ;;  %v316_v16 = vld [vmem:[#allocation2 + $0x528] sm:$0xff]  ;;  %v557_v19 = vld [vmem:[#allocation2 + $0xcb0] sm:$0xff]  ;;  %v302_v22 = vld [vmem:[#allocation2 + $0x4b8] sm:$0xff] }
  0x2b   :  { %v556_v17 = vld [vmem:[#allocation2 + $0xca8] sm:$0xff]  ;;  %668 = vmatpush.msra.mxu0 %v331_v12  ;;  %708 = vmatpush.msra.mxu2 %v332_v14  ;;  %v301_v20 = vld [vmem:[#allocation2 + $0x4b0] sm:$0xff]  ;;  %v542_v23 = vld [vmem:[#allocation2 + $0xc38] sm:$0xff] }
  0x2c   :  { %688 = vmatpush.msra.mxu1 %v571_v13  ;;  %728 = vmatpush.msra.mxu3 %v572_v15  ;;  %v541_v21 = vld [vmem:[#allocation2 + $0xc30] sm:$0xff]  ;;  %v286_v24 = vld [vmem:[#allocation2 + $0x438] sm:$0xff]  ;;  %v287_v26 = vld [vmem:[#allocation2 + $0x440] sm:$0xff] }
  0x2d   :  { %669 = vmatpush.msra.mxu0 %v316_v16  ;;  %709 = vmatpush.msra.mxu2 %v317_v18  ;;  %v526_v25 = vld [vmem:[#allocation2 + $0xbb8] sm:$0xff]  ;;  %v527_v27 = vld [vmem:[#allocation2 + $0xbc0] sm:$0xff]  ;;  %v272_v30 = vld [vmem:[#allocation2 + $0x3c8] sm:$0xff] }
  0x2e   :  { %689 = vmatpush.msra.mxu1 %v556_v17  ;;  %729 = vmatpush.msra.mxu3 %v557_v19  ;;  %v271_v28 = vld [vmem:[#allocation2 + $0x3c0] sm:$0xff]  ;;  %v512_v31 = vld [vmem:[#allocation2 + $0xb48] sm:$0xff]  ;;  %v257_v34 = vld [vmem:[#allocation2 + $0x350] sm:$0xff] }
  0x2f   :  { %670 = vmatpush.msra.mxu0 %v301_v20  ;;  %710 = vmatpush.msra.mxu2 %v302_v22  ;;  %v511_v29 = vld [vmem:[#allocation2 + $0xb40] sm:$0xff]  ;;  %v256_v32 = vld [vmem:[#allocation2 + $0x348] sm:$0xff]  ;;  %v497_v35 = vld [vmem:[#allocation2 + $0xad0] sm:$0xff] }
  0x30   :  { %690 = vmatpush.msra.mxu1 %v541_v21  ;;  %730 = vmatpush.msra.mxu3 %v542_v23  ;;  %v496_v33 = vld [vmem:[#allocation2 + $0xac8] sm:$0xff]  ;;  %v241_v36 = vld [vmem:[#allocation2 + $0x2d0] sm:$0xff]  ;;  %v242_v38 = vld [vmem:[#allocation2 + $0x2d8] sm:$0xff] }
  0x31   :  { %671 = vmatpush.msra.mxu0 %v286_v24  ;;  %711 = vmatpush.msra.mxu2 %v287_v26  ;;  %v481_v37 = vld [vmem:[#allocation2 + $0xa50] sm:$0xff]  ;;  %v482_v39 = vld [vmem:[#allocation2 + $0xa58] sm:$0xff]  ;;  %v227_v42 = vld [vmem:[#allocation2 + $0x260] sm:$0xff] }
  0x32   :  { %691 = vmatpush.msra.mxu1 %v526_v25  ;;  %731 = vmatpush.msra.mxu3 %v527_v27  ;;  %v226_v40 = vld [vmem:[#allocation2 + $0x258] sm:$0xff]  ;;  %v467_v43 = vld [vmem:[#allocation2 + $0x9e0] sm:$0xff]  ;;  %v212_v46 = vld [vmem:[#allocation2 + $0x1e8] sm:$0xff] }
  0x33   :  { %672 = vmatpush.msra.mxu0 %v271_v28  ;;  %712 = vmatpush.msra.mxu2 %v272_v30  ;;  %v466_v41 = vld [vmem:[#allocation2 + $0x9d8] sm:$0xff]  ;;  %v211_v44 = vld [vmem:[#allocation2 + $0x1e0] sm:$0xff]  ;;  %v452_v47 = vld [vmem:[#allocation2 + $0x968] sm:$0xff] }
  0x34   :  { %692 = vmatpush.msra.mxu1 %v511_v29  ;;  %732 = vmatpush.msra.mxu3 %v512_v31  ;;  %v451_v45 = vld [vmem:[#allocation2 + $0x960] sm:$0xff]  ;;  %v196_v48 = vld [vmem:[#allocation2 + $0x168] sm:$0xff]  ;;  %v197_v50 = vld [vmem:[#allocation2 + $0x170] sm:$0xff] }
  0x35   :  { %673 = vmatpush.msra.mxu0 %v256_v32  ;;  %713 = vmatpush.msra.mxu2 %v257_v34  ;;  %v436_v49 = vld [vmem:[#allocation2 + $0x8e8] sm:$0xff]  ;;  %v437_v51 = vld [vmem:[#allocation2 + $0x8f0] sm:$0xff]  ;;  %v182_v54 = vld [vmem:[#allocation2 + $0xf8] sm:$0xff] }
  0x36   :  { %693 = vmatpush.msra.mxu1 %v496_v33  ;;  %733 = vmatpush.msra.mxu3 %v497_v35  ;;  %v181_v52 = vld [vmem:[#allocation2 + $0xf0] sm:$0xff]  ;;  %v422_v55 = vld [vmem:[#allocation2 + $0x878] sm:$0xff]  ;;  %v167_v58 = vld [vmem:[#allocation2 + $0x80] sm:$0xff] }
  0x37   :  { %674 = vmatpush.msra.mxu0 %v241_v36  ;;  %714 = vmatpush.msra.mxu2 %v242_v38  ;;  %v421_v53 = vld [vmem:[#allocation2 + $0x870] sm:$0xff]  ;;  %v166_v56 = vld [vmem:[#allocation2 + $0x78] sm:$0xff]  ;;  %v407_v59 = vld [vmem:[#allocation2 + $0x800] sm:$0xff] }
  0x38   :  { %694 = vmatpush.msra.mxu1 %v481_v37  ;;  %734 = vmatpush.msra.mxu3 %v482_v39  ;;  %v406_v57 = vld [vmem:[#allocation2 + $0x7f8] sm:$0xff]  ;;  %v151_v60 = vld [vmem:[#allocation2] sm:$0xff]  ;;  %v152_v62 = vld [vmem:[#allocation2 + $0x8] sm:$0xff] }
  0x39   :  { %675 = vmatpush.msra.mxu0 %v226_v40  ;;  %715 = vmatpush.msra.mxu2 %v227_v42  ;;  %v391_v61 = vld [vmem:[#allocation2 + $0x780] sm:$0xff]  ;;  %v392_v63 = vld [vmem:[#allocation2 + $0x788] sm:$0xff]  ;;  %v378_v0 = vld [vmem:[#allocation2 + $0x718] sm:$0xff] }
  0x3a   :  { %695 = vmatpush.msra.mxu1 %v466_v41  ;;  %735 = vmatpush.msra.mxu3 %v467_v43  ;;  %v618_v1 = vld [vmem:[#allocation2 + $0xe98] sm:$0xff]  ;;  %v379_v2 = vld [vmem:[#allocation2 + $0x720] sm:$0xff]  ;;  %v364_v6 = vld [vmem:[#allocation2 + $0x6a8] sm:$0xff] }
  0x3b   :  { %676 = vmatpush.msra.mxu0 %v211_v44  ;;  %716 = vmatpush.msra.mxu2 %v212_v46  ;;  %v619_v3 = vld [vmem:[#allocation2 + $0xea0] sm:$0xff]  ;;  %v604_v7 = vld [vmem:[#allocation2 + $0xe28] sm:$0xff]  ;;  %v349_v10 = vld [vmem:[#allocation2 + $0x630] sm:$0xff] }
  0x3c   :  { %696 = vmatpush.msra.mxu1 %v451_v45  ;;  %736 = vmatpush.msra.mxu3 %v452_v47  ;;  %v363_v4 = vld [vmem:[#allocation2 + $0x6a0] sm:$0xff]  ;;  %v348_v8 = vld [vmem:[#allocation2 + $0x628] sm:$0xff]  ;;  %v589_v11 = vld [vmem:[#allocation2 + $0xdb0] sm:$0xff] }
  0x3d   :  { %677 = vmatpush.msra.mxu0 %v196_v48  ;;  %717 = vmatpush.msra.mxu2 %v197_v50  ;;  %v603_v5 = vld [vmem:[#allocation2 + $0xe20] sm:$0xff]  ;;  %v588_v9 = vld [vmem:[#allocation2 + $0xda8] sm:$0xff]  ;;  %v333_v12 = vld [vmem:[#allocation2 + $0x5b0] sm:$0xff] }
  0x3e   :  { %697 = vmatpush.msra.mxu1 %v436_v49  ;;  %737 = vmatpush.msra.mxu3 %v437_v51  ;;  %v573_v13 = vld [vmem:[#allocation2 + $0xd30] sm:$0xff]  ;;  %v334_v14 = vld [vmem:[#allocation2 + $0x5b8] sm:$0xff]  ;;  %v319_v18 = vld [vmem:[#allocation2 + $0x540] sm:$0xff] }
  0x3f   :  { %678 = vmatpush.msra.mxu0 %v181_v52  ;;  %718 = vmatpush.msra.mxu2 %v182_v54  ;;  %v574_v15 = vld [vmem:[#allocation2 + $0xd38] sm:$0xff]  ;;  %v559_v19 = vld [vmem:[#allocation2 + $0xcc0] sm:$0xff]  ;;  %v304_v22 = vld [vmem:[#allocation2 + $0x4c8] sm:$0xff] }
  0x40   :  { %698 = vmatpush.msra.mxu1 %v421_v53  ;;  %738 = vmatpush.msra.mxu3 %v422_v55  ;;  %v318_v16 = vld [vmem:[#allocation2 + $0x538] sm:$0xff]  ;;  %v303_v20 = vld [vmem:[#allocation2 + $0x4c0] sm:$0xff]  ;;  %v544_v23 = vld [vmem:[#allocation2 + $0xc48] sm:$0xff] }
  0x41   :  { %679 = vmatpush.msra.mxu0 %v166_v56  ;;  %719 = vmatpush.msra.mxu2 %v167_v58  ;;  %v558_v17 = vld [vmem:[#allocation2 + $0xcb8] sm:$0xff]  ;;  %v543_v21 = vld [vmem:[#allocation2 + $0xc40] sm:$0xff]  ;;  %v288_v24 = vld [vmem:[#allocation2 + $0x448] sm:$0xff] }
  0x42   :  { %699 = vmatpush.msra.mxu1 %v406_v57  ;;  %739 = vmatpush.msra.mxu3 %v407_v59  ;;  %v528_v25 = vld [vmem:[#allocation2 + $0xbc8] sm:$0xff]  ;;  %v289_v26 = vld [vmem:[#allocation2 + $0x450] sm:$0xff]  ;;  %v274_v30 = vld [vmem:[#allocation2 + $0x3d8] sm:$0xff] }
  0x43   :  { %680 = vmatpush.msra.mxu0 %v151_v60  ;;  %720 = vmatpush.msra.mxu2 %v152_v62  ;;  %v529_v27 = vld [vmem:[#allocation2 + $0xbd0] sm:$0xff]  ;;  %v514_v31 = vld [vmem:[#allocation2 + $0xb58] sm:$0xff]  ;;  %v259_v34 = vld [vmem:[#allocation2 + $0x360] sm:$0xff] }
  0x44   :  { %700 = vmatpush.msra.mxu1 %v391_v61  ;;  %740 = vmatpush.msra.mxu3 %v392_v63  ;;  %v273_v28 = vld [vmem:[#allocation2 + $0x3d0] sm:$0xff]  ;;  %v258_v32 = vld [vmem:[#allocation2 + $0x358] sm:$0xff]  ;;  %v499_v35 = vld [vmem:[#allocation2 + $0xae0] sm:$0xff] }
  0x45   :  { %745 = vmatpush.msrb.mxu0 %v378_v0  ;;  %785 = vmatpush.msrb.mxu2 %v379_v2  ;;  %v513_v29 = vld [vmem:[#allocation2 + $0xb50] sm:$0xff]  ;;  %v498_v33 = vld [vmem:[#allocation2 + $0xad8] sm:$0xff]  ;;  %v243_v36 = vld [vmem:[#allocation2 + $0x2e0] sm:$0xff] }
  0x46   :  { %765 = vmatpush.msrb.mxu1 %v618_v1  ;;  %805 = vmatpush.msrb.mxu3 %v619_v3  ;;  %v483_v37 = vld [vmem:[#allocation2 + $0xa60] sm:$0xff]  ;;  %v244_v38 = vld [vmem:[#allocation2 + $0x2e8] sm:$0xff]  ;;  %v229_v42 = vld [vmem:[#allocation2 + $0x270] sm:$0xff] }
  0x47   :  { %746 = vmatpush.msrb.mxu0 %v363_v4  ;;  %786 = vmatpush.msrb.mxu2 %v364_v6  ;;  %v484_v39 = vld [vmem:[#allocation2 + $0xa68] sm:$0xff]  ;;  %v469_v43 = vld [vmem:[#allocation2 + $0x9f0] sm:$0xff]  ;;  %v214_v46 = vld [vmem:[#allocation2 + $0x1f8] sm:$0xff] }
  0x48   :  { %766 = vmatpush.msrb.mxu1 %v603_v5  ;;  %806 = vmatpush.msrb.mxu3 %v604_v7  ;;  %v228_v40 = vld [vmem:[#allocation2 + $0x268] sm:$0xff]  ;;  %v213_v44 = vld [vmem:[#allocation2 + $0x1f0] sm:$0xff]  ;;  %v454_v47 = vld [vmem:[#allocation2 + $0x978] sm:$0xff] }
  0x49   :  { %747 = vmatpush.msrb.mxu0 %v348_v8  ;;  %787 = vmatpush.msrb.mxu2 %v349_v10  ;;  %v468_v41 = vld [vmem:[#allocation2 + $0x9e8] sm:$0xff]  ;;  %v453_v45 = vld [vmem:[#allocation2 + $0x970] sm:$0xff]  ;;  %v198_v48 = vld [vmem:[#allocation2 + $0x178] sm:$0xff] }
  0x4a   :  { %767 = vmatpush.msrb.mxu1 %v588_v9  ;;  %807 = vmatpush.msrb.mxu3 %v589_v11  ;;  %v438_v49 = vld [vmem:[#allocation2 + $0x8f8] sm:$0xff]  ;;  %v199_v50 = vld [vmem:[#allocation2 + $0x180] sm:$0xff]  ;;  %v184_v54 = vld [vmem:[#allocation2 + $0x108] sm:$0xff] }
  0x4b   :  { %748 = vmatpush.msrb.mxu0 %v333_v12  ;;  %788 = vmatpush.msrb.mxu2 %v334_v14  ;;  %v439_v51 = vld [vmem:[#allocation2 + $0x900] sm:$0xff]  ;;  %v424_v55 = vld [vmem:[#allocation2 + $0x888] sm:$0xff]  ;;  %v169_v58 = vld [vmem:[#allocation2 + $0x90] sm:$0xff] }
  0x4c   :  { %768 = vmatpush.msrb.mxu1 %v573_v13  ;;  %808 = vmatpush.msrb.mxu3 %v574_v15  ;;  %v183_v52 = vld [vmem:[#allocation2 + $0x100] sm:$0xff]  ;;  %v168_v56 = vld [vmem:[#allocation2 + $0x88] sm:$0xff]  ;;  %v409_v59 = vld [vmem:[#allocation2 + $0x810] sm:$0xff] }
  0x4d   :  { %749 = vmatpush.msrb.mxu0 %v318_v16  ;;  %789 = vmatpush.msrb.mxu2 %v319_v18  ;;  %v423_v53 = vld [vmem:[#allocation2 + $0x880] sm:$0xff]  ;;  %v408_v57 = vld [vmem:[#allocation2 + $0x808] sm:$0xff]  ;;  %v153_v60 = vld [vmem:[#allocation2 + $0x10] sm:$0xff] }
  0x4e   :  { %769 = vmatpush.msrb.mxu1 %v558_v17  ;;  %809 = vmatpush.msrb.mxu3 %v559_v19  ;;  %v393_v61 = vld [vmem:[#allocation2 + $0x790] sm:$0xff]  ;;  %v154_v62 = vld [vmem:[#allocation2 + $0x18] sm:$0xff]  ;;  %v2950_v0 = vld [vmem:[%s3086_s0] sm:$0xff] }
  0x4f   :  { %750 = vmatpush.msrb.mxu0 %v303_v20  ;;  %790 = vmatpush.msrb.mxu2 %v304_v22  ;;  %v394_v63 = vld [vmem:[#allocation2 + $0x798] sm:$0xff]  ;;  %v2955_v1 = vld [vmem:[%s3086_s0 + $0x8] sm:$0xff]  ;;  %v381_v4 = vld [vmem:[#allocation2 + $0x730] sm:$0xff] }
  0x50   :  { %770 = vmatpush.msrb.mxu1 %v543_v21  ;;  %810 = vmatpush.msrb.mxu3 %v544_v23  ;;  %v380_v2 = vld [vmem:[#allocation2 + $0x728] sm:$0xff]  ;;  %v621_v5 = vld [vmem:[#allocation2 + $0xeb0] sm:$0xff]  ;;  %v366_v8 = vld [vmem:[#allocation2 + $0x6b8] sm:$0xff] }
  0x51   :  { %751 = vmatpush.msrb.mxu0 %v288_v24  ;;  %791 = vmatpush.msrb.mxu2 %v289_v26  ;;  %v620_v3 = vld [vmem:[#allocation2 + $0xea8] sm:$0xff]  ;;  %v365_v6 = vld [vmem:[#allocation2 + $0x6b0] sm:$0xff]  ;;  %v606_v9 = vld [vmem:[#allocation2 + $0xe38] sm:$0xff] }
  0x52   :  { %771 = vmatpush.msrb.mxu1 %v528_v25  ;;  %811 = vmatpush.msrb.mxu3 %v529_v27  ;;  %v605_v7 = vld [vmem:[#allocation2 + $0xe30] sm:$0xff]  ;;  %v350_v10 = vld [vmem:[#allocation2 + $0x638] sm:$0xff]  ;;  %v351_v12 = vld [vmem:[#allocation2 + $0x640] sm:$0xff] }
  0x53   :  { %752 = vmatpush.msrb.mxu0 %v273_v28  ;;  %792 = vmatpush.msrb.mxu2 %v274_v30  ;;  %v590_v11 = vld [vmem:[#allocation2 + $0xdb8] sm:$0xff]  ;;  %v591_v13 = vld [vmem:[#allocation2 + $0xdc0] sm:$0xff]  ;;  %v336_v16 = vld [vmem:[#allocation2 + $0x5c8] sm:$0xff] }
  0x54   :  { %772 = vmatpush.msrb.mxu1 %v513_v29  ;;  %812 = vmatpush.msrb.mxu3 %v514_v31  ;;  %v335_v14 = vld [vmem:[#allocation2 + $0x5c0] sm:$0xff]  ;;  %v576_v17 = vld [vmem:[#allocation2 + $0xd48] sm:$0xff]  ;;  %v321_v20 = vld [vmem:[#allocation2 + $0x550] sm:$0xff] }
  0x55   :  { %753 = vmatpush.msrb.mxu0 %v258_v32  ;;  %793 = vmatpush.msrb.mxu2 %v259_v34  ;;  %v575_v15 = vld [vmem:[#allocation2 + $0xd40] sm:$0xff]  ;;  %v320_v18 = vld [vmem:[#allocation2 + $0x548] sm:$0xff]  ;;  %v561_v21 = vld [vmem:[#allocation2 + $0xcd0] sm:$0xff] }
  0x56   :  { %773 = vmatpush.msrb.mxu1 %v498_v33  ;;  %813 = vmatpush.msrb.mxu3 %v499_v35  ;;  %v560_v19 = vld [vmem:[#allocation2 + $0xcc8] sm:$0xff]  ;;  %v305_v22 = vld [vmem:[#allocation2 + $0x4d0] sm:$0xff]  ;;  %v306_v24 = vld [vmem:[#allocation2 + $0x4d8] sm:$0xff] }
  0x57   :  { %754 = vmatpush.msrb.mxu0 %v243_v36  ;;  %794 = vmatpush.msrb.mxu2 %v244_v38  ;;  %v545_v23 = vld [vmem:[#allocation2 + $0xc50] sm:$0xff]  ;;  %v546_v25 = vld [vmem:[#allocation2 + $0xc58] sm:$0xff]  ;;  %v291_v28 = vld [vmem:[#allocation2 + $0x460] sm:$0xff] }
  0x58   :  { %774 = vmatpush.msrb.mxu1 %v483_v37  ;;  %814 = vmatpush.msrb.mxu3 %v484_v39  ;;  %v290_v26 = vld [vmem:[#allocation2 + $0x458] sm:$0xff]  ;;  %v531_v29 = vld [vmem:[#allocation2 + $0xbe0] sm:$0xff]  ;;  %v276_v32 = vld [vmem:[#allocation2 + $0x3e8] sm:$0xff] }
  0x59   :  { %755 = vmatpush.msrb.mxu0 %v228_v40  ;;  %795 = vmatpush.msrb.mxu2 %v229_v42  ;;  %v530_v27 = vld [vmem:[#allocation2 + $0xbd8] sm:$0xff]  ;;  %v275_v30 = vld [vmem:[#allocation2 + $0x3e0] sm:$0xff]  ;;  %v516_v33 = vld [vmem:[#allocation2 + $0xb68] sm:$0xff] }
  0x5a   :  { %775 = vmatpush.msrb.mxu1 %v468_v41  ;;  %815 = vmatpush.msrb.mxu3 %v469_v43  ;;  %v515_v31 = vld [vmem:[#allocation2 + $0xb60] sm:$0xff]  ;;  %v260_v34 = vld [vmem:[#allocation2 + $0x368] sm:$0xff]  ;;  %v261_v36 = vld [vmem:[#allocation2 + $0x370] sm:$0xff] }
  0x5b   :  { %756 = vmatpush.msrb.mxu0 %v213_v44  ;;  %796 = vmatpush.msrb.mxu2 %v214_v46  ;;  %v500_v35 = vld [vmem:[#allocation2 + $0xae8] sm:$0xff]  ;;  %v501_v37 = vld [vmem:[#allocation2 + $0xaf0] sm:$0xff]  ;;  %v246_v40 = vld [vmem:[#allocation2 + $0x2f8] sm:$0xff] }
  0x5c   :  { %776 = vmatpush.msrb.mxu1 %v453_v45  ;;  %816 = vmatpush.msrb.mxu3 %v454_v47  ;;  %v245_v38 = vld [vmem:[#allocation2 + $0x2f0] sm:$0xff]  ;;  %v486_v41 = vld [vmem:[#allocation2 + $0xa78] sm:$0xff]  ;;  %v231_v44 = vld [vmem:[#allocation2 + $0x280] sm:$0xff] }
  0x5d   :  { %757 = vmatpush.msrb.mxu0 %v198_v48  ;;  %797 = vmatpush.msrb.mxu2 %v199_v50  ;;  %v485_v39 = vld [vmem:[#allocation2 + $0xa70] sm:$0xff]  ;;  %v230_v42 = vld [vmem:[#allocation2 + $0x278] sm:$0xff]  ;;  %v471_v45 = vld [vmem:[#allocation2 + $0xa00] sm:$0xff] }
  0x5e   :  { %777 = vmatpush.msrb.mxu1 %v438_v49  ;;  %817 = vmatpush.msrb.mxu3 %v439_v51  ;;  %v470_v43 = vld [vmem:[#allocation2 + $0x9f8] sm:$0xff]  ;;  %v215_v46 = vld [vmem:[#allocation2 + $0x200] sm:$0xff]  ;;  %v216_v48 = vld [vmem:[#allocation2 + $0x208] sm:$0xff] }
  0x5f   :  { %758 = vmatpush.msrb.mxu0 %v183_v52  ;;  %798 = vmatpush.msrb.mxu2 %v184_v54  ;;  %v455_v47 = vld [vmem:[#allocation2 + $0x980] sm:$0xff]  ;;  %v456_v49 = vld [vmem:[#allocation2 + $0x988] sm:$0xff]  ;;  %v201_v52 = vld [vmem:[#allocation2 + $0x190] sm:$0xff] }
  0x60   :  { %778 = vmatpush.msrb.mxu1 %v423_v53  ;;  %818 = vmatpush.msrb.mxu3 %v424_v55  ;;  %v200_v50 = vld [vmem:[#allocation2 + $0x188] sm:$0xff]  ;;  %v441_v53 = vld [vmem:[#allocation2 + $0x910] sm:$0xff] }
  0x61   :  { %759 = vmatpush.msrb.mxu0 %v168_v56  ;;  %799 = vmatpush.msrb.mxu2 %v169_v58  ;;  %v440_v51 = vld [vmem:[#allocation2 + $0x908] sm:$0xff]  ;;  %v185_v54 = vld [vmem:[#allocation2 + $0x110] sm:$0xff]  ;;  %v186_v56 = vld [vmem:[#allocation2 + $0x118] sm:$0xff] }
  0x62   :  { %779 = vmatpush.msrb.mxu1 %v408_v57  ;;  %819 = vmatpush.msrb.mxu3 %v409_v59  ;;  %v425_v55 = vld [vmem:[#allocation2 + $0x890] sm:$0xff]  ;;  %v426_v57 = vld [vmem:[#allocation2 + $0x898] sm:$0xff] }
  0x63   :  { %760 = vmatpush.msrb.mxu0 %v153_v60  ;;  %800 = vmatpush.msrb.mxu2 %v154_v62  ;;  %v170_v58 = vld [vmem:[#allocation2 + $0x98] sm:$0xff]  ;;  %v171_v60 = vld [vmem:[#allocation2 + $0xa0] sm:$0xff] }
  0x64   :  { %780 = vmatpush.msrb.mxu1 %v393_v61  ;;  %820 = vmatpush.msrb.mxu3 %v394_v63  ;;  %v410_v59 = vld [vmem:[#allocation2 + $0x818] sm:$0xff]  ;;  %v411_v61 = vld [vmem:[#allocation2 + $0x820] sm:$0xff] }
  0x65   :  { %681 = vmatmul.f32.vlgmr.msra.gmra.mxu0 %v2950_v0  ;;  %701 = vmatmul.f32.vlgmr.msra.gmra.mxu1 %v2955_v1  ;;  %v155_v62 = vld [vmem:[#allocation2 + $0x20] sm:$0xff] }
  0x66   :  { %721 = vmatmul.f32.vlgmr.msra.gmra.mxu2 %v2950_v0  ;;  %741 = vmatmul.f32.vlgmr.msra.gmra.mxu3 %v2955_v1  ;;  %v395_v63 = vld [vmem:[#allocation2 + $0x7a0] sm:$0xff] }
  0x67   :  { %825 = vmatpush.msra.mxu0 %v380_v2  ;;  %845 = vmatpush.msra.mxu1 %v620_v3  ;;  %v156_v2 = vld [vmem:[#allocation2 + $0x28] sm:$0xff] }
  0x68   :  { %865 = vmatpush.msra.mxu2 %v381_v4  ;;  %885 = vmatpush.msra.mxu3 %v621_v5  ;;  %v396_v3 = vld [vmem:[#allocation2 + $0x7a8] sm:$0xff]  ;;  %v382_v4 = vld [vmem:[#allocation2 + $0x738] sm:$0xff] }
  0x69   :  { %826 = vmatpush.msra.mxu0 %v365_v6  ;;  %846 = vmatpush.msra.mxu1 %v605_v7  ;;  %v622_v5 = vld [vmem:[#allocation2 + $0xeb8] sm:$0xff]  ;;  %v383_v6 = vld [vmem:[#allocation2 + $0x740] sm:$0xff] }
  0x6a   :  { %866 = vmatpush.msra.mxu2 %v366_v8  ;;  %886 = vmatpush.msra.mxu3 %v606_v9  ;;  %v623_v7 = vld [vmem:[#allocation2 + $0xec0] sm:$0xff] }
  0x6b   :  { %827 = vmatpush.msra.mxu0 %v350_v10  ;;  %847 = vmatpush.msra.mxu1 %v590_v11  ;;  %v367_v8 = vld [vmem:[#allocation2 + $0x6c0] sm:$0xff]  ;;  %v368_v10 = vld [vmem:[#allocation2 + $0x6c8] sm:$0xff] }
  0x6c   :  { %867 = vmatpush.msra.mxu2 %v351_v12  ;;  %887 = vmatpush.msra.mxu3 %v591_v13  ;;  %v607_v9 = vld [vmem:[#allocation2 + $0xe40] sm:$0xff]  ;;  %v608_v11 = vld [vmem:[#allocation2 + $0xe48] sm:$0xff] }
  0x6d   :  { %828 = vmatpush.msra.mxu0 %v335_v14  ;;  %848 = vmatpush.msra.mxu1 %v575_v15  ;;  %v352_v12 = vld [vmem:[#allocation2 + $0x648] sm:$0xff]  ;;  %v353_v14 = vld [vmem:[#allocation2 + $0x650] sm:$0xff] }
  0x6e   :  { %868 = vmatpush.msra.mxu2 %v336_v16  ;;  %888 = vmatpush.msra.mxu3 %v576_v17  ;;  %v592_v13 = vld [vmem:[#allocation2 + $0xdc8] sm:$0xff]  ;;  %v593_v15 = vld [vmem:[#allocation2 + $0xdd0] sm:$0xff] }
  0x6f   :  { %829 = vmatpush.msra.mxu0 %v320_v18  ;;  %849 = vmatpush.msra.mxu1 %v560_v19  ;;  %v337_v16 = vld [vmem:[#allocation2 + $0x5d0] sm:$0xff]  ;;  %v338_v18 = vld [vmem:[#allocation2 + $0x5d8] sm:$0xff] }
  0x70   :  { %869 = vmatpush.msra.mxu2 %v321_v20  ;;  %889 = vmatpush.msra.mxu3 %v561_v21  ;;  %v577_v17 = vld [vmem:[#allocation2 + $0xd50] sm:$0xff]  ;;  %v578_v19 = vld [vmem:[#allocation2 + $0xd58] sm:$0xff] }
  0x71   :  { %830 = vmatpush.msra.mxu0 %v305_v22  ;;  %850 = vmatpush.msra.mxu1 %v545_v23  ;;  %v322_v20 = vld [vmem:[#allocation2 + $0x558] sm:$0xff]  ;;  %v323_v22 = vld [vmem:[#allocation2 + $0x560] sm:$0xff] }
  0x72   :  { %870 = vmatpush.msra.mxu2 %v306_v24  ;;  %890 = vmatpush.msra.mxu3 %v546_v25  ;;  %v562_v21 = vld [vmem:[#allocation2 + $0xcd8] sm:$0xff]  ;;  %v563_v23 = vld [vmem:[#allocation2 + $0xce0] sm:$0xff] }
  0x73   :  { %831 = vmatpush.msra.mxu0 %v290_v26  ;;  %851 = vmatpush.msra.mxu1 %v530_v27  ;;  %v307_v24 = vld [vmem:[#allocation2 + $0x4e0] sm:$0xff]  ;;  %v308_v26 = vld [vmem:[#allocation2 + $0x4e8] sm:$0xff] }
  0x74   :  { %871 = vmatpush.msra.mxu2 %v291_v28  ;;  %891 = vmatpush.msra.mxu3 %v531_v29  ;;  %v547_v25 = vld [vmem:[#allocation2 + $0xc60] sm:$0xff]  ;;  %v548_v27 = vld [vmem:[#allocation2 + $0xc68] sm:$0xff] }
  0x75   :  { %832 = vmatpush.msra.mxu0 %v275_v30  ;;  %852 = vmatpush.msra.mxu1 %v515_v31  ;;  %v292_v28 = vld [vmem:[#allocation2 + $0x468] sm:$0xff]  ;;  %v293_v30 = vld [vmem:[#allocation2 + $0x470] sm:$0xff] }
  0x76   :  { %872 = vmatpush.msra.mxu2 %v276_v32  ;;  %892 = vmatpush.msra.mxu3 %v516_v33  ;;  %v532_v29 = vld [vmem:[#allocation2 + $0xbe8] sm:$0xff]  ;;  %v533_v31 = vld [vmem:[#allocation2 + $0xbf0] sm:$0xff] }
  0x77   :  { %833 = vmatpush.msra.mxu0 %v260_v34  ;;  %853 = vmatpush.msra.mxu1 %v500_v35  ;;  %v277_v32 = vld [vmem:[#allocation2 + $0x3f0] sm:$0xff]  ;;  %v278_v34 = vld [vmem:[#allocation2 + $0x3f8] sm:$0xff] }
  0x78   :  { %873 = vmatpush.msra.mxu2 %v261_v36  ;;  %893 = vmatpush.msra.mxu3 %v501_v37  ;;  %v517_v33 = vld [vmem:[#allocation2 + $0xb70] sm:$0xff]  ;;  %v518_v35 = vld [vmem:[#allocation2 + $0xb78] sm:$0xff] }
  0x79   :  { %834 = vmatpush.msra.mxu0 %v245_v38  ;;  %854 = vmatpush.msra.mxu1 %v485_v39  ;;  %v262_v36 = vld [vmem:[#allocation2 + $0x378] sm:$0xff]  ;;  %v263_v38 = vld [vmem:[#allocation2 + $0x380] sm:$0xff] }
  0x7a   :  { %874 = vmatpush.msra.mxu2 %v246_v40  ;;  %894 = vmatpush.msra.mxu3 %v486_v41  ;;  %v502_v37 = vld [vmem:[#allocation2 + $0xaf8] sm:$0xff]  ;;  %v503_v39 = vld [vmem:[#allocation2 + $0xb00] sm:$0xff] }
  0x7b   :  { %835 = vmatpush.msra.mxu0 %v230_v42  ;;  %855 = vmatpush.msra.mxu1 %v470_v43  ;;  %v247_v40 = vld [vmem:[#allocation2 + $0x300] sm:$0xff]  ;;  %v248_v42 = vld [vmem:[#allocation2 + $0x308] sm:$0xff] }
  0x7c   :  { %875 = vmatpush.msra.mxu2 %v231_v44  ;;  %895 = vmatpush.msra.mxu3 %v471_v45  ;;  %v487_v41 = vld [vmem:[#allocation2 + $0xa80] sm:$0xff]  ;;  %v488_v43 = vld [vmem:[#allocation2 + $0xa88] sm:$0xff] }
  0x7d   :  { %836 = vmatpush.msra.mxu0 %v215_v46  ;;  %856 = vmatpush.msra.mxu1 %v455_v47  ;;  %v232_v44 = vld [vmem:[#allocation2 + $0x288] sm:$0xff]  ;;  %v233_v46 = vld [vmem:[#allocation2 + $0x290] sm:$0xff] }
  0x7e   :  { %876 = vmatpush.msra.mxu2 %v216_v48  ;;  %896 = vmatpush.msra.mxu3 %v456_v49  ;;  %v472_v45 = vld [vmem:[#allocation2 + $0xa08] sm:$0xff]  ;;  %v473_v47 = vld [vmem:[#allocation2 + $0xa10] sm:$0xff] }
  0x7f   :  { %837 = vmatpush.msra.mxu0 %v200_v50  ;;  %857 = vmatpush.msra.mxu1 %v440_v51  ;;  %v217_v48 = vld [vmem:[#allocation2 + $0x210] sm:$0xff]  ;;  %v218_v50 = vld [vmem:[#allocation2 + $0x218] sm:$0xff] }
  0x80   :  { %877 = vmatpush.msra.mxu2 %v201_v52  ;;  %897 = vmatpush.msra.mxu3 %v441_v53  ;;  %v457_v49 = vld [vmem:[#allocation2 + $0x990] sm:$0xff]  ;;  %v458_v51 = vld [vmem:[#allocation2 + $0x998] sm:$0xff] }
  0x81   :  { %838 = vmatpush.msra.mxu0 %v185_v54  ;;  %858 = vmatpush.msra.mxu1 %v425_v55  ;;  %v202_v52 = vld [vmem:[#allocation2 + $0x198] sm:$0xff]  ;;  %v203_v54 = vld [vmem:[#allocation2 + $0x1a0] sm:$0xff] }
  0x82   :  { %878 = vmatpush.msra.mxu2 %v186_v56  ;;  %898 = vmatpush.msra.mxu3 %v426_v57  ;;  %v442_v53 = vld [vmem:[#allocation2 + $0x918] sm:$0xff]  ;;  %v443_v55 = vld [vmem:[#allocation2 + $0x920] sm:$0xff] }
  0x83   :  { %839 = vmatpush.msra.mxu0 %v170_v58  ;;  %859 = vmatpush.msra.mxu1 %v410_v59  ;;  %v187_v56 = vld [vmem:[#allocation2 + $0x120] sm:$0xff]  ;;  %v188_v58 = vld [vmem:[#allocation2 + $0x128] sm:$0xff] }
  0x84   :  { %879 = vmatpush.msra.mxu2 %v171_v60  ;;  %899 = vmatpush.msra.mxu3 %v411_v61  ;;  %v427_v57 = vld [vmem:[#allocation2 + $0x8a0] sm:$0xff]  ;;  %v428_v59 = vld [vmem:[#allocation2 + $0x8a8] sm:$0xff] }
  0x85   :  { %840 = vmatpush.msra.mxu0 %v155_v62  ;;  %860 = vmatpush.msra.mxu1 %v395_v63  ;;  %v172_v60 = vld [vmem:[#allocation2 + $0xa8] sm:$0xff]  ;;  %v173_v62 = vld [vmem:[#allocation2 + $0xb0] sm:$0xff] }
  0x86   :  { %880 = vmatpush.msra.mxu2 %v156_v2  ;;  %900 = vmatpush.msra.mxu3 %v396_v3  ;;  %v412_v61 = vld [vmem:[#allocation2 + $0x828] sm:$0xff]  ;;  %v413_v63 = vld [vmem:[#allocation2 + $0x830] sm:$0xff] }
  0x87   :  { %761 = vmatmul.f32.vlgmr.msrb.gmra.mxu0 %v2950_v0  ;;  %781 = vmatmul.f32.vlgmr.msrb.gmra.mxu1 %v2955_v1  ;;  %v157_v2 = vld [vmem:[#allocation2 + $0x30] sm:$0xff] }
  0x88   :  { %801 = vmatmul.f32.vlgmr.msrb.gmra.mxu2 %v2950_v0  ;;  %821 = vmatmul.f32.vlgmr.msrb.gmra.mxu3 %v2955_v1  ;;  %v397_v3 = vld [vmem:[#allocation2 + $0x7b0] sm:$0xff] }
  0x89   :  { %905 = vmatpush.msrb.mxu0 %v382_v4  ;;  %925 = vmatpush.msrb.mxu1 %v622_v5  ;;  %v158_v4 = vld [vmem:[#allocation2 + $0x38] sm:$0xff] }
  0x8a   :  { %945 = vmatpush.msrb.mxu2 %v383_v6  ;;  %965 = vmatpush.msrb.mxu3 %v623_v7  ;;  %v398_v5 = vld [vmem:[#allocation2 + $0x7b8] sm:$0xff]  ;;  %v384_v6 = vld [vmem:[#allocation2 + $0x748] sm:$0xff] }
  0x8b   :  { %906 = vmatpush.msrb.mxu0 %v367_v8  ;;  %926 = vmatpush.msrb.mxu1 %v607_v9  ;;  %v624_v7 = vld [vmem:[#allocation2 + $0xec8] sm:$0xff]  ;;  %v385_v8 = vld [vmem:[#allocation2 + $0x750] sm:$0xff] }
  0x8c   :  { %946 = vmatpush.msrb.mxu2 %v368_v10  ;;  %966 = vmatpush.msrb.mxu3 %v608_v11  ;;  %v625_v9 = vld [vmem:[#allocation2 + $0xed0] sm:$0xff] }
  0x8d   :  { %907 = vmatpush.msrb.mxu0 %v352_v12  ;;  %927 = vmatpush.msrb.mxu1 %v592_v13  ;;  %v369_v10 = vld [vmem:[#allocation2 + $0x6d0] sm:$0xff]  ;;  %v370_v12 = vld [vmem:[#allocation2 + $0x6d8] sm:$0xff] }
  0x8e   :  { %947 = vmatpush.msrb.mxu2 %v353_v14  ;;  %967 = vmatpush.msrb.mxu3 %v593_v15  ;;  %v609_v11 = vld [vmem:[#allocation2 + $0xe50] sm:$0xff]  ;;  %v610_v13 = vld [vmem:[#allocation2 + $0xe58] sm:$0xff] }
  0x8f   :  { %908 = vmatpush.msrb.mxu0 %v337_v16  ;;  %928 = vmatpush.msrb.mxu1 %v577_v17  ;;  %v354_v14 = vld [vmem:[#allocation2 + $0x658] sm:$0xff]  ;;  %v355_v16 = vld [vmem:[#allocation2 + $0x660] sm:$0xff] }
  0x90   :  { %948 = vmatpush.msrb.mxu2 %v338_v18  ;;  %968 = vmatpush.msrb.mxu3 %v578_v19  ;;  %v594_v15 = vld [vmem:[#allocation2 + $0xdd8] sm:$0xff]  ;;  %v595_v17 = vld [vmem:[#allocation2 + $0xde0] sm:$0xff] }
  0x91   :  { %909 = vmatpush.msrb.mxu0 %v322_v20  ;;  %929 = vmatpush.msrb.mxu1 %v562_v21  ;;  %v339_v18 = vld [vmem:[#allocation2 + $0x5e0] sm:$0xff]  ;;  %v340_v20 = vld [vmem:[#allocation2 + $0x5e8] sm:$0xff] }
  0x92   :  { %949 = vmatpush.msrb.mxu2 %v323_v22  ;;  %969 = vmatpush.msrb.mxu3 %v563_v23  ;;  %v579_v19 = vld [vmem:[#allocation2 + $0xd60] sm:$0xff]  ;;  %v580_v21 = vld [vmem:[#allocation2 + $0xd68] sm:$0xff] }
  0x93   :  { %910 = vmatpush.msrb.mxu0 %v307_v24  ;;  %930 = vmatpush.msrb.mxu1 %v547_v25  ;;  %v324_v22 = vld [vmem:[#allocation2 + $0x568] sm:$0xff]  ;;  %v325_v24 = vld [vmem:[#allocation2 + $0x570] sm:$0xff] }
  0x94   :  { %950 = vmatpush.msrb.mxu2 %v308_v26  ;;  %970 = vmatpush.msrb.mxu3 %v548_v27  ;;  %v564_v23 = vld [vmem:[#allocation2 + $0xce8] sm:$0xff]  ;;  %v565_v25 = vld [vmem:[#allocation2 + $0xcf0] sm:$0xff] }
  0x95   :  { %911 = vmatpush.msrb.mxu0 %v292_v28  ;;  %931 = vmatpush.msrb.mxu1 %v532_v29  ;;  %v309_v26 = vld [vmem:[#allocation2 + $0x4f0] sm:$0xff]  ;;  %v310_v28 = vld [vmem:[#allocation2 + $0x4f8] sm:$0xff] }
  0x96   :  { %951 = vmatpush.msrb.mxu2 %v293_v30  ;;  %971 = vmatpush.msrb.mxu3 %v533_v31  ;;  %v549_v27 = vld [vmem:[#allocation2 + $0xc70] sm:$0xff]  ;;  %v550_v29 = vld [vmem:[#allocation2 + $0xc78] sm:$0xff] }
  0x97   :  { %912 = vmatpush.msrb.mxu0 %v277_v32  ;;  %932 = vmatpush.msrb.mxu1 %v517_v33  ;;  %v294_v30 = vld [vmem:[#allocation2 + $0x478] sm:$0xff]  ;;  %v295_v32 = vld [vmem:[#allocation2 + $0x480] sm:$0xff] }
  0x98   :  { %952 = vmatpush.msrb.mxu2 %v278_v34  ;;  %972 = vmatpush.msrb.mxu3 %v518_v35  ;;  %v534_v31 = vld [vmem:[#allocation2 + $0xbf8] sm:$0xff]  ;;  %v535_v33 = vld [vmem:[#allocation2 + $0xc00] sm:$0xff] }
  0x99   :  { %913 = vmatpush.msrb.mxu0 %v262_v36  ;;  %933 = vmatpush.msrb.mxu1 %v502_v37  ;;  %v279_v34 = vld [vmem:[#allocation2 + $0x400] sm:$0xff]  ;;  %v280_v36 = vld [vmem:[#allocation2 + $0x408] sm:$0xff] }
  0x9a   :  { %953 = vmatpush.msrb.mxu2 %v263_v38  ;;  %973 = vmatpush.msrb.mxu3 %v503_v39  ;;  %v519_v35 = vld [vmem:[#allocation2 + $0xb80] sm:$0xff]  ;;  %v520_v37 = vld [vmem:[#allocation2 + $0xb88] sm:$0xff] }
  0x9b   :  { %914 = vmatpush.msrb.mxu0 %v247_v40  ;;  %934 = vmatpush.msrb.mxu1 %v487_v41  ;;  %v264_v38 = vld [vmem:[#allocation2 + $0x388] sm:$0xff]  ;;  %v265_v40 = vld [vmem:[#allocation2 + $0x390] sm:$0xff] }
  0x9c   :  { %954 = vmatpush.msrb.mxu2 %v248_v42  ;;  %974 = vmatpush.msrb.mxu3 %v488_v43  ;;  %v504_v39 = vld [vmem:[#allocation2 + $0xb08] sm:$0xff]  ;;  %v505_v41 = vld [vmem:[#allocation2 + $0xb10] sm:$0xff] }
  0x9d   :  { %915 = vmatpush.msrb.mxu0 %v232_v44  ;;  %935 = vmatpush.msrb.mxu1 %v472_v45  ;;  %v249_v42 = vld [vmem:[#allocation2 + $0x310] sm:$0xff]  ;;  %v250_v44 = vld [vmem:[#allocation2 + $0x318] sm:$0xff] }
  0x9e   :  { %955 = vmatpush.msrb.mxu2 %v233_v46  ;;  %975 = vmatpush.msrb.mxu3 %v473_v47  ;;  %v489_v43 = vld [vmem:[#allocation2 + $0xa90] sm:$0xff]  ;;  %v490_v45 = vld [vmem:[#allocation2 + $0xa98] sm:$0xff] }
  0x9f   :  { %916 = vmatpush.msrb.mxu0 %v217_v48  ;;  %936 = vmatpush.msrb.mxu1 %v457_v49  ;;  %v234_v46 = vld [vmem:[#allocation2 + $0x298] sm:$0xff]  ;;  %v235_v48 = vld [vmem:[#allocation2 + $0x2a0] sm:$0xff] }
  0xa0   :  { %956 = vmatpush.msrb.mxu2 %v218_v50  ;;  %976 = vmatpush.msrb.mxu3 %v458_v51  ;;  %v474_v47 = vld [vmem:[#allocation2 + $0xa18] sm:$0xff]  ;;  %v475_v49 = vld [vmem:[#allocation2 + $0xa20] sm:$0xff] }
  0xa1   :  { %917 = vmatpush.msrb.mxu0 %v202_v52  ;;  %937 = vmatpush.msrb.mxu1 %v442_v53  ;;  %v219_v50 = vld [vmem:[#allocation2 + $0x220] sm:$0xff]  ;;  %v220_v52 = vld [vmem:[#allocation2 + $0x228] sm:$0xff] }
  0xa2   :  { %957 = vmatpush.msrb.mxu2 %v203_v54  ;;  %977 = vmatpush.msrb.mxu3 %v443_v55  ;;  %v459_v51 = vld [vmem:[#allocation2 + $0x9a0] sm:$0xff]  ;;  %v460_v53 = vld [vmem:[#allocation2 + $0x9a8] sm:$0xff] }
  0xa3   :  { %918 = vmatpush.msrb.mxu0 %v187_v56  ;;  %938 = vmatpush.msrb.mxu1 %v427_v57  ;;  %v204_v54 = vld [vmem:[#allocation2 + $0x1a8] sm:$0xff]  ;;  %v205_v56 = vld [vmem:[#allocation2 + $0x1b0] sm:$0xff] }
  0xa4   :  { %958 = vmatpush.msrb.mxu2 %v188_v58  ;;  %978 = vmatpush.msrb.mxu3 %v428_v59  ;;  %v444_v55 = vld [vmem:[#allocation2 + $0x928] sm:$0xff]  ;;  %v445_v57 = vld [vmem:[#allocation2 + $0x930] sm:$0xff] }
  0xa5   :  { %919 = vmatpush.msrb.mxu0 %v172_v60  ;;  %939 = vmatpush.msrb.mxu1 %v412_v61  ;;  %v189_v58 = vld [vmem:[#allocation2 + $0x130] sm:$0xff]  ;;  %v190_v60 = vld [vmem:[#allocation2 + $0x138] sm:$0xff] }
  0xa6   :  { %959 = vmatpush.msrb.mxu2 %v173_v62  ;;  %979 = vmatpush.msrb.mxu3 %v413_v63  ;;  %v429_v59 = vld [vmem:[#allocation2 + $0x8b0] sm:$0xff]  ;;  %v430_v61 = vld [vmem:[#allocation2 + $0x8b8] sm:$0xff] }
  0xa7   :  { %920 = vmatpush.msrb.mxu0 %v157_v2  ;;  %940 = vmatpush.msrb.mxu1 %v397_v3  ;;  %v414_v62 = vld [vmem:[#allocation2 + $0x838] sm:$0xff]  ;;  %v175_v2 = vld [vmem:[#allocation2 + $0xc0] sm:$0xff] }
  0xa8   :  { %960 = vmatpush.msrb.mxu2 %v158_v4  ;;  %980 = vmatpush.msrb.mxu3 %v398_v5  ;;  %v174_v63 = vld [vmem:[#allocation2 + $0xb8] sm:$0xff]  ;;  %v415_v3 = vld [vmem:[#allocation2 + $0x840] sm:$0xff] }
  0xa9   :  { %841 = vmatmul.f32.vlgmr.msra.gmra.mxu0 %v2950_v0  ;;  %861 = vmatmul.f32.vlgmr.msra.gmra.mxu1 %v2955_v1  ;;  %v159_v4 = vld [vmem:[#allocation2 + $0x40] sm:$0xff] }
  0xaa   :  { %881 = vmatmul.f32.vlgmr.msra.gmra.mxu2 %v2950_v0  ;;  %901 = vmatmul.f32.vlgmr.msra.gmra.mxu3 %v2955_v1  ;;  %v399_v5 = vld [vmem:[#allocation2 + $0x7c0] sm:$0xff] }
  0xab   :  { %985 = vmatpush.msra.mxu0 %v384_v6  ;;  %1005 = vmatpush.msra.mxu1 %v624_v7  ;;  %v160_v6 = vld [vmem:[#allocation2 + $0x48] sm:$0xff] }
  0xac   :  { %1025 = vmatpush.msra.mxu2 %v385_v8  ;;  %1045 = vmatpush.msra.mxu3 %v625_v9  ;;  %v400_v7 = vld [vmem:[#allocation2 + $0x7c8] sm:$0xff]  ;;  %v386_v8 = vld [vmem:[#allocation2 + $0x758] sm:$0xff] }
  0xad   :  { %986 = vmatpush.msra.mxu0 %v369_v10  ;;  %1006 = vmatpush.msra.mxu1 %v609_v11  ;;  %v626_v9 = vld [vmem:[#allocation2 + $0xed8] sm:$0xff]  ;;  %v387_v10 = vld [vmem:[#allocation2 + $0x760] sm:$0xff] }
  0xae   :  { %1026 = vmatpush.msra.mxu2 %v370_v12  ;;  %1046 = vmatpush.msra.mxu3 %v610_v13  ;;  %v627_v11 = vld [vmem:[#allocation2 + $0xee0] sm:$0xff] }
  0xaf   :  { %987 = vmatpush.msra.mxu0 %v354_v14  ;;  %1007 = vmatpush.msra.mxu1 %v594_v15  ;;  %v371_v12 = vld [vmem:[#allocation2 + $0x6e0] sm:$0xff]  ;;  %v372_v14 = vld [vmem:[#allocation2 + $0x6e8] sm:$0xff] }
  0xb0   :  { %1027 = vmatpush.msra.mxu2 %v355_v16  ;;  %1047 = vmatpush.msra.mxu3 %v595_v17  ;;  %v611_v13 = vld [vmem:[#allocation2 + $0xe60] sm:$0xff]  ;;  %v612_v15 = vld [vmem:[#allocation2 + $0xe68] sm:$0xff] }
  0xb1   :  { %988 = vmatpush.msra.mxu0 %v339_v18  ;;  %1008 = vmatpush.msra.mxu1 %v579_v19  ;;  %v356_v16 = vld [vmem:[#allocation2 + $0x668] sm:$0xff]  ;;  %v357_v18 = vld [vmem:[#allocation2 + $0x670] sm:$0xff] }
  0xb2   :  { %1028 = vmatpush.msra.mxu2 %v340_v20  ;;  %1048 = vmatpush.msra.mxu3 %v580_v21  ;;  %v596_v17 = vld [vmem:[#allocation2 + $0xde8] sm:$0xff]  ;;  %v597_v19 = vld [vmem:[#allocation2 + $0xdf0] sm:$0xff] }
  0xb3   :  { %989 = vmatpush.msra.mxu0 %v324_v22  ;;  %1009 = vmatpush.msra.mxu1 %v564_v23  ;;  %v581_v20 = vld [vmem:[#allocation2 + $0xd70] sm:$0xff]  ;;  %v342_v22 = vld [vmem:[#allocation2 + $0x5f8] sm:$0xff] }
  0xb4   :  { %1029 = vmatpush.msra.mxu2 %v325_v24  ;;  %1049 = vmatpush.msra.mxu3 %v565_v25  ;;  %v341_v21 = vld [vmem:[#allocation2 + $0x5f0] sm:$0xff]  ;;  %v582_v23 = vld [vmem:[#allocation2 + $0xd78] sm:$0xff] }
  0xb5   :  { %990 = vmatpush.msra.mxu0 %v309_v26  ;;  %1010 = vmatpush.msra.mxu1 %v549_v27  ;;  %v326_v24 = vld [vmem:[#allocation2 + $0x578] sm:$0xff]  ;;  %v327_v26 = vld [vmem:[#allocation2 + $0x580] sm:$0xff] }
  0xb6   :  { %1030 = vmatpush.msra.mxu2 %v310_v28  ;;  %1050 = vmatpush.msra.mxu3 %v550_v29  ;;  %v566_v25 = vld [vmem:[#allocation2 + $0xcf8] sm:$0xff]  ;;  %v567_v27 = vld [vmem:[#allocation2 + $0xd00] sm:$0xff] }
  0xb7   :  { %991 = vmatpush.msra.mxu0 %v294_v30  ;;  %1011 = vmatpush.msra.mxu1 %v534_v31  ;;  %v311_v28 = vld [vmem:[#allocation2 + $0x500] sm:$0xff]  ;;  %v312_v30 = vld [vmem:[#allocation2 + $0x508] sm:$0xff] }
  0xb8   :  { %1031 = vmatpush.msra.mxu2 %v295_v32  ;;  %1051 = vmatpush.msra.mxu3 %v535_v33  ;;  %v551_v29 = vld [vmem:[#allocation2 + $0xc80] sm:$0xff]  ;;  %v552_v31 = vld [vmem:[#allocation2 + $0xc88] sm:$0xff]  ;;  %v297_v33 = vld [vmem:[#allocation2 + $0x490] sm:$0xff] }
  0xb9   :  { %992 = vmatpush.msra.mxu0 %v279_v34  ;;  %1012 = vmatpush.msra.mxu1 %v519_v35  ;;  %v296_v32 = vld [vmem:[#allocation2 + $0x488] sm:$0xff]  ;;  %v537_v34 = vld [vmem:[#allocation2 + $0xc10] sm:$0xff] }
  0xba   :  { %1032 = vmatpush.msra.mxu2 %v280_v36  ;;  %1052 = vmatpush.msra.mxu3 %v520_v37  ;;  %v281_v35 = vld [vmem:[#allocation2 + $0x410] sm:$0xff]  ;;  %v522_v37 = vld [vmem:[#allocation2 + $0xb98] sm:$0xff] }
  0xbb   :  { %993 = vmatpush.msra.mxu0 %v264_v38  ;;  %1013 = vmatpush.msra.mxu1 %v504_v39  ;;  %v521_v36 = vld [vmem:[#allocation2 + $0xb90] sm:$0xff]  ;;  %v266_v38 = vld [vmem:[#allocation2 + $0x398] sm:$0xff] }
  0xbc   :  { %1033 = vmatpush.msra.mxu2 %v265_v40  ;;  %1053 = vmatpush.msra.mxu3 %v505_v41  ;;  %v506_v39 = vld [vmem:[#allocation2 + $0xb18] sm:$0xff]  ;;  %v267_v40 = vld [vmem:[#allocation2 + $0x3a0] sm:$0xff] }
  0xbd   :  { %994 = vmatpush.msra.mxu0 %v249_v42  ;;  %1014 = vmatpush.msra.mxu1 %v489_v43  ;;  %v507_v41 = vld [vmem:[#allocation2 + $0xb20] sm:$0xff] }
  0xbe   :  { %1034 = vmatpush.msra.mxu2 %v250_v44  ;;  %1054 = vmatpush.msra.mxu3 %v490_v45  ;;  %v251_v42 = vld [vmem:[#allocation2 + $0x320] sm:$0xff]  ;;  %v252_v44 = vld [vmem:[#allocation2 + $0x328] sm:$0xff] }
  0xbf   :  { %995 = vmatpush.msra.mxu0 %v234_v46  ;;  %1015 = vmatpush.msra.mxu1 %v474_v47  ;;  %v491_v43 = vld [vmem:[#allocation2 + $0xaa0] sm:$0xff]  ;;  %v492_v45 = vld [vmem:[#allocation2 + $0xaa8] sm:$0xff] }
  0xc0   :  { %1035 = vmatpush.msra.mxu2 %v235_v48  ;;  %1055 = vmatpush.msra.mxu3 %v475_v49  ;;  %v236_v46 = vld [vmem:[#allocation2 + $0x2a8] sm:$0xff]  ;;  %v237_v48 = vld [vmem:[#allocation2 + $0x2b0] sm:$0xff] }
  0xc1   :  { %996 = vmatpush.msra.mxu0 %v219_v50  ;;  %1016 = vmatpush.msra.mxu1 %v459_v51  ;;  %v476_v47 = vld [vmem:[#allocation2 + $0xa28] sm:$0xff]  ;;  %v477_v49 = vld [vmem:[#allocation2 + $0xa30] sm:$0xff] }
  0xc2   :  { %1036 = vmatpush.msra.mxu2 %v220_v52  ;;  %1056 = vmatpush.msra.mxu3 %v460_v53  ;;  %v221_v50 = vld [vmem:[#allocation2 + $0x230] sm:$0xff]  ;;  %v222_v52 = vld [vmem:[#allocation2 + $0x238] sm:$0xff] }
  0xc3   :  { %961 = vmatmul.f32.vlgmr.msrb.gmra.mxu2 %v2950_v0  ;;  %997 = vmatpush.msra.mxu0 %v204_v54  ;;  %v461_v51 = vld [vmem:[#allocation2 + $0x9b0] sm:$0xff]  ;;  %v462_v53 = vld [vmem:[#allocation2 + $0x9b8] sm:$0xff] }
  0xc4   :  { %1017 = vmatpush.msra.mxu1 %v444_v55  ;;  %1037 = vmatpush.msra.mxu2 %v205_v56  ;;  %v206_v54 = vld [vmem:[#allocation2 + $0x1b8] sm:$0xff]  ;;  %v207_v56 = vld [vmem:[#allocation2 + $0x1c0] sm:$0xff] }
  0xc5   :  { %1057 = vmatpush.msra.mxu3 %v445_v57  ;;  %998 = vmatpush.msra.mxu0 %v189_v58  ;;  %v446_v55 = vld [vmem:[#allocation2 + $0x938] sm:$0xff]  ;;  %v447_v57 = vld [vmem:[#allocation2 + $0x940] sm:$0xff] }
  0xc6   :  { %981 = vmatmul.f32.vlgmr.msrb.gmra.mxu3 %v2955_v1  ;;  %1018 = vmatpush.msra.mxu1 %v429_v59  ;;  %v191_v58 = vld [vmem:[#allocation2 + $0x140] sm:$0xff] }
  0xc7   :  { %1038 = vmatpush.msra.mxu2 %v190_v60  ;;  %1058 = vmatpush.msra.mxu3 %v430_v61  ;;  %v431_v59 = vld [vmem:[#allocation2 + $0x8c0] sm:$0xff]  ;;  %v192_v60 = vld [vmem:[#allocation2 + $0x148] sm:$0xff] }
  0xc8   :  { %921 = vmatmul.f32.vlgmr.msrb.gmra.mxu0 %v2950_v0  ;;  %1019 = vmatpush.msra.mxu1 %v414_v62  ;;  %v432_v61 = vld [vmem:[#allocation2 + $0x8c8] sm:$0xff] }
  0xc9   :  { %999 = vmatpush.msra.mxu0 %v174_v63  ;;  %1039 = vmatpush.msra.mxu2 %v175_v2  ;;  %v176_v62 = vld [vmem:[#allocation2 + $0xc8] sm:$0xff]  ;;  %v177_v2 = vld [vmem:[#allocation2 + $0xd0] sm:$0xff] }
  0xca   :  { %1059 = vmatpush.msra.mxu3 %v415_v3  ;;  %941 = vmatmul.f32.vlgmr.msrb.gmra.mxu1 %v2955_v1  ;;  %v416_v63 = vld [vmem:[#allocation2 + $0x848] sm:$0xff]  ;;  %v417_v3 = vld [vmem:[#allocation2 + $0x850] sm:$0xff] }
  0xcb   :  { %1000 = vmatpush.msra.mxu0 %v159_v4  ;;  %1020 = vmatpush.msra.mxu1 %v399_v5  ;;  %v161_v4 = vld [vmem:[#allocation2 + $0x50] sm:$0xff] }
  0xcc   :  { %1040 = vmatpush.msra.mxu2 %v160_v6  ;;  %1060 = vmatpush.msra.mxu3 %v400_v7  ;;  %v401_v5 = vld [vmem:[#allocation2 + $0x7d0] sm:$0xff]  ;;  %v162_v6 = vld [vmem:[#allocation2 + $0x58] sm:$0xff] }
  0xcd   :  { %1065 = vmatpush.msrb.mxu0 %v386_v8  ;;  %1085 = vmatpush.msrb.mxu1 %v626_v9  ;;  %v402_v7 = vld [vmem:[#allocation2 + $0x7d8] sm:$0xff]  ;;  %v388_v8 = vld [vmem:[#allocation2 + $0x768] sm:$0xff] }
  0xce   :  { %1105 = vmatpush.msrb.mxu2 %v387_v10  ;;  %1125 = vmatpush.msrb.mxu3 %v627_v11  ;;  %v628_v9 = vld [vmem:[#allocation2 + $0xee8] sm:$0xff]  ;;  %v389_v10 = vld [vmem:[#allocation2 + $0x770] sm:$0xff] }
  0xcf   :  { %1041 = vmatmul.f32.vlgmr.msra.gmra.mxu2 %v2950_v0  ;;  %1066 = vmatpush.msrb.mxu0 %v371_v12  ;;  %v629_v11 = vld [vmem:[#allocation2 + $0xef0] sm:$0xff] }
  0xd0   :  { %1086 = vmatpush.msrb.mxu1 %v611_v13  ;;  %1106 = vmatpush.msrb.mxu2 %v372_v14  ;;  %v373_v12 = vld [vmem:[#allocation2 + $0x6f0] sm:$0xff]  ;;  %v374_v14 = vld [vmem:[#allocation2 + $0x6f8] sm:$0xff] }
  0xd1   :  { %1126 = vmatpush.msrb.mxu3 %v612_v15  ;;  %1067 = vmatpush.msrb.mxu0 %v356_v16  ;;  %v613_v13 = vld [vmem:[#allocation2 + $0xe70] sm:$0xff]  ;;  %v614_v15 = vld [vmem:[#allocation2 + $0xe78] sm:$0xff] }
  0xd2   :  { %1061 = vmatmul.f32.vlgmr.msra.gmra.mxu3 %v2955_v1  ;;  %1087 = vmatpush.msrb.mxu1 %v596_v17  ;;  %v358_v16 = vld [vmem:[#allocation2 + $0x678] sm:$0xff]  ;;  %v2980_v17 = vld [vmem:[%s3086_s0] sm:$0xff] }
  0xd3   :  { %1107 = vmatpush.msrb.mxu2 %v357_v18  ;;  %1127 = vmatpush.msrb.mxu3 %v597_v19  ;;  %v598_v18 = vld [vmem:[#allocation2 + $0xdf8] sm:$0xff]  ;;  %v359_v19 = vld [vmem:[#allocation2 + $0x680] sm:$0xff] }
  0xd4   :  { %1001 = vmatmul.f32.vlgmr.msra.gmra.mxu0 %v2950_v0  ;;  %1088 = vmatpush.msrb.mxu1 %v581_v20  ;;  %v536_v0 = vld [vmem:[#allocation2 + $0xc08] sm:$0xff]  ;;  %v599_v20 = vld [vmem:[#allocation2 + $0xe00] sm:$0xff] }
  0xd5   :  { %1068 = vmatpush.msrb.mxu0 %v341_v21  ;;  %1108 = vmatpush.msrb.mxu2 %v342_v22  ;;  %v583_v21 = vld [vmem:[#allocation2 + $0xd80] sm:$0xff]  ;;  %v2986_v22 = vld [vmem:[%s3086_s0 + $0x8] sm:$0xff] }
  0xd6   :  { %1128 = vmatpush.msrb.mxu3 %v582_v23  ;;  %1021 = vmatmul.f32.vlgmr.msra.gmra.mxu1 %v2955_v1  ;;  %v282_v1 = vld [vmem:[#allocation2 + $0x418] sm:$0xff]  ;;  %v343_v23 = vld [vmem:[#allocation2 + $0x600] sm:$0xff] }
  0xd7   :  { %1069 = vmatpush.msrb.mxu0 %v326_v24  ;;  %1089 = vmatpush.msrb.mxu1 %v566_v25  ;;  %v344_v24 = vld [vmem:[#allocation2 + $0x608] sm:$0xff] }
  0xd8   :  { %1109 = vmatpush.msrb.mxu2 %v327_v26  ;;  %1129 = vmatpush.msrb.mxu3 %v567_v27  ;;  %v584_v25 = vld [vmem:[#allocation2 + $0xd88] sm:$0xff] }
  0xd9   :  { %1070 = vmatpush.msrb.mxu0 %v311_v28  ;;  %1090 = vmatpush.msrb.mxu1 %v551_v29  ;;  %v328_v26 = vld [vmem:[#allocation2 + $0x588] sm:$0xff]  ;;  %v329_v28 = vld [vmem:[#allocation2 + $0x590] sm:$0xff] }
  0xda   :  { %1110 = vmatpush.msrb.mxu2 %v312_v30  ;;  %1130 = vmatpush.msrb.mxu3 %v552_v31  ;;  %v568_v27 = vld [vmem:[#allocation2 + $0xd08] sm:$0xff]  ;;  %v569_v29 = vld [vmem:[#allocation2 + $0xd10] sm:$0xff] }
  0xdb   :  { %1071 = vmatpush.msrb.mxu0 %v296_v32  ;;  %1091 = vmatpush.msrb.mxu1 %v536_v0  ;;  %v313_v30 = vld [vmem:[#allocation2 + $0x510] sm:$0xff]  ;;  %v314_v32 = vld [vmem:[#allocation2 + $0x518] sm:$0xff] }
  0xdc   :  { %1111 = vmatpush.msrb.mxu2 %v297_v33  ;;  %1131 = vmatpush.msrb.mxu3 %v537_v34  ;;  %v553_v31 = vld [vmem:[#allocation2 + $0xc90] sm:$0xff]  ;;  %v554_v0 = vld [vmem:[#allocation2 + $0xc98] sm:$0xff] }
  0xdd   :  { %1072 = vmatpush.msrb.mxu0 %v281_v35  ;;  %1092 = vmatpush.msrb.mxu1 %v521_v36  ;;  %v298_v33 = vld [vmem:[#allocation2 + $0x498] sm:$0xff]  ;;  %v299_v35 = vld [vmem:[#allocation2 + $0x4a0] sm:$0xff] }
  0xde   :  { %1112 = vmatpush.msrb.mxu2 %v282_v1  ;;  %1132 = vmatpush.msrb.mxu3 %v522_v37  ;;  %v538_v34 = vld [vmem:[#allocation2 + $0xc18] sm:$0xff]  ;;  %v539_v36 = vld [vmem:[#allocation2 + $0xc20] sm:$0xff] }
  0xdf   :  { %1073 = vmatpush.msrb.mxu0 %v266_v38  ;;  %1093 = vmatpush.msrb.mxu1 %v506_v39  ;;  %v283_v1 = vld [vmem:[#allocation2 + $0x420] sm:$0xff]  ;;  %v284_v38 = vld [vmem:[#allocation2 + $0x428] sm:$0xff] }
  0xe0   :  { %1113 = vmatpush.msrb.mxu2 %v267_v40  ;;  %1133 = vmatpush.msrb.mxu3 %v507_v41  ;;  %v523_v37 = vld [vmem:[#allocation2 + $0xba0] sm:$0xff]  ;;  %v524_v39 = vld [vmem:[#allocation2 + $0xba8] sm:$0xff] }
  0xe1   :  { %1074 = vmatpush.msrb.mxu0 %v251_v42  ;;  %1094 = vmatpush.msrb.mxu1 %v491_v43  ;;  %v268_v40 = vld [vmem:[#allocation2 + $0x3a8] sm:$0xff]  ;;  %v269_v42 = vld [vmem:[#allocation2 + $0x3b0] sm:$0xff] }
  0xe2   :  { %1114 = vmatpush.msrb.mxu2 %v252_v44  ;;  %1134 = vmatpush.msrb.mxu3 %v492_v45  ;;  %v508_v41 = vld [vmem:[#allocation2 + $0xb28] sm:$0xff]  ;;  %v509_v43 = vld [vmem:[#allocation2 + $0xb30] sm:$0xff] }
  0xe3   :  { %1075 = vmatpush.msrb.mxu0 %v236_v46  ;;  %1095 = vmatpush.msrb.mxu1 %v476_v47  ;;  %v253_v44 = vld [vmem:[#allocation2 + $0x330] sm:$0xff]  ;;  %v254_v46 = vld [vmem:[#allocation2 + $0x338] sm:$0xff] }
  0xe4   :  { %1115 = vmatpush.msrb.mxu2 %v237_v48  ;;  %1135 = vmatpush.msrb.mxu3 %v477_v49  ;;  %v493_v45 = vld [vmem:[#allocation2 + $0xab0] sm:$0xff]  ;;  %v494_v47 = vld [vmem:[#allocation2 + $0xab8] sm:$0xff] }
  0xe5   :  { %1076 = vmatpush.msrb.mxu0 %v221_v50  ;;  %1096 = vmatpush.msrb.mxu1 %v461_v51  ;;  %v238_v48 = vld [vmem:[#allocation2 + $0x2b8] sm:$0xff]  ;;  %v239_v50 = vld [vmem:[#allocation2 + $0x2c0] sm:$0xff] }
  0xe6   :  { %1116 = vmatpush.msrb.mxu2 %v222_v52  ;;  %1136 = vmatpush.msrb.mxu3 %v462_v53  ;;  %v478_v49 = vld [vmem:[#allocation2 + $0xa38] sm:$0xff]  ;;  %v479_v51 = vld [vmem:[#allocation2 + $0xa40] sm:$0xff] }
  0xe7   :  { %1077 = vmatpush.msrb.mxu0 %v206_v54  ;;  %1097 = vmatpush.msrb.mxu1 %v446_v55  ;;  %v223_v52 = vld [vmem:[#allocation2 + $0x240] sm:$0xff]  ;;  %v224_v54 = vld [vmem:[#allocation2 + $0x248] sm:$0xff] }
  0xe8   :  { %1117 = vmatpush.msrb.mxu2 %v207_v56  ;;  %1137 = vmatpush.msrb.mxu3 %v447_v57  ;;  %v463_v53 = vld [vmem:[#allocation2 + $0x9c0] sm:$0xff]  ;;  %v464_v55 = vld [vmem:[#allocation2 + $0x9c8] sm:$0xff] }
  0xe9   :  { %1078 = vmatpush.msrb.mxu0 %v191_v58  ;;  %1098 = vmatpush.msrb.mxu1 %v431_v59  ;;  %v208_v56 = vld [vmem:[#allocation2 + $0x1c8] sm:$0xff]  ;;  %v209_v58 = vld [vmem:[#allocation2 + $0x1d0] sm:$0xff] }
  0xea   :  { %1118 = vmatpush.msrb.mxu2 %v192_v60  ;;  %1138 = vmatpush.msrb.mxu3 %v432_v61  ;;  %v448_v57 = vld [vmem:[#allocation2 + $0x948] sm:$0xff]  ;;  %v449_v59 = vld [vmem:[#allocation2 + $0x950] sm:$0xff]  ;;  %v2991_v60 = vld [vmem:[#allocation4] sm:$0xff] }
  0xeb   :  { %1079 = vmatpush.msrb.mxu0 %v176_v62  ;;  %1099 = vmatpush.msrb.mxu1 %v416_v63  ;;  %v193_v61 = vld [vmem:[#allocation2 + $0x150] sm:$0xff]  ;;  %v194_v63 = vld [vmem:[#allocation2 + $0x158] sm:$0xff] }
  0xec   :  { %1119 = vmatpush.msrb.mxu2 %v177_v2  ;;  %1139 = vmatpush.msrb.mxu3 %v417_v3  ;;  %v433_v62 = vld [vmem:[#allocation2 + $0x8d0] sm:$0xff]  ;;  %v434_v2 = vld [vmem:[#allocation2 + $0x8d8] sm:$0xff] }
  0xed   :  { %1080 = vmatpush.msrb.mxu0 %v161_v4  ;;  %1100 = vmatpush.msrb.mxu1 %v401_v5  ;;  %v178_v3 = vld [vmem:[#allocation2 + $0xd8] sm:$0xff]  ;;  %v635_v5 = vperm.slane %v2991_v60, 0 }
  0xee   :  { %1120 = vmatpush.msrb.mxu2 %v162_v6  ;;  %1140 = vmatpush.msrb.mxu3 %v402_v7  ;;  %v418_v4 = vld [vmem:[#allocation2 + $0x858] sm:$0xff]  ;;  %v179_v6 = vld [vmem:[#allocation2 + $0xe0] sm:$0xff] }
  0xef   :  { %1145 = vmatpush.msra.mxu0 %v388_v8  ;;  %1165 = vmatpush.msra.mxu1 %v628_v9  ;;  %v419_v7 = vld [vmem:[#allocation2 + $0x860] sm:$0xff]  ;;  %v682_v8 = vpop.f32.mrf.mxu0  ;;  %v636_v9 = vperm.slane %v2991_v60, 1 }
  0xf0   :  { %1185 = vmatpush.msra.mxu2 %v389_v10  ;;  %1205 = vmatpush.msra.mxu3 %v629_v11  ;;  %v163_v10 = vld [vmem:[#allocation2 + $0x60] sm:$0xff] }
  0xf1   :  { %1121 = vmatmul.f32.vlgmr.msrb.gmra.mxu2 %v2980_v17  ;;  %1146 = vmatpush.msra.mxu0 %v373_v12  ;;  %v403_v11 = vld [vmem:[#allocation2 + $0x7e0] sm:$0xff]  ;;  %v722_v12 = vpop.f32.mrf.mxu2 }
  0xf2   :  { %1166 = vmatpush.msra.mxu1 %v613_v13  ;;  %1186 = vmatpush.msra.mxu2 %v374_v14  ;;  %v164_v13 = vld [vmem:[#allocation2 + $0x68] sm:$0xff] }
  0xf3   :  { %1206 = vmatpush.msra.mxu3 %v614_v15  ;;  %1147 = vmatpush.msra.mxu0 %v358_v16  ;;  %v404_v14 = vld [vmem:[#allocation2 + $0x7e8] sm:$0xff]  ;;  %v683_v15 = vadd.f32 %v682_v8, %v635_v5  ;;  %v390_v16 = vld [vmem:[#allocation2 + $0x778] sm:$0xff]  ;;  %v1382_v8 = vld [vmem:[#allocation6 + $0x150] sm:$0xff] }
  0xf4   :  { %1141 = vmatmul.f32.vlgmr.msrb.gmra.mxu3 %v2986_v22  ;;  %1167 = vmatpush.msra.mxu1 %v598_v18  ;;  %v630_v18 = vld [vmem:[#allocation2 + $0xef8] sm:$0xff]  ;;  %v480_v5 = vld [vmem:[#allocation2 + $0xa48] sm:$0xff] }
  0xf5   :  { %1187 = vmatpush.msra.mxu2 %v359_v19  ;;  %1207 = vmatpush.msra.mxu3 %v599_v20  ;;  %v702_v19 = vpop.f32.mrf.mxu1  ;;  %v723_v20 = vadd.f32 %v722_v12, %v636_v9  ;;  %v465_v12 = vld [vmem:[#allocation2 + $0x9d0] sm:$0xff] }
  0xf6   :  { %1081 = vmatmul.f32.vlgmr.msrb.gmra.mxu0 %v2980_v17  ;;  %1168 = vmatpush.msra.mxu1 %v583_v21  ;;  %v1370_v21 = vld [vmem:[#allocation6 + $0xf0] sm:$0xff] }
  0xf7   :  { %1148 = vmatpush.msra.mxu0 %v343_v23  ;;  %1188 = vmatpush.msra.mxu2 %v344_v24  ;;  %v1402_v23 = vld [vmem:[#allocation6 + $0x1f0] sm:$0xff]  ;;  %v742_v24 = vpop.f32.mrf.mxu3 }
  0xf8   :  { %1208 = vmatpush.msra.mxu3 %v584_v25  ;;  %1101 = vmatmul.f32.vlgmr.msrb.gmra.mxu1 %v2986_v22  ;;  %v375_v25 = vld [vmem:[#allocation2 + $0x700] sm:$0xff] }
  0xf9   :  { %1149 = vmatpush.msra.mxu0 %v328_v26  ;;  %1169 = vmatpush.msra.mxu1 %v568_v27  ;;  %v615_v26 = vld [vmem:[#allocation2 + $0xe80] sm:$0xff]  ;;  %v703_v27 = vadd.f32 %v702_v19, %v683_v15  ;;  %v1380_v15 = vld [vmem:[#allocation6 + $0x140] sm:$0xff]  ;;  %v450_v19 = vld [vmem:[#allocation2 + $0x958] sm:$0xff] }
  0xfa   :  { %1189 = vmatpush.msra.mxu2 %v329_v28  ;;  %1209 = vmatpush.msra.mxu3 %v569_v29  ;;  %v1368_v28 = vld [vmem:[#allocation6 + $0xe0] sm:$0xff] }
  0xfb   :  { %1150 = vmatpush.msra.mxu0 %v313_v30  ;;  %1170 = vmatpush.msra.mxu1 %v553_v31  ;;  %v1400_v29 = vld [vmem:[#allocation6 + $0x1e0] sm:$0xff]  ;;  %v743_v30 = vadd.f32 %v742_v24, %v723_v20  ;;  %v360_v31 = vld [vmem:[#allocation2 + $0x688] sm:$0xff] }
  0xfc   :  { %1190 = vmatpush.msra.mxu2 %v314_v32  ;;  %1210 = vmatpush.msra.mxu3 %v554_v0  ;;  %v600_v32 = vld [vmem:[#allocation2 + $0xe08] sm:$0xff]  ;;  %v1366_v0 = vld [vmem:[#allocation6 + $0xd0] sm:$0xff] }
  0xfd   :  { %1151 = vmatpush.msra.mxu0 %v298_v33  ;;  %1171 = vmatpush.msra.mxu1 %v538_v34  ;;  %v1398_v33 = vld [vmem:[#allocation6 + $0x1d0] sm:$0xff]  ;;  %v345_v34 = vld [vmem:[#allocation2 + $0x610] sm:$0xff] }
  0xfe   :  { %1191 = vmatpush.msra.mxu2 %v299_v35  ;;  %1211 = vmatpush.msra.mxu3 %v539_v36  ;;  %v585_v35 = vld [vmem:[#allocation2 + $0xd90] sm:$0xff]  ;;  %v1265_v36 = vsub.f32 0.0, %v703_v27  ;;  %v637_v27 = vperm.slane %v2991_v60, 2 }
  0xff   :  { %1152 = vmatpush.msra.mxu0 %v283_v1  ;;  %1172 = vmatpush.msra.mxu1 %v523_v37  ;;  %v1364_v1 = vld [vmem:[#allocation6 + $0xc0] sm:$0xff] }
 0x100   :  { %1192 = vmatpush.msra.mxu2 %v284_v38  ;;  %1212 = vmatpush.msra.mxu3 %v524_v39  ;;  %v1396_v37 = vld [vmem:[#allocation6 + $0x1c0] sm:$0xff]  ;;  %v1266_v38 = vsub.f32 0.0, %v743_v30  ;;  %v330_v39 = vld [vmem:[#allocation2 + $0x598] sm:$0xff] }
 0x101   :  { %1153 = vmatpush.msra.mxu0 %v268_v40  ;;  %1173 = vmatpush.msra.mxu1 %v508_v41  ;;  %v570_v40 = vld [vmem:[#allocation2 + $0xd18] sm:$0xff]  ;;  %v1362_v41 = vld [vmem:[#allocation6 + $0xb0] sm:$0xff]  ;;  %v1376_v30 = vld [vmem:[#allocation6 + $0x120] sm:$0xff] }
 0x102   :  { %1193 = vmatpush.msra.mxu2 %v269_v42  ;;  %1213 = vmatpush.msra.mxu3 %v509_v43  ;;  %v1394_v42 = vld [vmem:[#allocation6 + $0x1b0] sm:$0xff] }
 0x103   :  { %1154 = vmatpush.msra.mxu0 %v253_v44  ;;  %1174 = vmatpush.msra.mxu1 %v493_v45  ;;  %v315_v43 = vld [vmem:[#allocation2 + $0x520] sm:$0xff]  ;;  %v1280_v45 = vmul.f32 1.442695, %v1265_v36  ;;  %v165_v36 = vld [vmem:[#allocation2 + $0x70] sm:$0xff] }
 0x104   :  { %1194 = vmatpush.msra.mxu2 %v254_v46  ;;  %1214 = vmatpush.msra.mxu3 %v494_v47  ;;  %v555_v44 = vld [vmem:[#allocation2 + $0xca0] sm:$0xff]  ;;  %v1360_v46 = vld [vmem:[#allocation6 + $0xa0] sm:$0xff]  ;;  %v782_v24 = vpop.f32.mrf.mxu1 }
 0x105   :  { %1155 = vmatpush.msra.mxu0 %v238_v48  ;;  %1175 = vmatpush.msra.mxu1 %v478_v49  ;;  %v1392_v47 = vld [vmem:[#allocation6 + $0x1a0] sm:$0xff]  ;;  %v1282_v48 = vmul.f32 1.442695, %v1266_v38  ;;  %v300_v49 = vld [vmem:[#allocation2 + $0x4a8] sm:$0xff]  ;;  %2583 = vpow2.f32 %v1280_v45  ;;  %v640_v38 = vperm.slane %v2991_v60, 5 }
 0x106   :  { %1195 = vmatpush.msra.mxu2 %v239_v50  ;;  %1215 = vmatpush.msra.mxu3 %v479_v51  ;;  %v540_v50 = vld [vmem:[#allocation2 + $0xc28] sm:$0xff]  ;;  %v1358_v51 = vld [vmem:[#allocation6 + $0x90] sm:$0xff] }
 0x107   :  { %1156 = vmatpush.msra.mxu0 %v223_v52  ;;  %1176 = vmatpush.msra.mxu1 %v463_v53  ;;  %v1390_v52 = vld [vmem:[#allocation6 + $0x190] sm:$0xff]  ;;  %v285_v53 = vld [vmem:[#allocation2 + $0x430] sm:$0xff]  ;;  %2585 = vpow2.f32 %v1282_v48 }
 0x108   :  { %1196 = vmatpush.msra.mxu2 %v224_v54  ;;  %1216 = vmatpush.msra.mxu3 %v464_v55  ;;  %v525_v54 = vld [vmem:[#allocation2 + $0xbb0] sm:$0xff]  ;;  %v1498_v48 = vld [vmem:[#allocation6 + $0x4f0] sm:$0xff] }
 0x109   :  { %1157 = vmatpush.msra.mxu0 %v208_v56  ;;  %1177 = vmatpush.msra.mxu1 %v448_v57  ;;  %v1356_v55 = vld [vmem:[#allocation6 + $0x80] sm:$0xff]  ;;  %v270_v57 = vld [vmem:[#allocation2 + $0x3b8] sm:$0xff] }
 0x10a   :  { %1197 = vmatpush.msra.mxu2 %v209_v58  ;;  %1217 = vmatpush.msra.mxu3 %v449_v59  ;;  %v1388_v56 = vld [vmem:[#allocation6 + $0x180] sm:$0xff]  ;;  %v510_v58 = vld [vmem:[#allocation2 + $0xb38] sm:$0xff]  ;;  %v1354_v59 = vld [vmem:[#allocation6 + $0x70] sm:$0xff] }
 0x10b   :  { %1158 = vmatpush.msra.mxu0 %v193_v61  ;;  %1178 = vmatpush.msra.mxu1 %v433_v62  ;;  %v1386_v61 = vld [vmem:[#allocation6 + $0x170] sm:$0xff] }
 0x10c   :  { %1198 = vmatpush.msra.mxu2 %v194_v63  ;;  %1218 = vmatpush.msra.mxu3 %v434_v2  ;;  %v255_v62 = vld [vmem:[#allocation2 + $0x340] sm:$0xff]  ;;  %v1352_v2 = vld [vmem:[#allocation6 + $0x60] sm:$0xff] }
 0x10d   :  { %1159 = vmatpush.msra.mxu0 %v178_v3  ;;  %1179 = vmatpush.msra.mxu1 %v418_v4  ;;  %v495_v63 = vld [vmem:[#allocation2 + $0xac0] sm:$0xff]  ;;  %v1384_v3 = vld [vmem:[#allocation6 + $0x160] sm:$0xff]  ;;  %v240_v4 = vld [vmem:[#allocation2 + $0x2c8] sm:$0xff] }
 0x10e   :  { %1199 = vmatpush.msra.mxu2 %v179_v6  ;;  %1219 = vmatpush.msra.mxu3 %v419_v7  ;;  %v2584_v6 = vpop.eup %2583  ;;  %v1350_v7 = vld [vmem:[#allocation6 + $0x50] sm:$0xff] }
 0x10f   :  { %1160 = vmatpush.msra.mxu0 %v163_v10  ;;  %1180 = vmatpush.msra.mxu1 %v403_v11  ;;  %v2586_v9 = vpop.eup %2585  ;;  %v762_v10 = vpop.f32.mrf.mxu0  ;;  %v225_v11 = vld [vmem:[#allocation2 + $0x250] sm:$0xff] }
 0x110   :  { %1200 = vmatpush.msra.mxu2 %v164_v13  ;;  %1220 = vmatpush.msra.mxu3 %v404_v14  ;;  %v802_v13 = vpop.f32.mrf.mxu2  ;;  %v1348_v14 = vld [vmem:[#allocation6 + $0x40] sm:$0xff]  ;;  %v1311_v20 = vadd.f32 1.0, %v2586_v9 }
 0x111   :  { %1161 = vmatmul.f32.vlgmr.msra.gmra.mxu0 %v2980_v17  ;;  %1201 = vmatmul.f32.vlgmr.msra.gmra.mxu2 %v2980_v17  ;;  %v1492_v9 = vld [vmem:[#allocation6 + $0x4c0] sm:$0xff] }
 0x112   :  { %1225 = vmatpush.msrb.mxu0 %v390_v16  ;;  %1245 = vmatpush.msrb.mxu1 %v630_v18  ;;  %v1310_v16 = vadd.f32 1.0, %v2584_v6  ;;  %v210_v18 = vld [vmem:[#allocation2 + $0x1d8] sm:$0xff]  ;;  %v1428_v6 = vld [vmem:[#allocation6 + $0x2c0] sm:$0xff] }
 0x113   :  { %1826 = vmatpush.msrb.mxu2 %v1370_v21  ;;  %1846 = vmatpush.msrb.mxu3 %v1402_v23  ;;  %v1346_v21 = vld [vmem:[#allocation6 + $0x30] sm:$0xff] }
 0x114   :  { %1181 = vmatmul.f32.vlgmr.msra.gmra.mxu1 %v2986_v22  ;;  %1221 = vmatmul.f32.vlgmr.msra.gmra.mxu3 %v2986_v22  ;;  %v1378_v23 = vld [vmem:[#allocation6 + $0x130] sm:$0xff]  ;;  %2587 = vrcp.f32 %v1310_v16 }
 0x115   :  { %1226 = vmatpush.msrb.mxu0 %v375_v25  ;;  %1246 = vmatpush.msrb.mxu1 %v615_v26  ;;  %v195_v25 = vld [vmem:[#allocation2 + $0x160] sm:$0xff]  ;;  %2589 = vrcp.f32 %v1311_v20 }
 0x116   :  { %1827 = vmatpush.msrb.mxu2 %v1368_v28  ;;  %1847 = vmatpush.msrb.mxu3 %v1400_v29  ;;  %v435_v26 = vld [vmem:[#allocation2 + $0x8e0] sm:$0xff]  ;;  %v822_v28 = vpop.f32.mrf.mxu3  ;;  %v1344_v29 = vld [vmem:[#allocation6 + $0x20] sm:$0xff] }
 0x117   :  { %1227 = vmatpush.msrb.mxu0 %v360_v31  ;;  %1247 = vmatpush.msrb.mxu1 %v600_v32  ;;  %v638_v31 = vperm.slane %v2991_v60, 3  ;;  %v180_v32 = vld [vmem:[#allocation2 + $0xe8] sm:$0xff] }
 0x118   :  { %1828 = vmatpush.msrb.mxu2 %v1366_v0  ;;  %1848 = vmatpush.msrb.mxu3 %v1398_v33  ;;  %v420_v0 = vld [vmem:[#allocation2 + $0x868] sm:$0xff]  ;;  %v1342_v33 = vld [vmem:[#allocation6 + $0x10] sm:$0xff] }
 0x119   :  { %1228 = vmatpush.msrb.mxu0 %v345_v34  ;;  %1248 = vmatpush.msrb.mxu1 %v585_v35  ;;  %v1374_v34 = vld [vmem:[#allocation6 + $0x110] sm:$0xff]  ;;  %v639_v35 = vperm.slane %v2991_v60, 4 }
 0x11a   :  { %1829 = vmatpush.msrb.mxu2 %v1364_v1  ;;  %1849 = vmatpush.msrb.mxu3 %v1396_v37  ;;  %v405_v1 = vld [vmem:[#allocation2 + $0x7f0] sm:$0xff] }
 0x11b   :  { %1229 = vmatpush.msrb.mxu0 %v330_v39  ;;  %1249 = vmatpush.msrb.mxu1 %v570_v40  ;;  %v763_v39 = vadd.f32 %v762_v10, %v637_v27  ;;  %v1340_v40 = vld [vmem:[#allocation6] sm:$0xff]  ;;  %v1486_v27 = vld [vmem:[#allocation6 + $0x490] sm:$0xff] }
 0x11c   :  { %1830 = vmatpush.msrb.mxu2 %v1362_v41  ;;  %1850 = vmatpush.msrb.mxu3 %v1394_v42  ;;  %v1372_v41 = vld [vmem:[#allocation6 + $0x100] sm:$0xff] }
 0x11d   :  { %1230 = vmatpush.msrb.mxu0 %v315_v43  ;;  %1250 = vmatpush.msrb.mxu1 %v555_v44  ;;  %v803_v43 = vadd.f32 %v802_v13, %v638_v31  ;;  %v1434_v44 = vld [vmem:[#allocation6 + $0x2f0] sm:$0xff]  ;;  %v1524_v10 = vld [vmem:[#allocation6 + $0x5c0] sm:$0xff] }
 0x11e   :  { %1831 = vmatpush.msrb.mxu2 %v1360_v46  ;;  %1851 = vmatpush.msrb.mxu3 %v1392_v47  ;;  %v3003_v46 = vpop.eup %2587  ;;  %v1466_v47 = vld [vmem:[#allocation6 + $0x3f0] sm:$0xff]  ;;  %v1484_v31 = vld [vmem:[#allocation6 + $0x480] sm:$0xff] }
 0x11f   :  { %1231 = vmatpush.msrb.mxu0 %v300_v49  ;;  %1251 = vmatpush.msrb.mxu1 %v540_v50 }
 0x120   :  { %1832 = vmatpush.msrb.mxu2 %v1358_v51  ;;  %1852 = vmatpush.msrb.mxu3 %v1390_v52  ;;  %v3005_v51 = vpop.eup %2589  ;;  %v783_v52 = vadd.f32 %v782_v24, %v763_v39  ;;  %v1512_v39 = vld [vmem:[#allocation6 + $0x560] sm:$0xff] }
 0x121   :  { %1232 = vmatpush.msrb.mxu0 %v285_v53  ;;  %1252 = vmatpush.msrb.mxu1 %v525_v54  ;;  %v1530_v53 = vld [vmem:[#allocation6 + $0x5f0] sm:$0xff] }
 0x122   :  { %1833 = vmatpush.msrb.mxu2 %v1356_v55  ;;  %1853 = vmatpush.msrb.mxu3 %v1388_v56  ;;  %v823_v55 = vadd.f32 %v822_v28, %v803_v43  ;;  %v1432_v56 = vld [vmem:[#allocation6 + $0x2e0] sm:$0xff]  ;;  %v1518_v28 = vld [vmem:[#allocation6 + $0x590] sm:$0xff] }
 0x123   :  { %1233 = vmatpush.msrb.mxu0 %v270_v57  ;;  %1253 = vmatpush.msrb.mxu1 %v510_v58  ;;  %v1464_v57 = vld [vmem:[#allocation6 + $0x3e0] sm:$0xff] }
 0x124   :  { %1834 = vmatpush.msrb.mxu2 %v1354_v59  ;;  %1854 = vmatpush.msrb.mxu3 %v1386_v61  ;;  %v1496_v58 = vld [vmem:[#allocation6 + $0x4e0] sm:$0xff] }
 0x125   :  { %1234 = vmatpush.msrb.mxu0 %v255_v62  ;;  %1254 = vmatpush.msrb.mxu1 %v495_v63  ;;  %v1528_v59 = vld [vmem:[#allocation6 + $0x5e0] sm:$0xff]  ;;  %v1430_v62 = vld [vmem:[#allocation6 + $0x2d0] sm:$0xff] }
 0x126   :  { %1835 = vmatpush.msrb.mxu2 %v1352_v2  ;;  %1855 = vmatpush.msrb.mxu3 %v1384_v3  ;;  %v842_v37 = vpop.f32.mrf.mxu0  ;;  %v862_v49 = vpop.f32.mrf.mxu1  ;;  %v1267_v2 = vsub.f32 0.0, %v783_v52  ;;  %v1494_v3 = vld [vmem:[#allocation6 + $0x4d0] sm:$0xff]  ;;  %v1444_v52 = vld [vmem:[#allocation6 + $0x340] sm:$0xff] }
 0x127   :  { %1235 = vmatpush.msrb.mxu0 %v240_v4  ;;  %1255 = vmatpush.msrb.mxu1 %v480_v5  ;;  %v843_v45 = vadd.f32 %v842_v37, %v639_v35  ;;  %v1526_v4 = vld [vmem:[#allocation6 + $0x5d0] sm:$0xff]  ;;  %v1268_v5 = vsub.f32 0.0, %v823_v55  ;;  %v1476_v55 = vld [vmem:[#allocation6 + $0x440] sm:$0xff] }
 0x128   :  { %1836 = vmatpush.msrb.mxu2 %v1350_v7  ;;  %1856 = vmatpush.msrb.mxu3 %v1382_v8  ;;  %v1460_v7 = vld [vmem:[#allocation6 + $0x3c0] sm:$0xff]  ;;  %v1284_v13 = vmul.f32 1.442695, %v1267_v2  ;;  %v1514_v35 = vld [vmem:[#allocation6 + $0x570] sm:$0xff]  ;;  %v3013_v2 = vld [vmem:[#allocation4 + $0x8] sm:$0xff] }
 0x129   :  { %1236 = vmatpush.msrb.mxu0 %v225_v11  ;;  %1256 = vmatpush.msrb.mxu1 %v465_v12  ;;  %v863_v61 = vadd.f32 %v862_v49, %v843_v45  ;;  %v1458_v11 = vld [vmem:[#allocation6 + $0x3b0] sm:$0xff]  ;;  %v1286_v16 = vmul.f32 1.442695, %v1268_v5 }
 0x12a   :  { %1837 = vmatpush.msrb.mxu2 %v1348_v14  ;;  %1857 = vmatpush.msrb.mxu3 %v1380_v15  ;;  %v1490_v14 = vld [vmem:[#allocation6 + $0x4b0] sm:$0xff]  ;;  %2591 = vpow2.f32 %v1284_v13  ;;  %v642_v13 = vperm.slane %v2991_v60, 7 }
 0x12b   :  { %1237 = vmatpush.msrb.mxu0 %v210_v18  ;;  %1257 = vmatpush.msrb.mxu1 %v450_v19  ;;  %v1269_v8 = vsub.f32 0.0, %v863_v61  ;;  %v1522_v15 = vld [vmem:[#allocation6 + $0x5b0] sm:$0xff]  ;;  %v1424_v18 = vld [vmem:[#allocation6 + $0x2a0] sm:$0xff]  ;;  %2593 = vpow2.f32 %v1286_v16 }
 0x12c   :  { %1838 = vmatpush.msrb.mxu2 %v1346_v21  ;;  %1858 = vmatpush.msrb.mxu3 %v1378_v23  ;;  %v1456_v19 = vld [vmem:[#allocation6 + $0x3a0] sm:$0xff]  ;;  %v1510_v45 = vld [vmem:[#allocation6 + $0x550] sm:$0xff] }
 0x12d   :  { %1238 = vmatpush.msrb.mxu0 %v195_v25  ;;  %1258 = vmatpush.msrb.mxu1 %v435_v26  ;;  %v882_v42 = vpop.f32.mrf.mxu2  ;;  %v902_v54 = vpop.f32.mrf.mxu3  ;;  %v1288_v20 = vmul.f32 1.442695, %v1269_v8  ;;  %v1488_v21 = vld [vmem:[#allocation6 + $0x4a0] sm:$0xff]  ;;  %v1422_v25 = vld [vmem:[#allocation6 + $0x290] sm:$0xff] }
 0x12e   :  { %1839 = vmatpush.msrb.mxu2 %v1344_v29  ;;  %1859 = vmatpush.msrb.mxu3 %v1376_v30  ;;  %v883_v50 = vadd.f32 %v882_v42, %v640_v38  ;;  %v1520_v23 = vld [vmem:[#allocation6 + $0x5a0] sm:$0xff]  ;;  %v1454_v26 = vld [vmem:[#allocation6 + $0x390] sm:$0xff] }
 0x12f   :  { %1239 = vmatpush.msrb.mxu0 %v180_v32  ;;  %1259 = vmatpush.msrb.mxu1 %v420_v0  ;;  %v1420_v29 = vld [vmem:[#allocation6 + $0x280] sm:$0xff]  ;;  %2595 = vpow2.f32 %v1288_v20  ;;  %v1418_v0 = vld [vmem:[#allocation6 + $0x270] sm:$0xff] }
 0x130   :  { %1840 = vmatpush.msrb.mxu2 %v1342_v33  ;;  %1860 = vmatpush.msrb.mxu3 %v1374_v34  ;;  %v903_v63 = vadd.f32 %v902_v54, %v883_v50  ;;  %v1452_v30 = vld [vmem:[#allocation6 + $0x380] sm:$0xff]  ;;  %v1450_v33 = vld [vmem:[#allocation6 + $0x370] sm:$0xff]  ;;  %v2592_v37 = vpop.eup %2591 }
 0x131   :  { %1240 = vmatpush.msrb.mxu0 %v165_v36  ;;  %1260 = vmatpush.msrb.mxu1 %v405_v1  ;;  %v1516_v32 = vld [vmem:[#allocation6 + $0x580] sm:$0xff]  ;;  %v1482_v34 = vld [vmem:[#allocation6 + $0x470] sm:$0xff]  ;;  %v1312_v49 = vadd.f32 1.0, %v2592_v37 }
 0x132   :  { %1841 = vmatpush.msrb.mxu2 %v1340_v40  ;;  %1861 = vmatpush.msrb.mxu3 %v1372_v41  ;;  %v1270_v12 = vsub.f32 0.0, %v903_v63  ;;  %v1416_v36 = vld [vmem:[#allocation6 + $0x260] sm:$0xff]  ;;  %v2594_v40 = vpop.eup %2593  ;;  %v1414_v41 = vld [vmem:[#allocation6 + $0x250] sm:$0xff] }
 0x133   :  { %1241 = vmatmul.f32.vlgmr.msrb.gmra.mxu0 %v2980_v17  ;;  %1842 = vmatmul.f32.vlgmr.msrb.gmra.mxu2 %v3003_v46  ;;  %v1462_v17 = vld [vmem:[#allocation6 + $0x3d0] sm:$0xff]  ;;  %v1448_v1 = vld [vmem:[#allocation6 + $0x360] sm:$0xff]  ;;  %v1313_v54 = vadd.f32 1.0, %v2594_v40 }
 0x134   :  { %1862 = vmatmul.f32.vlgmr.msrb.gmra.mxu3 %v3005_v51  ;;  %1866 = vmatpush.msra.mxu0 %v1434_v44  ;;  %v1290_v24 = vmul.f32 1.442695, %v1270_v12  ;;  %v1480_v38 = vld [vmem:[#allocation6 + $0x460] sm:$0xff]  ;;  %v1446_v42 = vld [vmem:[#allocation6 + $0x350] sm:$0xff] }
 0x135   :  { %1886 = vmatpush.msra.mxu1 %v1466_v47  ;;  %1906 = vmatpush.msra.mxu2 %v1498_v48  ;;  %v2596_v43 = vpop.eup %2595  ;;  %v1478_v44 = vld [vmem:[#allocation6 + $0x450] sm:$0xff]  ;;  %v1412_v50 = vld [vmem:[#allocation6 + $0x240] sm:$0xff] }
 0x136   :  { %1926 = vmatpush.msra.mxu3 %v1530_v53  ;;  %1261 = vmatmul.f32.vlgmr.msrb.gmra.mxu1 %v2986_v22  ;;  %v1426_v22 = vld [vmem:[#allocation6 + $0x2b0] sm:$0xff]  ;;  %2597 = vpow2.f32 %v1290_v24  ;;  %v1468_v16 = vld [vmem:[#allocation6 + $0x400] sm:$0xff] }
 0x137   :  { %1867 = vmatpush.msra.mxu0 %v1432_v56  ;;  %1887 = vmatpush.msra.mxu1 %v1464_v57  ;;  %v1508_v56 = vld [vmem:[#allocation6 + $0x540] sm:$0xff]  ;;  %v1442_v61 = vld [vmem:[#allocation6 + $0x330] sm:$0xff]  ;;  %2599 = vrcp.f32 %v1312_v49 }
 0x138   :  { %1907 = vmatpush.msra.mxu2 %v1496_v58  ;;  %1927 = vmatpush.msra.mxu3 %v1528_v59  ;;  %v1314_v58 = vadd.f32 1.0, %v2596_v43  ;;  %v1410_v59 = vld [vmem:[#allocation6 + $0x230] sm:$0xff]  ;;  %2601 = vrcp.f32 %v1313_v54 }
 0x139   :  { %1868 = vmatpush.msra.mxu0 %v1430_v62  ;;  %1888 = vmatpush.msra.mxu1 %v1462_v17  ;;  %v1474_v17 = vld [vmem:[#allocation6 + $0x430] sm:$0xff] }
 0x13a   :  { %1908 = vmatpush.msra.mxu2 %v1494_v3  ;;  %1928 = vmatpush.msra.mxu3 %v1526_v4  ;;  %v1506_v63 = vld [vmem:[#allocation6 + $0x530] sm:$0xff]  ;;  %v1408_v3 = vld [vmem:[#allocation6 + $0x220] sm:$0xff]  ;;  %2603 = vrcp.f32 %v1314_v58 }
 0x13b   :  { %1869 = vmatpush.msra.mxu0 %v1428_v6  ;;  %1889 = vmatpush.msra.mxu1 %v1460_v7  ;;  %v1440_v4 = vld [vmem:[#allocation6 + $0x320] sm:$0xff]  ;;  %v1406_v8 = vld [vmem:[#allocation6 + $0x210] sm:$0xff] }
 0x13c   :  { %1909 = vmatpush.msra.mxu2 %v1492_v9  ;;  %1929 = vmatpush.msra.mxu3 %v1524_v10  ;;  %v2598_v48 = vpop.eup %2597  ;;  %v1472_v6 = vld [vmem:[#allocation6 + $0x420] sm:$0xff]  ;;  %v1438_v9 = vld [vmem:[#allocation6 + $0x310] sm:$0xff]  ;;  %v641_v10 = vperm.slane %v2991_v60, 6 }
 0x13d   :  { %1870 = vmatpush.msra.mxu0 %v1426_v22  ;;  %1890 = vmatpush.msra.mxu1 %v1458_v11  ;;  %v1315_v62 = vadd.f32 1.0, %v2598_v48  ;;  %v1504_v7 = vld [vmem:[#allocation6 + $0x520] sm:$0xff]  ;;  %v643_v22 = vperm.slane %v3013_v2, 0  ;;  %v1470_v11 = vld [vmem:[#allocation6 + $0x410] sm:$0xff]  ;;  %v3019_v20 = vpop.eup %2599 }
 0x13e   :  { %1910 = vmatpush.msra.mxu2 %v1490_v14  ;;  %1930 = vmatpush.msra.mxu3 %v1522_v15  ;;  %v1502_v12 = vld [vmem:[#allocation6 + $0x510] sm:$0xff]  ;;  %v1404_v14 = vld [vmem:[#allocation6 + $0x200] sm:$0xff] }
 0x13f   :  { %1871 = vmatpush.msra.mxu0 %v1424_v18  ;;  %1891 = vmatpush.msra.mxu1 %v1456_v19  ;;  %2605 = vrcp.f32 %v1315_v62  ;;  %v1436_v15 = vld [vmem:[#allocation6 + $0x300] sm:$0xff]  ;;  %v644_v19 = vperm.slane %v3013_v2, 1  ;;  %v1558_v40 = vld [vmem:[#allocation6 + $0x6d0] sm:$0xff] }
 0x140   :  { %1911 = vmatpush.msra.mxu2 %v1488_v21  ;;  %1931 = vmatpush.msra.mxu3 %v1520_v23  ;;  %v1622_v43 = vld [vmem:[#allocation6 + $0x8d0] sm:$0xff] }
 0x141   :  { %1872 = vmatpush.msra.mxu0 %v1422_v25  ;;  %1892 = vmatpush.msra.mxu1 %v1454_v26  ;;  %v3021_v25 = vpop.eup %2601  ;;  %v1500_v26 = vld [vmem:[#allocation6 + $0x500] sm:$0xff]  ;;  %v1654_v49 = vld [vmem:[#allocation6 + $0x9d0] sm:$0xff] }
 0x142   :  { %1912 = vmatpush.msra.mxu2 %v1486_v27  ;;  %1932 = vmatpush.msra.mxu3 %v1518_v28  ;;  %v1562_v27 = vld [vmem:[#allocation6 + $0x6f0] sm:$0xff] }
 0x143   :  { %1873 = vmatpush.msra.mxu0 %v1420_v29  ;;  %1893 = vmatpush.msra.mxu1 %v1452_v30  ;;  %v3023_v29 = vpop.eup %2603  ;;  %v1594_v30 = vld [vmem:[#allocation6 + $0x7f0] sm:$0xff] }
 0x144   :  { %1913 = vmatpush.msra.mxu2 %v1484_v31  ;;  %1933 = vmatpush.msra.mxu3 %v1516_v32  ;;  %v1626_v31 = vld [vmem:[#allocation6 + $0x8f0] sm:$0xff] }
 0x145   :  { %1874 = vmatpush.msra.mxu0 %v1418_v0  ;;  %1894 = vmatpush.msra.mxu1 %v1450_v33  ;;  %v922_v47 = vpop.f32.mrf.mxu0  ;;  %v3026_v32 = vpop.eup %2605  ;;  %v1560_v0 = vld [vmem:[#allocation6 + $0x6e0] sm:$0xff]  ;;  %v1554_v54 = vld [vmem:[#allocation6 + $0x6b0] sm:$0xff] }
 0x146   :  { %1914 = vmatpush.msra.mxu2 %v1482_v34  ;;  %1934 = vmatpush.msra.mxu3 %v1514_v35  ;;  %v962_v53 = vpop.f32.mrf.mxu2  ;;  %v923_v21 = vadd.f32 %v922_v47, %v641_v10  ;;  %v1618_v58 = vld [vmem:[#allocation6 + $0x8b0] sm:$0xff]  ;;  %v1548_v10 = vld [vmem:[#allocation6 + $0x680] sm:$0xff] }
 0x147   :  { %1875 = vmatpush.msra.mxu0 %v1416_v36  ;;  %1895 = vmatpush.msra.mxu1 %v1448_v1  ;;  %v3011_v57 = vpop.f32.mrf.mxu1  ;;  %v963_v60 = vadd.f32 %v962_v53, %v642_v13  ;;  %v1658_v36 = vld [vmem:[#allocation6 + $0x9f0] sm:$0xff]  ;;  %v1592_v1 = vld [vmem:[#allocation6 + $0x7e0] sm:$0xff] }
 0x148   :  { %1915 = vmatpush.msra.mxu2 %v1480_v38  ;;  %1935 = vmatpush.msra.mxu3 %v1512_v39  ;;  %v943_v35 = vadd.f32 %v3011_v57, %v923_v21  ;;  %v1624_v39 = vld [vmem:[#allocation6 + $0x8e0] sm:$0xff]  ;;  %v1546_v13 = vld [vmem:[#allocation6 + $0x670] sm:$0xff] }
 0x149   :  { %1876 = vmatpush.msra.mxu0 %v1414_v41  ;;  %1896 = vmatpush.msra.mxu1 %v1446_v42  ;;  %v982_v5 = vpop.f32.mrf.mxu3  ;;  %v1656_v41 = vld [vmem:[#allocation6 + $0x9e0] sm:$0xff]  ;;  %v1590_v42 = vld [vmem:[#allocation6 + $0x7d0] sm:$0xff] }
 0x14a   :  { %1916 = vmatpush.msra.mxu2 %v1478_v44  ;;  %1936 = vmatpush.msra.mxu3 %v1510_v45  ;;  %v983_v38 = vadd.f32 %v982_v5, %v963_v60  ;;  %v1556_v44 = vld [vmem:[#allocation6 + $0x6c0] sm:$0xff]  ;;  %v1271_v48 = vsub.f32 0.0, %v943_v35  ;;  %v1550_v5 = vld [vmem:[#allocation6 + $0x690] sm:$0xff] }
 0x14b   :  { %1877 = vmatpush.msra.mxu0 %v1412_v50  ;;  %1897 = vmatpush.msra.mxu1 %v1444_v52  ;;  %v1588_v50 = vld [vmem:[#allocation6 + $0x7c0] sm:$0xff]  ;;  %v1542_v60 = vld [vmem:[#allocation6 + $0x650] sm:$0xff] }
 0x14c   :  { %1917 = vmatpush.msra.mxu2 %v1476_v55  ;;  %1937 = vmatpush.msra.mxu3 %v1508_v56  ;;  %v1272_v52 = vsub.f32 0.0, %v983_v38  ;;  %v1620_v53 = vld [vmem:[#allocation6 + $0x8c0] sm:$0xff]  ;;  %v1586_v56 = vld [vmem:[#allocation6 + $0x7b0] sm:$0xff]  ;;  %v1292_v62 = vmul.f32 1.442695, %v1271_v48 }
 0x14d   :  { %1878 = vmatpush.msra.mxu0 %v1410_v59  ;;  %1898 = vmatpush.msra.mxu1 %v1442_v61  ;;  %v1652_v55 = vld [vmem:[#allocation6 + $0x9c0] sm:$0xff]  ;;  %v1538_v38 = vld [vmem:[#allocation6 + $0x630] sm:$0xff] }
 0x14e   :  { %1918 = vmatpush.msra.mxu2 %v1474_v17  ;;  %1938 = vmatpush.msra.mxu3 %v1506_v63  ;;  %v1552_v61 = vld [vmem:[#allocation6 + $0x6a0] sm:$0xff]  ;;  %v1650_v17 = vld [vmem:[#allocation6 + $0x9b0] sm:$0xff] }
 0x14f   :  { %1879 = vmatpush.msra.mxu0 %v1408_v3  ;;  %1899 = vmatpush.msra.mxu1 %v1440_v4  ;;  %v1584_v63 = vld [vmem:[#allocation6 + $0x7a0] sm:$0xff]  ;;  %v1294_v3 = vmul.f32 1.442695, %v1272_v52  ;;  %v1566_v52 = vld [vmem:[#allocation6 + $0x710] sm:$0xff] }
 0x150   :  { %1919 = vmatpush.msra.mxu2 %v1472_v6  ;;  %1939 = vmatpush.msra.mxu3 %v1504_v7  ;;  %v1616_v4 = vld [vmem:[#allocation6 + $0x8a0] sm:$0xff]  ;;  %v1582_v7 = vld [vmem:[#allocation6 + $0x790] sm:$0xff] }
 0x151   :  { %1880 = vmatpush.msra.mxu0 %v1406_v8  ;;  %1900 = vmatpush.msra.mxu1 %v1438_v9  ;;  %v1002_v18 = vpop.f32.mrf.mxu0  ;;  %v1648_v6 = vld [vmem:[#allocation6 + $0x9a0] sm:$0xff]  ;;  %v1614_v9 = vld [vmem:[#allocation6 + $0x890] sm:$0xff] }
 0x152   :  { %1920 = vmatpush.msra.mxu2 %v1470_v11  ;;  %1940 = vmatpush.msra.mxu3 %v1502_v12  ;;  %v1003_v23 = vadd.f32 %v1002_v18, %v643_v22  ;;  %v1042_v24 = vpop.f32.mrf.mxu2  ;;  %v1646_v22 = vld [vmem:[#allocation6 + $0x990] sm:$0xff]  ;;  %v1580_v11 = vld [vmem:[#allocation6 + $0x780] sm:$0xff] }
 0x153   :  { %1881 = vmatpush.msra.mxu0 %v1404_v14  ;;  %1901 = vmatpush.msra.mxu1 %v1436_v15  ;;  %v1022_v28 = vpop.f32.mrf.mxu1  ;;  %v1043_v34 = vadd.f32 %v1042_v24, %v644_v19  ;;  %v1612_v12 = vld [vmem:[#allocation6 + $0x880] sm:$0xff]  ;;  %v1578_v15 = vld [vmem:[#allocation6 + $0x770] sm:$0xff] }
 0x154   :  { %1921 = vmatpush.msra.mxu2 %v1468_v16  ;;  %1882 = vmatmul.f32.vlgmr.msra.gmra.mxu0 %v3019_v20  ;;  %v1023_v33 = vadd.f32 %v1022_v28, %v1003_v23  ;;  %v1644_v14 = vld [vmem:[#allocation6 + $0x980] sm:$0xff]  ;;  %v1610_v16 = vld [vmem:[#allocation6 + $0x870] sm:$0xff] }
 0x155   :  { %1902 = vmatmul.f32.vlgmr.msra.gmra.mxu1 %v3021_v25  ;;  %1922 = vmatmul.f32.vlgmr.msra.gmra.mxu2 %v3023_v29  ;;  %v1062_v37 = vpop.f32.mrf.mxu3  ;;  %v1544_v18 = vld [vmem:[#allocation6 + $0x660] sm:$0xff]  ;;  %v1642_v19 = vld [vmem:[#allocation6 + $0x970] sm:$0xff] }
 0x156   :  { %1941 = vmatpush.msra.mxu3 %v1500_v26  ;;  %1946 = vmatpush.msrb.mxu0 %v1562_v27  ;;  %v1273_v45 = vsub.f32 0.0, %v1023_v33  ;;  %v1063_v47 = vadd.f32 %v1062_v37, %v1043_v34  ;;  %v1576_v21 = vld [vmem:[#allocation6 + $0x760] sm:$0xff]  ;;  %v1574_v28 = vld [vmem:[#allocation6 + $0x750] sm:$0xff] }
 0x157   :  { %1966 = vmatpush.msrb.mxu1 %v1594_v30  ;;  %1986 = vmatpush.msrb.mxu2 %v1626_v31  ;;  %v1608_v24 = vld [vmem:[#allocation6 + $0x860] sm:$0xff]  ;;  %v1606_v31 = vld [vmem:[#allocation6 + $0x850] sm:$0xff] }
 0x158   :  { %1942 = vmatmul.f32.vlgmr.msra.gmra.mxu3 %v3026_v32  ;;  %1947 = vmatpush.msrb.mxu0 %v1560_v0  ;;  %v1296_v57 = vmul.f32 1.442695, %v1273_v45  ;;  %v1274_v59 = vsub.f32 0.0, %v1063_v47  ;;  %v1640_v27 = vld [vmem:[#allocation6 + $0x960] sm:$0xff]  ;;  %v1638_v34 = vld [vmem:[#allocation6 + $0x950] sm:$0xff] }
 0x159   :  { %2006 = vmatpush.msrb.mxu3 %v1658_v36  ;;  %1967 = vmatpush.msrb.mxu1 %v1592_v1  ;;  %v1540_v0 = vld [vmem:[#allocation6 + $0x640] sm:$0xff]  ;;  %v1634_v45 = vld [vmem:[#allocation6 + $0x930] sm:$0xff] }
 0x15a   :  { %1987 = vmatpush.msrb.mxu2 %v1624_v39  ;;  %1948 = vmatpush.msrb.mxu0 %v1558_v40  ;;  %2607 = vpow2.f32 %v1296_v57  ;;  %v1298_v8 = vmul.f32 1.442695, %v1274_v59  ;;  %v1572_v35 = vld [vmem:[#allocation6 + $0x740] sm:$0xff]  ;;  %v1630_v57 = vld [vmem:[#allocation6 + $0x910] sm:$0xff] }
 0x15b   :  { %2007 = vmatpush.msrb.mxu3 %v1656_v41  ;;  %1968 = vmatpush.msrb.mxu1 %v1590_v42  ;;  %2609 = vpow2.f32 %v1292_v62  ;;  %v1604_v37 = vld [vmem:[#allocation6 + $0x840] sm:$0xff]  ;;  %v1570_v41 = vld [vmem:[#allocation6 + $0x730] sm:$0xff] }
 0x15c   :  { %1988 = vmatpush.msrb.mxu2 %v1622_v43  ;;  %1949 = vmatpush.msrb.mxu0 %v1556_v44  ;;  %2611 = vpow2.f32 %v1294_v3  ;;  %v1636_v40 = vld [vmem:[#allocation6 + $0x940] sm:$0xff]  ;;  %v1602_v42 = vld [vmem:[#allocation6 + $0x830] sm:$0xff] }
 0x15d   :  { %2008 = vmatpush.msrb.mxu3 %v1654_v49  ;;  %1969 = vmatpush.msrb.mxu1 %v1588_v50  ;;  %2613 = vpow2.f32 %v1298_v8  ;;  %v1536_v43 = vld [vmem:[#allocation6 + $0x620] sm:$0xff]  ;;  %v1534_v49 = vld [vmem:[#allocation6 + $0x610] sm:$0xff] }
 0x15e   :  { %1989 = vmatpush.msrb.mxu2 %v1620_v53  ;;  %1950 = vmatpush.msrb.mxu0 %v1554_v54  ;;  %v1568_v47 = vld [vmem:[#allocation6 + $0x720] sm:$0xff]  ;;  %v645_v53 = vperm.slane %v3013_v2, 2  ;;  %v1598_v54 = vld [vmem:[#allocation6 + $0x810] sm:$0xff] }
 0x15f   :  { %2009 = vmatpush.msrb.mxu3 %v1652_v55  ;;  %1970 = vmatpush.msrb.mxu1 %v1586_v56  ;;  %v1600_v48 = vld [vmem:[#allocation6 + $0x820] sm:$0xff]  ;;  %v646_v56 = vperm.slane %v3013_v2, 3 }
 0x160   :  { %1990 = vmatpush.msrb.mxu2 %v1618_v58  ;;  %1951 = vmatpush.msrb.mxu0 %v1552_v61  ;;  %v2608_v23 = vpop.eup %2607  ;;  %v1632_v50 = vld [vmem:[#allocation6 + $0x920] sm:$0xff] }
 0x161   :  { %2010 = vmatpush.msrb.mxu3 %v1650_v17  ;;  %1971 = vmatpush.msrb.mxu1 %v1584_v63  ;;  %v2610_v26 = vpop.eup %2609  ;;  %v1318_v33 = vadd.f32 1.0, %v2608_v23  ;;  %v1532_v55 = vld [vmem:[#allocation6 + $0x600] sm:$0xff]  ;;  %v1718_v23 = vld [vmem:[#allocation6 + $0xbd0] sm:$0xff] }
 0x162   :  { %1991 = vmatpush.msrb.mxu2 %v1616_v4  ;;  %1952 = vmatpush.msrb.mxu0 %v1550_v5  ;;  %v2612_v30 = vpop.eup %2611  ;;  %v1316_v1 = vadd.f32 1.0, %v2610_v26  ;;  %v1564_v58 = vld [vmem:[#allocation6 + $0x700] sm:$0xff]  ;;  %v1690_v5 = vld [vmem:[#allocation6 + $0xaf0] sm:$0xff] }
 0x163   :  { %2011 = vmatpush.msrb.mxu3 %v1648_v6  ;;  %1972 = vmatpush.msrb.mxu1 %v1582_v7  ;;  %v2614_v36 = vpop.eup %2613  ;;  %v1317_v39 = vadd.f32 1.0, %v2612_v30  ;;  %2615 = vrcp.f32 %v1318_v33  ;;  %v1596_v59 = vld [vmem:[#allocation6 + $0x800] sm:$0xff]  ;;  %v1722_v6 = vld [vmem:[#allocation6 + $0xbf0] sm:$0xff] }
 0x164   :  { %1992 = vmatpush.msrb.mxu2 %v1614_v9  ;;  %1953 = vmatpush.msrb.mxu0 %v1548_v10  ;;  %v1319_v44 = vadd.f32 1.0, %v2614_v36  ;;  %2617 = vrcp.f32 %v1316_v1  ;;  %v1628_v17 = vld [vmem:[#allocation6 + $0x900] sm:$0xff]  ;;  %v1754_v10 = vld [vmem:[#allocation6 + $0xcf0] sm:$0xff] }
 0x165   :  { %2012 = vmatpush.msrb.mxu3 %v1646_v22  ;;  %1973 = vmatpush.msrb.mxu1 %v1580_v11  ;;  %2619 = vrcp.f32 %v1317_v39  ;;  %v1786_v11 = vld [vmem:[#allocation6 + $0xdf0] sm:$0xff]  ;;  %v1748_v30 = vld [vmem:[#allocation6 + $0xcc0] sm:$0xff] }
 0x166   :  { %1993 = vmatpush.msrb.mxu2 %v1612_v12  ;;  %1954 = vmatpush.msrb.mxu0 %v1546_v13  ;;  %2621 = vrcp.f32 %v1319_v44  ;;  %v1688_v12 = vld [vmem:[#allocation6 + $0xae0] sm:$0xff]  ;;  %v1782_v26 = vld [vmem:[#allocation6 + $0xdd0] sm:$0xff] }
 0x167   :  { %2013 = vmatpush.msrb.mxu3 %v1644_v14  ;;  %1974 = vmatpush.msrb.mxu1 %v1578_v15  ;;  %v1720_v15 = vld [vmem:[#allocation6 + $0xbe0] sm:$0xff]  ;;  %v1746_v36 = vld [vmem:[#allocation6 + $0xcb0] sm:$0xff] }
 0x168   :  { %1994 = vmatpush.msrb.mxu2 %v1610_v16  ;;  %1955 = vmatpush.msrb.mxu0 %v1544_v18  ;;  %v1752_v16 = vld [vmem:[#allocation6 + $0xce0] sm:$0xff]  ;;  %v1778_v1 = vld [vmem:[#allocation6 + $0xdb0] sm:$0xff] }
 0x169   :  { %2014 = vmatpush.msrb.mxu3 %v1642_v19  ;;  %1975 = vmatpush.msrb.mxu1 %v1576_v21  ;;  %v3034_v62 = vpop.eup %2615  ;;  %v1784_v18 = vld [vmem:[#allocation6 + $0xde0] sm:$0xff]  ;;  %v1686_v21 = vld [vmem:[#allocation6 + $0xad0] sm:$0xff] }
 0x16a   :  { %1995 = vmatpush.msrb.mxu2 %v1608_v24  ;;  %1956 = vmatpush.msrb.mxu0 %v1542_v60  ;;  %v3036_v4 = vpop.eup %2617  ;;  %v1750_v60 = vld [vmem:[#allocation6 + $0xcd0] sm:$0xff] }
 0x16b   :  { %2015 = vmatpush.msrb.mxu3 %v1640_v27  ;;  %1976 = vmatpush.msrb.mxu1 %v1574_v28  ;;  %v3038_v9 = vpop.eup %2619  ;;  %v1684_v27 = vld [vmem:[#allocation6 + $0xac0] sm:$0xff]  ;;  %v1742_v44 = vld [vmem:[#allocation6 + $0xc90] sm:$0xff] }
 0x16c   :  { %1996 = vmatpush.msrb.mxu2 %v1606_v31  ;;  %1957 = vmatpush.msrb.mxu0 %v1540_v0  ;;  %v3042_v14 = vpop.eup %2621  ;;  %v1716_v28 = vld [vmem:[#allocation6 + $0xbc0] sm:$0xff] }
 0x16d   :  { %2016 = vmatpush.msrb.mxu3 %v1638_v34  ;;  %1977 = vmatpush.msrb.mxu1 %v1572_v35  ;;  %v1780_v31 = vld [vmem:[#allocation6 + $0xdc0] sm:$0xff]  ;;  %v1682_v34 = vld [vmem:[#allocation6 + $0xab0] sm:$0xff] }
 0x16e   :  { %1997 = vmatpush.msrb.mxu2 %v1604_v37  ;;  %1958 = vmatpush.msrb.mxu0 %v1538_v38  ;;  %v1714_v35 = vld [vmem:[#allocation6 + $0xbb0] sm:$0xff]  ;;  %v1680_v37 = vld [vmem:[#allocation6 + $0xaa0] sm:$0xff] }
 0x16f   :  { %2017 = vmatpush.msrb.mxu3 %v1636_v40  ;;  %1978 = vmatpush.msrb.mxu1 %v1570_v41  ;;  %v1712_v38 = vld [vmem:[#allocation6 + $0xba0] sm:$0xff] }
 0x170   :  { %1998 = vmatpush.msrb.mxu2 %v1602_v42  ;;  %1959 = vmatpush.msrb.mxu0 %v1536_v43  ;;  %v1744_v40 = vld [vmem:[#allocation6 + $0xca0] sm:$0xff]  ;;  %v1678_v42 = vld [vmem:[#allocation6 + $0xa90] sm:$0xff] }
 0x171   :  { %2018 = vmatpush.msrb.mxu3 %v1634_v45  ;;  %1979 = vmatpush.msrb.mxu1 %v1568_v47  ;;  %v1776_v41 = vld [vmem:[#allocation6 + $0xda0] sm:$0xff]  ;;  %v1710_v43 = vld [vmem:[#allocation6 + $0xb90] sm:$0xff] }
 0x172   :  { %1999 = vmatpush.msrb.mxu2 %v1600_v48  ;;  %1960 = vmatpush.msrb.mxu0 %v1534_v49  ;;  %v1774_v45 = vld [vmem:[#allocation6 + $0xd90] sm:$0xff]  ;;  %v1676_v47 = vld [vmem:[#allocation6 + $0xa80] sm:$0xff] }
 0x173   :  { %2019 = vmatpush.msrb.mxu3 %v1632_v50  ;;  %1980 = vmatpush.msrb.mxu1 %v1566_v52  ;;  %v1082_v61 = vpop.f32.mrf.mxu0  ;;  %v1708_v48 = vld [vmem:[#allocation6 + $0xb80] sm:$0xff]  ;;  %v1674_v52 = vld [vmem:[#allocation6 + $0xa70] sm:$0xff] }
 0x174   :  { %2000 = vmatpush.msrb.mxu2 %v1598_v54  ;;  %1961 = vmatpush.msrb.mxu0 %v1532_v55  ;;  %v1083_v63 = vadd.f32 %v1082_v61, %v645_v53  ;;  %v1122_v3 = vpop.f32.mrf.mxu2  ;;  %v1740_v49 = vld [vmem:[#allocation6 + $0xc80] sm:$0xff]  ;;  %v1706_v53 = vld [vmem:[#allocation6 + $0xb70] sm:$0xff] }
 0x175   :  { %2020 = vmatpush.msrb.mxu3 %v1630_v57  ;;  %1981 = vmatpush.msrb.mxu1 %v1564_v58  ;;  %v1102_v7 = vpop.f32.mrf.mxu1  ;;  %v1123_v8 = vadd.f32 %v1122_v3, %v646_v56  ;;  %v1772_v50 = vld [vmem:[#allocation6 + $0xd80] sm:$0xff]  ;;  %v1738_v54 = vld [vmem:[#allocation6 + $0xc70] sm:$0xff] }
 0x176   :  { %2001 = vmatpush.msrb.mxu2 %v1596_v59  ;;  %1962 = vmatmul.f32.vlgmr.msrb.gmra.mxu0 %v3036_v4  ;;  %v1103_v22 = vadd.f32 %v1102_v7, %v1083_v63  ;;  %v1770_v55 = vld [vmem:[#allocation6 + $0xd70] sm:$0xff]  ;;  %v1672_v57 = vld [vmem:[#allocation6 + $0xa60] sm:$0xff] }
 0x177   :  { %2002 = vmatmul.f32.vlgmr.msrb.gmra.mxu2 %v3034_v62  ;;  %2021 = vmatpush.msrb.mxu3 %v1628_v17  ;;  %v1142_v13 = vpop.f32.mrf.mxu3  ;;  %v1704_v58 = vld [vmem:[#allocation6 + $0xb60] sm:$0xff]  ;;  %v1670_v17 = vld [vmem:[#allocation6 + $0xa50] sm:$0xff] }
 0x178   :  { %2026 = vmatpush.msra.mxu0 %v1690_v5  ;;  %2046 = vmatpush.msra.mxu1 %v1722_v6  ;;  %v1143_v19 = vadd.f32 %v1142_v13, %v1123_v8  ;;  %v1275_v24 = vsub.f32 0.0, %v1103_v22  ;;  %v1736_v59 = vld [vmem:[#allocation6 + $0xc60] sm:$0xff]  ;;  %v1702_v63 = vld [vmem:[#allocation6 + $0xb50] sm:$0xff]  ;;  %v647_v8 = vperm.slane %v3013_v2, 4 }
 0x179   :  { %2066 = vmatpush.msra.mxu2 %v1754_v10  ;;  %1982 = vmatmul.f32.vlgmr.msrb.gmra.mxu1 %v3038_v9  ;;  %v1768_v61 = vld [vmem:[#allocation6 + $0xd60] sm:$0xff]  ;;  %v1734_v6 = vld [vmem:[#allocation6 + $0xc50] sm:$0xff] }
 0x17a   :  { %2086 = vmatpush.msra.mxu3 %v1786_v11  ;;  %2027 = vmatpush.msra.mxu0 %v1688_v12  ;;  %v1276_v0 = vsub.f32 0.0, %v1143_v19  ;;  %v1300_v33 = vmul.f32 1.442695, %v1275_v24  ;;  %v1766_v7 = vld [vmem:[#allocation6 + $0xd50] sm:$0xff]  ;;  %v1668_v10 = vld [vmem:[#allocation6 + $0xa40] sm:$0xff] }
 0x17b   :  { %2022 = vmatmul.f32.vlgmr.msrb.gmra.mxu3 %v3042_v14  ;;  %2047 = vmatpush.msra.mxu1 %v1720_v15  ;;  %v1700_v22 = vld [vmem:[#allocation6 + $0xb40] sm:$0xff]  ;;  %v1666_v15 = vld [vmem:[#allocation6 + $0xa30] sm:$0xff] }
 0x17c   :  { %2067 = vmatpush.msra.mxu2 %v1752_v16  ;;  %2087 = vmatpush.msra.mxu3 %v1784_v18  ;;  %v1302_v39 = vmul.f32 1.442695, %v1276_v0  ;;  %2623 = vpow2.f32 %v1300_v33  ;;  %v1732_v11 = vld [vmem:[#allocation6 + $0xc40] sm:$0xff]  ;;  %v1698_v16 = vld [vmem:[#allocation6 + $0xb30] sm:$0xff]  ;;  %v648_v33 = vperm.slane %v3013_v2, 5 }
 0x17d   :  { %2028 = vmatpush.msra.mxu0 %v1686_v21  ;;  %2048 = vmatpush.msra.mxu1 %v1718_v23  ;;  %v1764_v12 = vld [vmem:[#allocation6 + $0xd40] sm:$0xff]  ;;  %v1730_v19 = vld [vmem:[#allocation6 + $0xc30] sm:$0xff] }
 0x17e   :  { %2068 = vmatpush.msra.mxu2 %v1750_v60  ;;  %2088 = vmatpush.msra.mxu3 %v1782_v26  ;;  %2625 = vpow2.f32 %v1302_v39  ;;  %v1762_v21 = vld [vmem:[#allocation6 + $0xd30] sm:$0xff]  ;;  %v1664_v24 = vld [vmem:[#allocation6 + $0xa20] sm:$0xff] }
 0x17f   :  { %2029 = vmatpush.msra.mxu0 %v1684_v27  ;;  %2049 = vmatpush.msra.mxu1 %v1716_v28  ;;  %v1696_v60 = vld [vmem:[#allocation6 + $0xb20] sm:$0xff] }
 0x180   :  { %2069 = vmatpush.msra.mxu2 %v1748_v30  ;;  %2089 = vmatpush.msra.mxu3 %v1780_v31  ;;  %v1728_v26 = vld [vmem:[#allocation6 + $0xc20] sm:$0xff]  ;;  %v1662_v30 = vld [vmem:[#allocation6 + $0xa10] sm:$0xff] }
 0x181   :  { %2030 = vmatpush.msra.mxu0 %v1682_v34  ;;  %2050 = vmatpush.msra.mxu1 %v1714_v35  ;;  %v1760_v27 = vld [vmem:[#allocation6 + $0xd20] sm:$0xff]  ;;  %v1694_v31 = vld [vmem:[#allocation6 + $0xb10] sm:$0xff] }
 0x182   :  { %2070 = vmatpush.msra.mxu2 %v1746_v36  ;;  %2090 = vmatpush.msra.mxu3 %v1778_v1  ;;  %v2624_v56 = vpop.eup %2623  ;;  %v1726_v34 = vld [vmem:[#allocation6 + $0xc10] sm:$0xff]  ;;  %v1660_v36 = vld [vmem:[#allocation6 + $0xa00] sm:$0xff] }
 0x183   :  { %2031 = vmatpush.msra.mxu0 %v1680_v37  ;;  %2051 = vmatpush.msra.mxu1 %v1712_v38  ;;  %v1320_v5 = vadd.f32 1.0, %v2624_v56  ;;  %v1758_v35 = vld [vmem:[#allocation6 + $0xd10] sm:$0xff]  ;;  %v1692_v1 = vld [vmem:[#allocation6 + $0xb00] sm:$0xff] }
 0x184   :  { %2071 = vmatpush.msra.mxu2 %v1744_v40  ;;  %2091 = vmatpush.msra.mxu3 %v1776_v41  ;;  %v2626_v3 = vpop.eup %2625  ;;  %v1724_v39 = vld [vmem:[#allocation6 + $0xc00] sm:$0xff]  ;;  %v1818_v41 = vld [vmem:[#allocation6 + $0xef0] sm:$0xff] }
 0x185   :  { %2032 = vmatpush.msra.mxu0 %v1678_v42  ;;  %2052 = vmatpush.msra.mxu1 %v1710_v43  ;;  %v1321_v13 = vadd.f32 1.0, %v2626_v3  ;;  %2627 = vrcp.f32 %v1320_v5  ;;  %v1756_v40 = vld [vmem:[#allocation6 + $0xd00] sm:$0xff]  ;;  %v1397_v3 = vld [vmem:[#allocation6 + $0x1c8] sm:$0xff] }
 0x186   :  { %2072 = vmatpush.msra.mxu2 %v1742_v44  ;;  %2092 = vmatpush.msra.mxu3 %v1774_v45  ;;  %v1371_v44 = vld [vmem:[#allocation6 + $0xf8] sm:$0xff]  ;;  %v1429_v5 = vld [vmem:[#allocation6 + $0x2c8] sm:$0xff] }
 0x187   :  { %2033 = vmatpush.msra.mxu0 %v1676_v47  ;;  %2053 = vmatpush.msra.mxu1 %v1708_v48  ;;  %2629 = vrcp.f32 %v1321_v13  ;;  %v1403_v45 = vld [vmem:[#allocation6 + $0x1f8] sm:$0xff] }
 0x188   :  { %2073 = vmatpush.msra.mxu2 %v1740_v49  ;;  %2093 = vmatpush.msra.mxu3 %v1772_v50  ;;  %v1435_v49 = vld [vmem:[#allocation6 + $0x2f8] sm:$0xff]  ;;  %v1816_v50 = vld [vmem:[#allocation6 + $0xee0] sm:$0xff] }
 0x189   :  { %2034 = vmatpush.msra.mxu0 %v1674_v52  ;;  %2054 = vmatpush.msra.mxu1 %v1706_v53  ;;  %v1369_v52 = vld [vmem:[#allocation6 + $0xe8] sm:$0xff] }
 0x18a   :  { %2074 = vmatpush.msra.mxu2 %v1738_v54  ;;  %2094 = vmatpush.msra.mxu3 %v1770_v55  ;;  %v1401_v53 = vld [vmem:[#allocation6 + $0x1e8] sm:$0xff] }
 0x18b   :  { %2035 = vmatpush.msra.mxu0 %v1672_v57  ;;  %2055 = vmatpush.msra.mxu1 %v1704_v58  ;;  %v3048_v38 = vpop.eup %2627  ;;  %v1433_v55 = vld [vmem:[#allocation6 + $0x2e8] sm:$0xff]  ;;  %v1814_v57 = vld [vmem:[#allocation6 + $0xed0] sm:$0xff]  ;;  %v1367_v58 = vld [vmem:[#allocation6 + $0xd8] sm:$0xff] }
 0x18c   :  { %2075 = vmatpush.msra.mxu2 %v1736_v59  ;;  %2095 = vmatpush.msra.mxu3 %v1768_v61  ;;  %v1399_v59 = vld [vmem:[#allocation6 + $0x1d8] sm:$0xff] }
 0x18d   :  { %2036 = vmatpush.msra.mxu0 %v1670_v17  ;;  %2056 = vmatpush.msra.mxu1 %v1702_v63  ;;  %v3050_v48 = vpop.eup %2629  ;;  %v1431_v61 = vld [vmem:[#allocation6 + $0x2d8] sm:$0xff]  ;;  %v1812_v17 = vld [vmem:[#allocation6 + $0xec0] sm:$0xff]  ;;  %v1365_v63 = vld [vmem:[#allocation6 + $0xc8] sm:$0xff] }
 0x18e   :  { %2076 = vmatpush.msra.mxu2 %v1734_v6  ;;  %2096 = vmatpush.msra.mxu3 %v1766_v7  ;;  %v1162_v18 = vpop.f32.mrf.mxu0  ;;  %v1810_v7 = vld [vmem:[#allocation6 + $0xeb0] sm:$0xff] }
 0x18f   :  { %2037 = vmatpush.msra.mxu0 %v1668_v10  ;;  %2057 = vmatpush.msra.mxu1 %v1700_v22  ;;  %v1163_v23 = vadd.f32 %v1162_v18, %v647_v8  ;;  %v1363_v8 = vld [vmem:[#allocation6 + $0xb8] sm:$0xff]  ;;  %v1806_v18 = vld [vmem:[#allocation6 + $0xe90] sm:$0xff] }
 0x190   :  { %2077 = vmatpush.msra.mxu2 %v1732_v11  ;;  %2097 = vmatpush.msra.mxu3 %v1764_v12  ;;  %v1395_v10 = vld [vmem:[#allocation6 + $0x1b8] sm:$0xff]  ;;  %v1808_v11 = vld [vmem:[#allocation6 + $0xea0] sm:$0xff]  ;;  %v1361_v12 = vld [vmem:[#allocation6 + $0xa8] sm:$0xff] }
 0x191   :  { %2038 = vmatpush.msra.mxu0 %v1666_v15  ;;  %2058 = vmatpush.msra.mxu1 %v1698_v16  ;;  %v1182_v28 = vpop.f32.mrf.mxu1  ;;  %v1427_v22 = vld [vmem:[#allocation6 + $0x2b8] sm:$0xff]  ;;  %v1393_v15 = vld [vmem:[#allocation6 + $0x1a8] sm:$0xff] }
 0x192   :  { %2078 = vmatpush.msra.mxu2 %v1730_v19  ;;  %2098 = vmatpush.msra.mxu3 %v1762_v21  ;;  %v1183_v0 = vadd.f32 %v1182_v28, %v1163_v23  ;;  %v1425_v16 = vld [vmem:[#allocation6 + $0x2a8] sm:$0xff]  ;;  %v1359_v19 = vld [vmem:[#allocation6 + $0x98] sm:$0xff] }
 0x193   :  { %2039 = vmatpush.msra.mxu0 %v1664_v24  ;;  %2059 = vmatpush.msra.mxu1 %v1696_v60  ;;  %v1391_v23 = vld [vmem:[#allocation6 + $0x198] sm:$0xff]  ;;  %v1804_v60 = vld [vmem:[#allocation6 + $0xe80] sm:$0xff]  ;;  %v1421_v28 = vld [vmem:[#allocation6 + $0x288] sm:$0xff] }
 0x194   :  { %2079 = vmatpush.msra.mxu2 %v1728_v26  ;;  %2099 = vmatpush.msra.mxu3 %v1760_v27  ;;  %v1202_v37 = vpop.f32.mrf.mxu2  ;;  %v1277_v42 = vsub.f32 0.0, %v1183_v0  ;;  %v1423_v24 = vld [vmem:[#allocation6 + $0x298] sm:$0xff]  ;;  %v1357_v26 = vld [vmem:[#allocation6 + $0x88] sm:$0xff] }
 0x195   :  { %2040 = vmatpush.msra.mxu0 %v1662_v30  ;;  %2060 = vmatpush.msra.mxu1 %v1694_v31  ;;  %v1203_v43 = vadd.f32 %v1202_v37, %v648_v33  ;;  %v1389_v27 = vld [vmem:[#allocation6 + $0x188] sm:$0xff]  ;;  %v1802_v31 = vld [vmem:[#allocation6 + $0xe70] sm:$0xff]  ;;  %v1355_v0 = vld [vmem:[#allocation6 + $0x78] sm:$0xff] }
 0x196   :  { %2080 = vmatpush.msra.mxu2 %v1726_v34  ;;  %2100 = vmatpush.msra.mxu3 %v1758_v35  ;;  %v1304_v54 = vmul.f32 1.442695, %v1277_v42  ;;  %v1387_v33 = vld [vmem:[#allocation6 + $0x178] sm:$0xff]  ;;  %v1800_v35 = vld [vmem:[#allocation6 + $0xe60] sm:$0xff]  ;;  %v1417_v37 = vld [vmem:[#allocation6 + $0x268] sm:$0xff] }
 0x197   :  { %2041 = vmatpush.msra.mxu0 %v1660_v36  ;;  %2061 = vmatpush.msra.mxu1 %v1692_v1  ;;  %v1222_v47 = vpop.f32.mrf.mxu3  ;;  %v1419_v34 = vld [vmem:[#allocation6 + $0x278] sm:$0xff]  ;;  %v1353_v36 = vld [vmem:[#allocation6 + $0x68] sm:$0xff] }
 0x198   :  { %2081 = vmatpush.msra.mxu2 %v1724_v39  ;;  %2042 = vmatmul.f32.vlgmr.msra.gmra.mxu0 %v3048_v38  ;;  %v1223_v56 = vadd.f32 %v1222_v47, %v1203_v43  ;;  %2631 = vpow2.f32 %v1304_v54  ;;  %v1385_v1 = vld [vmem:[#allocation6 + $0x168] sm:$0xff]  ;;  %v1798_v39 = vld [vmem:[#allocation6 + $0xe50] sm:$0xff]  ;;  %v1383_v42 = vld [vmem:[#allocation6 + $0x158] sm:$0xff]  ;;  %v649_v47 = vperm.slane %v3013_v2, 6 }
 0x199   :  { %2101 = vmatpush.msra.mxu3 %v1756_v40  ;;  %2106 = vmatpush.msrb.mxu0 %v1818_v41  ;;  %v1351_v40 = vld [vmem:[#allocation6 + $0x58] sm:$0xff] }
 0x19a   :  { %2126 = vmatpush.msrb.mxu1 %v1371_v44  ;;  %2146 = vmatpush.msrb.mxu2 %v1403_v45  ;;  %v1278_v6 = vsub.f32 0.0, %v1223_v56  ;;  %v1415_v43 = vld [vmem:[#allocation6 + $0x258] sm:$0xff]  ;;  %v1796_v44 = vld [vmem:[#allocation6 + $0xe40] sm:$0xff]  ;;  %v1349_v45 = vld [vmem:[#allocation6 + $0x48] sm:$0xff] }
 0x19b   :  { %2166 = vmatpush.msrb.mxu3 %v1435_v49  ;;  %2062 = vmatmul.f32.vlgmr.msra.gmra.mxu1 %v3050_v48  ;;  %v1381_v49 = vld [vmem:[#allocation6 + $0x148] sm:$0xff]  ;;  %v1347_v54 = vld [vmem:[#allocation6 + $0x38] sm:$0xff] }
 0x19c   :  { %2107 = vmatpush.msrb.mxu0 %v1816_v50  ;;  %2127 = vmatpush.msrb.mxu1 %v1369_v52  ;;  %v1306_v13 = vmul.f32 1.442695, %v1278_v6  ;;  %v1413_v50 = vld [vmem:[#allocation6 + $0x248] sm:$0xff]  ;;  %v1411_v56 = vld [vmem:[#allocation6 + $0x238] sm:$0xff] }
 0x19d   :  { %2147 = vmatpush.msrb.mxu2 %v1401_v53  ;;  %2167 = vmatpush.msrb.mxu3 %v1433_v55  ;;  %v1794_v53 = vld [vmem:[#allocation6 + $0xe30] sm:$0xff]  ;;  %v1379_v55 = vld [vmem:[#allocation6 + $0x138] sm:$0xff] }
 0x19e   :  { %2108 = vmatpush.msrb.mxu0 %v1814_v57  ;;  %2128 = vmatpush.msrb.mxu1 %v1367_v58  ;;  %v2632_v21 = vpop.eup %2631  ;;  %2633 = vpow2.f32 %v1306_v13  ;;  %v1343_v6 = vld [vmem:[#allocation6 + $0x18] sm:$0xff]  ;;  %v1405_v13 = vld [vmem:[#allocation6 + $0x208] sm:$0xff] }
 0x19f   :  { %2148 = vmatpush.msrb.mxu2 %v1399_v59  ;;  %2168 = vmatpush.msrb.mxu3 %v1431_v61  ;;  %v1322_v30 = vadd.f32 1.0, %v2632_v21  ;;  %v1792_v59 = vld [vmem:[#allocation6 + $0xe20] sm:$0xff]  ;;  %v1345_v61 = vld [vmem:[#allocation6 + $0x28] sm:$0xff]  ;;  %v1531_v21 = vld [vmem:[#allocation6 + $0x5f8] sm:$0xff] }
 0x1a0   :  { %2109 = vmatpush.msrb.mxu0 %v1812_v17  ;;  %2129 = vmatpush.msrb.mxu1 %v1365_v63  ;;  %v1377_v17 = vld [vmem:[#allocation6 + $0x128] sm:$0xff] }
 0x1a1   :  { %2149 = vmatpush.msrb.mxu2 %v1397_v3  ;;  %2169 = vmatpush.msrb.mxu3 %v1429_v5  ;;  %2635 = vrcp.f32 %v1322_v30  ;;  %v1409_v63 = vld [vmem:[#allocation6 + $0x228] sm:$0xff]  ;;  %v1790_v3 = vld [vmem:[#allocation6 + $0xe10] sm:$0xff]  ;;  %v1463_v30 = vld [vmem:[#allocation6 + $0x3d8] sm:$0xff] }
 0x1a2   :  { %2110 = vmatpush.msrb.mxu0 %v1810_v7  ;;  %2130 = vmatpush.msrb.mxu1 %v1363_v8  ;;  %v1375_v7 = vld [vmem:[#allocation6 + $0x118] sm:$0xff] }
 0x1a3   :  { %2150 = vmatpush.msrb.mxu2 %v1395_v10  ;;  %2170 = vmatpush.msrb.mxu3 %v1427_v22  ;;  %v1407_v10 = vld [vmem:[#allocation6 + $0x218] sm:$0xff]  ;;  %v1788_v22 = vld [vmem:[#allocation6 + $0xe00] sm:$0xff] }
 0x1a4   :  { %2111 = vmatpush.msrb.mxu0 %v1808_v11  ;;  %2131 = vmatpush.msrb.mxu1 %v1361_v12  ;;  %v2634_v41 = vpop.eup %2633  ;;  %v1341_v11 = vld [vmem:[#allocation6 + $0x8] sm:$0xff] }
 0x1a5   :  { %2151 = vmatpush.msrb.mxu2 %v1393_v15  ;;  %2171 = vmatpush.msrb.mxu3 %v1425_v16  ;;  %v1323_v52 = vadd.f32 1.0, %v2634_v41  ;;  %v1373_v12 = vld [vmem:[#allocation6 + $0x108] sm:$0xff]  ;;  %v1467_v15 = vld [vmem:[#allocation6 + $0x3f8] sm:$0xff] }
 0x1a6   :  { %2112 = vmatpush.msrb.mxu0 %v1806_v18  ;;  %2132 = vmatpush.msrb.mxu1 %v1359_v19  ;;  %v1499_v16 = vld [vmem:[#allocation6 + $0x4f8] sm:$0xff]  ;;  %v1457_v41 = vld [vmem:[#allocation6 + $0x3a8] sm:$0xff] }
 0x1a7   :  { %2152 = vmatpush.msrb.mxu2 %v1391_v23  ;;  %2172 = vmatpush.msrb.mxu3 %v1423_v24  ;;  %v3055_v58 = vpop.eup %2635  ;;  %2637 = vrcp.f32 %v1323_v52  ;;  %v1563_v23 = vld [vmem:[#allocation6 + $0x6f8] sm:$0xff]  ;;  %v1465_v24 = vld [vmem:[#allocation6 + $0x3e8] sm:$0xff] }
 0x1a8   :  { %2113 = vmatpush.msrb.mxu0 %v1804_v60  ;;  %2133 = vmatpush.msrb.mxu1 %v1357_v26  ;;  %v1497_v60 = vld [vmem:[#allocation6 + $0x4e8] sm:$0xff] }
 0x1a9   :  { %2153 = vmatpush.msrb.mxu2 %v1389_v27  ;;  %2173 = vmatpush.msrb.mxu3 %v1421_v28  ;;  %v1529_v26 = vld [vmem:[#allocation6 + $0x5e8] sm:$0xff] }
 0x1aa   :  { %2114 = vmatpush.msrb.mxu0 %v1802_v31  ;;  %2134 = vmatpush.msrb.mxu1 %v1355_v0  ;;  %v1561_v28 = vld [vmem:[#allocation6 + $0x6e8] sm:$0xff]  ;;  %v1495_v31 = vld [vmem:[#allocation6 + $0x4d8] sm:$0xff] }
 0x1ab   :  { %2154 = vmatpush.msrb.mxu2 %v1387_v33  ;;  %2174 = vmatpush.msrb.mxu3 %v1419_v34  ;;  %v1527_v0 = vld [vmem:[#allocation6 + $0x5d8] sm:$0xff]  ;;  %v1461_v33 = vld [vmem:[#allocation6 + $0x3c8] sm:$0xff] }
 0x1ac   :  { %2115 = vmatpush.msrb.mxu0 %v1800_v35  ;;  %2135 = vmatpush.msrb.mxu1 %v1353_v36  ;;  %v1493_v34 = vld [vmem:[#allocation6 + $0x4c8] sm:$0xff] }
 0x1ad   :  { %2155 = vmatpush.msrb.mxu2 %v1385_v1  ;;  %2175 = vmatpush.msrb.mxu3 %v1417_v37  ;;  %v3058_v19 = vpop.eup %2637  ;;  %v1525_v35 = vld [vmem:[#allocation6 + $0x5c8] sm:$0xff]  ;;  %v1459_v1 = vld [vmem:[#allocation6 + $0x3b8] sm:$0xff] }
 0x1ae   :  { %2116 = vmatpush.msrb.mxu0 %v1798_v39  ;;  %2136 = vmatpush.msrb.mxu1 %v1351_v40  ;;  %v1557_v36 = vld [vmem:[#allocation6 + $0x6c8] sm:$0xff]  ;;  %v1491_v37 = vld [vmem:[#allocation6 + $0x4b8] sm:$0xff] }
 0x1af   :  { %2156 = vmatpush.msrb.mxu2 %v1383_v42  ;;  %2176 = vmatpush.msrb.mxu3 %v1415_v43  ;;  %v1523_v39 = vld [vmem:[#allocation6 + $0x5b8] sm:$0xff]  ;;  %v1521_v42 = vld [vmem:[#allocation6 + $0x5a8] sm:$0xff] }
 0x1b0   :  { %2117 = vmatpush.msrb.mxu0 %v1796_v44  ;;  %2137 = vmatpush.msrb.mxu1 %v1349_v45  ;;  %v1242_v57 = vpop.f32.mrf.mxu0  ;;  %v1555_v40 = vld [vmem:[#allocation6 + $0x6b8] sm:$0xff]  ;;  %v1553_v43 = vld [vmem:[#allocation6 + $0x6a8] sm:$0xff] }
 0x1b1   :  { %2157 = vmatpush.msrb.mxu2 %v1381_v49  ;;  %2177 = vmatpush.msrb.mxu3 %v1413_v50  ;;  %v1243_v2 = vadd.f32 %v1242_v57, %v649_v47  ;;  %v1455_v44 = vld [vmem:[#allocation6 + $0x398] sm:$0xff]  ;;  %v1453_v52 = vld [vmem:[#allocation6 + $0x388] sm:$0xff] }
 0x1b2   :  { %2118 = vmatpush.msrb.mxu0 %v1794_v53  ;;  %2138 = vmatpush.msrb.mxu1 %v1347_v54  ;;  %v1487_v47 = vld [vmem:[#allocation6 + $0x498] sm:$0xff]  ;;  %v1485_v53 = vld [vmem:[#allocation6 + $0x488] sm:$0xff] }
 0x1b3   :  { %2158 = vmatpush.msrb.mxu2 %v1379_v55  ;;  %2178 = vmatpush.msrb.mxu3 %v1411_v56  ;;  %v1262_v5 = vpop.f32.mrf.mxu1  ;;  %v1519_v49 = vld [vmem:[#allocation6 + $0x598] sm:$0xff]  ;;  %v1517_v54 = vld [vmem:[#allocation6 + $0x588] sm:$0xff] }
 0x1b4   :  { %2082 = vmatmul.f32.vlgmr.msra.gmra.mxu2 %v3055_v58  ;;  %2119 = vmatpush.msrb.mxu0 %v1792_v59  ;;  %v1263_v8 = vadd.f32 %v1262_v5, %v1243_v2  ;;  %v1551_v50 = vld [vmem:[#allocation6 + $0x698] sm:$0xff]  ;;  %v1549_v56 = vld [vmem:[#allocation6 + $0x688] sm:$0xff] }
 0x1b5   :  { %2139 = vmatpush.msrb.mxu1 %v1345_v61  ;;  %2159 = vmatpush.msrb.mxu2 %v1377_v17  ;;  %v1483_v57 = vld [vmem:[#allocation6 + $0x478] sm:$0xff]  ;;  %v1449_v61 = vld [vmem:[#allocation6 + $0x368] sm:$0xff] }
 0x1b6   :  { %2179 = vmatpush.msrb.mxu3 %v1409_v63  ;;  %2120 = vmatpush.msrb.mxu0 %v1790_v3  ;;  %v1279_v18 = vsub.f32 0.0, %v1263_v8  ;;  %v1515_v59 = vld [vmem:[#allocation6 + $0x578] sm:$0xff]  ;;  %v1481_v17 = vld [vmem:[#allocation6 + $0x468] sm:$0xff] }
 0x1b7   :  { %2140 = vmatpush.msrb.mxu1 %v1343_v6  ;;  %2160 = vmatpush.msrb.mxu2 %v1375_v7  ;;  %v1547_v2 = vld [vmem:[#allocation6 + $0x678] sm:$0xff]  ;;  %v1513_v63 = vld [vmem:[#allocation6 + $0x568] sm:$0xff] }
 0x1b8   :  { %2180 = vmatpush.msrb.mxu3 %v1407_v10  ;;  %2121 = vmatpush.msrb.mxu0 %v1788_v22  ;;  %v1308_v27 = vmul.f32 1.442695, %v1279_v18  ;;  %v1545_v3 = vld [vmem:[#allocation6 + $0x668] sm:$0xff]  ;;  %v1447_v5 = vld [vmem:[#allocation6 + $0x358] sm:$0xff] }
 0x1b9   :  { %2141 = vmatpush.msrb.mxu1 %v1341_v11  ;;  %2161 = vmatpush.msrb.mxu2 %v1373_v12  ;;  %v1479_v6 = vld [vmem:[#allocation6 + $0x458] sm:$0xff]  ;;  %v1445_v10 = vld [vmem:[#allocation6 + $0x348] sm:$0xff] }
 0x1ba   :  { %2142 = vmatmul.f32.vlgmr.msrb.gmra.mxu1 %v3003_v46  ;;  %2181 = vmatpush.msrb.mxu3 %v1405_v13  ;;  %v1559_v46 = vld [vmem:[#allocation6 + $0x6d8] sm:$0xff]  ;;  %2639 = vpow2.f32 %v1308_v27  ;;  %v1477_v22 = vld [vmem:[#allocation6 + $0x448] sm:$0xff] }
 0x1bb   :  { %2186 = vmatpush.msra.mxu0 %v1467_v15  ;;  %2206 = vmatpush.msra.mxu1 %v1499_v16  ;;  %v1511_v7 = vld [vmem:[#allocation6 + $0x558] sm:$0xff]  ;;  %v1509_v11 = vld [vmem:[#allocation6 + $0x548] sm:$0xff] }
 0x1bc   :  { %2226 = vmatpush.msra.mxu2 %v1531_v21  ;;  %2102 = vmatmul.f32.vlgmr.msra.gmra.mxu3 %v3058_v19  ;;  %v1543_v8 = vld [vmem:[#allocation6 + $0x658] sm:$0xff]  ;;  %v1541_v12 = vld [vmem:[#allocation6 + $0x648] sm:$0xff] }
 0x1bd   :  { %2246 = vmatpush.msra.mxu3 %v1563_v23  ;;  %2187 = vmatpush.msra.mxu0 %v1465_v24  ;;  %v1443_v13 = vld [vmem:[#allocation6 + $0x338] sm:$0xff]  ;;  %v1441_v23 = vld [vmem:[#allocation6 + $0x328] sm:$0xff] }
 0x1be   :  { %2207 = vmatpush.msra.mxu1 %v1497_v60  ;;  %2227 = vmatpush.msra.mxu2 %v1529_v26  ;;  %v1475_v15 = vld [vmem:[#allocation6 + $0x438] sm:$0xff]  ;;  %v1473_v24 = vld [vmem:[#allocation6 + $0x428] sm:$0xff] }
 0x1bf   :  { %2162 = vmatmul.f32.vlgmr.msrb.gmra.mxu2 %v3005_v51  ;;  %2247 = vmatpush.msra.mxu3 %v1561_v28  ;;  %v1489_v51 = vld [vmem:[#allocation6 + $0x4a8] sm:$0xff]  ;;  %v1507_v16 = vld [vmem:[#allocation6 + $0x538] sm:$0xff] }
 0x1c0   :  { %2188 = vmatpush.msra.mxu0 %v1463_v30  ;;  %2208 = vmatpush.msra.mxu1 %v1495_v31  ;;  %v2640_v45 = vpop.eup %2639  ;;  %v1539_v21 = vld [vmem:[#allocation6 + $0x638] sm:$0xff]  ;;  %v1505_v60 = vld [vmem:[#allocation6 + $0x528] sm:$0xff] }
 0x1c1   :  { %2228 = vmatpush.msra.mxu2 %v1527_v0  ;;  %2248 = vmatpush.msra.mxu3 %v1559_v46  ;;  %v1324_v55 = vadd.f32 1.0, %v2640_v45  ;;  %v1537_v26 = vld [vmem:[#allocation6 + $0x628] sm:$0xff]  ;;  %v1439_v27 = vld [vmem:[#allocation6 + $0x318] sm:$0xff] }
 0x1c2   :  { %2189 = vmatpush.msra.mxu0 %v1461_v33  ;;  %2209 = vmatpush.msra.mxu1 %v1493_v34  ;;  %v1471_v28 = vld [vmem:[#allocation6 + $0x418] sm:$0xff]  ;;  %v1437_v0 = vld [vmem:[#allocation6 + $0x308] sm:$0xff] }
 0x1c3   :  { %2229 = vmatpush.msra.mxu2 %v1525_v35  ;;  %2249 = vmatpush.msra.mxu3 %v1557_v36  ;;  %2641 = vrcp.f32 %v1324_v55  ;;  %v1503_v30 = vld [vmem:[#allocation6 + $0x518] sm:$0xff]  ;;  %v1469_v46 = vld [vmem:[#allocation6 + $0x408] sm:$0xff] }
 0x1c4   :  { %2190 = vmatpush.msra.mxu0 %v1459_v1  ;;  %2210 = vmatpush.msra.mxu1 %v1491_v37  ;;  %v1535_v31 = vld [vmem:[#allocation6 + $0x618] sm:$0xff]  ;;  %v1501_v33 = vld [vmem:[#allocation6 + $0x508] sm:$0xff] }
 0x1c5   :  { %2230 = vmatpush.msra.mxu2 %v1523_v39  ;;  %2182 = vmatmul.f32.vlgmr.msrb.gmra.mxu3 %v3019_v20  ;;  %v1451_v20 = vld [vmem:[#allocation6 + $0x378] sm:$0xff]  ;;  %v1533_v34 = vld [vmem:[#allocation6 + $0x608] sm:$0xff] }
 0x1c6   :  { %2250 = vmatpush.msra.mxu3 %v1555_v40  ;;  %2191 = vmatpush.msra.mxu0 %v1457_v41  ;;  %v1595_v35 = vld [vmem:[#allocation6 + $0x7f8] sm:$0xff]  ;;  %v1593_v39 = vld [vmem:[#allocation6 + $0x7e8] sm:$0xff] }
 0x1c7   :  { %2211 = vmatpush.msra.mxu1 %v1489_v51  ;;  %2231 = vmatpush.msra.mxu2 %v1521_v42  ;;  %v1627_v36 = vld [vmem:[#allocation6 + $0x8f8] sm:$0xff]  ;;  %v1625_v40 = vld [vmem:[#allocation6 + $0x8e8] sm:$0xff] }
 0x1c8   :  { %2251 = vmatpush.msra.mxu3 %v1553_v43  ;;  %2192 = vmatpush.msra.mxu0 %v1455_v44  ;;  %v1659_v1 = vld [vmem:[#allocation6 + $0x9f8] sm:$0xff]  ;;  %v1657_v41 = vld [vmem:[#allocation6 + $0x9e8] sm:$0xff] }
 0x1c9   :  { %2212 = vmatpush.msra.mxu1 %v1487_v47  ;;  %2232 = vmatpush.msra.mxu2 %v1519_v49  ;;  %v3064_v18 = vpop.eup %2641  ;;  %v1691_v37 = vld [vmem:[#allocation6 + $0xaf8] sm:$0xff]  ;;  %v1689_v51 = vld [vmem:[#allocation6 + $0xae8] sm:$0xff] }
 0x1ca   :  { %2252 = vmatpush.msra.mxu3 %v1551_v50  ;;  %2193 = vmatpush.msra.mxu0 %v1453_v52  ;;  %v1591_v42 = vld [vmem:[#allocation6 + $0x7d8] sm:$0xff]  ;;  %v1621_v45 = vld [vmem:[#allocation6 + $0x8c8] sm:$0xff] }
 0x1cb   :  { %2213 = vmatpush.msra.mxu1 %v1485_v53  ;;  %2233 = vmatpush.msra.mxu2 %v1517_v54  ;;  %v1623_v43 = vld [vmem:[#allocation6 + $0x8d8] sm:$0xff]  ;;  %v1653_v47 = vld [vmem:[#allocation6 + $0x9c8] sm:$0xff] }
 0x1cc   :  { %2253 = vmatpush.msra.mxu3 %v1549_v56  ;;  %2194 = vmatpush.msra.mxu0 %v1451_v20  ;;  %v1687_v44 = vld [vmem:[#allocation6 + $0xad8] sm:$0xff]  ;;  %v1685_v49 = vld [vmem:[#allocation6 + $0xac8] sm:$0xff] }
 0x1cd   :  { %2214 = vmatpush.msra.mxu1 %v1483_v57  ;;  %2234 = vmatpush.msra.mxu2 %v1515_v59  ;;  %v1619_v50 = vld [vmem:[#allocation6 + $0x8b8] sm:$0xff]  ;;  %v1585_v54 = vld [vmem:[#allocation6 + $0x7a8] sm:$0xff] }
 0x1ce   :  { %2254 = vmatpush.msra.mxu3 %v1547_v2  ;;  %2195 = vmatpush.msra.mxu0 %v1449_v61  ;;  %v1651_v52 = vld [vmem:[#allocation6 + $0x9b8] sm:$0xff]  ;;  %v1617_v55 = vld [vmem:[#allocation6 + $0x8a8] sm:$0xff] }
 0x1cf   :  { %2215 = vmatpush.msra.mxu1 %v1481_v17  ;;  %2235 = vmatpush.msra.mxu2 %v1513_v63  ;;  %v1683_v53 = vld [vmem:[#allocation6 + $0xab8] sm:$0xff]  ;;  %v1681_v56 = vld [vmem:[#allocation6 + $0xaa8] sm:$0xff] }
 0x1d0   :  { %2255 = vmatpush.msra.mxu3 %v1545_v3  ;;  %2196 = vmatpush.msra.mxu0 %v1447_v5  ;;  %v1583_v20 = vld [vmem:[#allocation6 + $0x798] sm:$0xff]  ;;  %v1581_v61 = vld [vmem:[#allocation6 + $0x788] sm:$0xff] }
 0x1d1   :  { %2216 = vmatpush.msra.mxu1 %v1479_v6  ;;  %2236 = vmatpush.msra.mxu2 %v1511_v7  ;;  %v1615_v57 = vld [vmem:[#allocation6 + $0x898] sm:$0xff]  ;;  %v1613_v17 = vld [vmem:[#allocation6 + $0x888] sm:$0xff] }
 0x1d2   :  { %2256 = vmatpush.msra.mxu3 %v1543_v8  ;;  %2197 = vmatpush.msra.mxu0 %v1445_v10  ;;  %v1647_v59 = vld [vmem:[#allocation6 + $0x998] sm:$0xff]  ;;  %v1645_v63 = vld [vmem:[#allocation6 + $0x988] sm:$0xff] }
 0x1d3   :  { %2217 = vmatpush.msra.mxu1 %v1477_v22  ;;  %2237 = vmatpush.msra.mxu2 %v1509_v11  ;;  %v1679_v2 = vld [vmem:[#allocation6 + $0xa98] sm:$0xff]  ;;  %v1677_v3 = vld [vmem:[#allocation6 + $0xa88] sm:$0xff] }
 0x1d4   :  { %2257 = vmatpush.msra.mxu3 %v1541_v12  ;;  %2198 = vmatpush.msra.mxu0 %v1443_v13  ;;  %v1579_v5 = vld [vmem:[#allocation6 + $0x778] sm:$0xff]  ;;  %v1577_v10 = vld [vmem:[#allocation6 + $0x768] sm:$0xff] }
 0x1d5   :  { %2218 = vmatpush.msra.mxu1 %v1475_v15  ;;  %2238 = vmatpush.msra.mxu2 %v1507_v16  ;;  %v1611_v6 = vld [vmem:[#allocation6 + $0x878] sm:$0xff]  ;;  %v1609_v22 = vld [vmem:[#allocation6 + $0x868] sm:$0xff] }
 0x1d6   :  { %2258 = vmatpush.msra.mxu3 %v1539_v21  ;;  %2122 = vmatmul.f32.vlgmr.msrb.gmra.mxu0 %v3064_v18  ;;  %v1643_v7 = vld [vmem:[#allocation6 + $0x978] sm:$0xff]  ;;  %v1641_v11 = vld [vmem:[#allocation6 + $0x968] sm:$0xff] }
 0x1d7   :  { %2199 = vmatpush.msra.mxu0 %v1441_v23  ;;  %2219 = vmatpush.msra.mxu1 %v1473_v24  ;;  %v1675_v8 = vld [vmem:[#allocation6 + $0xa78] sm:$0xff]  ;;  %v1673_v12 = vld [vmem:[#allocation6 + $0xa68] sm:$0xff] }
 0x1d8   :  { %2239 = vmatpush.msra.mxu2 %v1505_v60  ;;  %2259 = vmatpush.msra.mxu3 %v1537_v26  ;;  %v1575_v13 = vld [vmem:[#allocation6 + $0x758] sm:$0xff]  ;;  %v1573_v23 = vld [vmem:[#allocation6 + $0x748] sm:$0xff] }
 0x1d9   :  { %2200 = vmatpush.msra.mxu0 %v1439_v27  ;;  %2220 = vmatpush.msra.mxu1 %v1471_v28  ;;  %v1607_v15 = vld [vmem:[#allocation6 + $0x858] sm:$0xff]  ;;  %v1605_v24 = vld [vmem:[#allocation6 + $0x848] sm:$0xff] }
 0x1da   :  { %2240 = vmatpush.msra.mxu2 %v1503_v30  ;;  %2260 = vmatpush.msra.mxu3 %v1535_v31  ;;  %v1639_v16 = vld [vmem:[#allocation6 + $0x958] sm:$0xff]  ;;  %v1637_v60 = vld [vmem:[#allocation6 + $0x948] sm:$0xff] }
 0x1db   :  { %2201 = vmatpush.msra.mxu0 %v1437_v0  ;;  %2221 = vmatpush.msra.mxu1 %v1469_v46  ;;  %v1671_v21 = vld [vmem:[#allocation6 + $0xa58] sm:$0xff]  ;;  %v1669_v26 = vld [vmem:[#allocation6 + $0xa48] sm:$0xff] }
 0x1dc   :  { %2241 = vmatpush.msra.mxu2 %v1501_v33  ;;  %2222 = vmatmul.f32.vlgmr.msra.gmra.mxu1 %v3023_v29  ;;  %v1655_v29 = vld [vmem:[#allocation6 + $0x9d8] sm:$0xff]  ;;  %v1569_v0 = vld [vmem:[#allocation6 + $0x728] sm:$0xff] }
 0x1dd   :  { %2242 = vmatmul.f32.vlgmr.msra.gmra.mxu2 %v3026_v32  ;;  %2261 = vmatpush.msra.mxu3 %v1533_v34  ;;  %v1589_v32 = vld [vmem:[#allocation6 + $0x7c8] sm:$0xff]  ;;  %v1571_v27 = vld [vmem:[#allocation6 + $0x738] sm:$0xff] }
 0x1de   :  { %2266 = vmatpush.msrb.mxu0 %v1595_v35  ;;  %2286 = vmatpush.msrb.mxu1 %v1627_v36  ;;  %v1603_v28 = vld [vmem:[#allocation6 + $0x838] sm:$0xff]  ;;  %v1601_v46 = vld [vmem:[#allocation6 + $0x828] sm:$0xff] }
 0x1df   :  { %2306 = vmatpush.msrb.mxu2 %v1659_v1  ;;  %2262 = vmatmul.f32.vlgmr.msra.gmra.mxu3 %v3036_v4  ;;  %v1587_v4 = vld [vmem:[#allocation6 + $0x7b8] sm:$0xff]  ;;  %v1633_v33 = vld [vmem:[#allocation6 + $0x928] sm:$0xff] }
 0x1e0   :  { %2326 = vmatpush.msrb.mxu3 %v1691_v37  ;;  %2267 = vmatpush.msrb.mxu0 %v1593_v39  ;;  %v1635_v30 = vld [vmem:[#allocation6 + $0x938] sm:$0xff]  ;;  %v1665_v34 = vld [vmem:[#allocation6 + $0xa28] sm:$0xff] }
 0x1e1   :  { %2287 = vmatpush.msrb.mxu1 %v1625_v40  ;;  %2307 = vmatpush.msrb.mxu2 %v1657_v41  ;;  %v1667_v31 = vld [vmem:[#allocation6 + $0xa38] sm:$0xff]  ;;  %v1565_v39 = vld [vmem:[#allocation6 + $0x708] sm:$0xff] }
 0x1e2   :  { %2202 = vmatmul.f32.vlgmr.msra.gmra.mxu0 %v3021_v25  ;;  %2327 = vmatpush.msrb.mxu3 %v1689_v51  ;;  %v1649_v25 = vld [vmem:[#allocation6 + $0x9a8] sm:$0xff]  ;;  %v1567_v35 = vld [vmem:[#allocation6 + $0x718] sm:$0xff] }
 0x1e3   :  { %2268 = vmatpush.msrb.mxu0 %v1591_v42  ;;  %2288 = vmatpush.msrb.mxu1 %v1623_v43  ;;  %v1599_v36 = vld [vmem:[#allocation6 + $0x818] sm:$0xff]  ;;  %v1597_v40 = vld [vmem:[#allocation6 + $0x808] sm:$0xff] }
 0x1e4   :  { %2308 = vmatpush.msrb.mxu2 %v1655_v29  ;;  %2328 = vmatpush.msrb.mxu3 %v1687_v44  ;;  %v1631_v1 = vld [vmem:[#allocation6 + $0x918] sm:$0xff]  ;;  %v1629_v41 = vld [vmem:[#allocation6 + $0x908] sm:$0xff] }
 0x1e5   :  { %2269 = vmatpush.msrb.mxu0 %v1589_v32  ;;  %2289 = vmatpush.msrb.mxu1 %v1621_v45  ;;  %v1663_v37 = vld [vmem:[#allocation6 + $0xa18] sm:$0xff]  ;;  %v1661_v51 = vld [vmem:[#allocation6 + $0xa08] sm:$0xff] }
 0x1e6   :  { %2309 = vmatpush.msrb.mxu2 %v1653_v47  ;;  %2329 = vmatpush.msrb.mxu3 %v1685_v49  ;;  %v1723_v42 = vld [vmem:[#allocation6 + $0xbf8] sm:$0xff]  ;;  %v1721_v44 = vld [vmem:[#allocation6 + $0xbe8] sm:$0xff] }
 0x1e7   :  { %2270 = vmatpush.msrb.mxu0 %v1587_v4  ;;  %2290 = vmatpush.msrb.mxu1 %v1619_v50  ;;  %v1755_v43 = vld [vmem:[#allocation6 + $0xcf8] sm:$0xff]  ;;  %v1753_v45 = vld [vmem:[#allocation6 + $0xce8] sm:$0xff] }
 0x1e8   :  { %2310 = vmatpush.msrb.mxu2 %v1651_v52  ;;  %2330 = vmatpush.msrb.mxu3 %v1683_v53  ;;  %v1787_v29 = vld [vmem:[#allocation6 + $0xdf8] sm:$0xff]  ;;  %v1785_v47 = vld [vmem:[#allocation6 + $0xde8] sm:$0xff] }
 0x1e9   :  { %2271 = vmatpush.msrb.mxu0 %v1585_v54  ;;  %2291 = vmatpush.msrb.mxu1 %v1617_v55  ;;  %v1819_v32 = vld [vmem:[#allocation6 + $0xef8] sm:$0xff]  ;;  %v1817_v4 = vld [vmem:[#allocation6 + $0xee8] sm:$0xff] }
 0x1ea   :  { %2311 = vmatpush.msrb.mxu2 %v1649_v25  ;;  %2331 = vmatpush.msrb.mxu3 %v1681_v56  ;;  %v1719_v49 = vld [vmem:[#allocation6 + $0xbd8] sm:$0xff]  ;;  %v1749_v52 = vld [vmem:[#allocation6 + $0xcc8] sm:$0xff] }
 0x1eb   :  { %2272 = vmatpush.msrb.mxu0 %v1583_v20  ;;  %2292 = vmatpush.msrb.mxu1 %v1615_v57  ;;  %v1783_v50 = vld [vmem:[#allocation6 + $0xdd8] sm:$0xff]  ;;  %v1781_v53 = vld [vmem:[#allocation6 + $0xdc8] sm:$0xff] }
 0x1ec   :  { %2312 = vmatpush.msrb.mxu2 %v1647_v59  ;;  %2332 = vmatpush.msrb.mxu3 %v1679_v2  ;;  %v1715_v54 = vld [vmem:[#allocation6 + $0xbb8] sm:$0xff]  ;;  %v1813_v55 = vld [vmem:[#allocation6 + $0xec8] sm:$0xff] }
 0x1ed   :  { %2273 = vmatpush.msrb.mxu0 %v1581_v61  ;;  %2293 = vmatpush.msrb.mxu1 %v1613_v17  ;;  %v1747_v25 = vld [vmem:[#allocation6 + $0xcb8] sm:$0xff]  ;;  %v1713_v56 = vld [vmem:[#allocation6 + $0xba8] sm:$0xff] }
 0x1ee   :  { %2313 = vmatpush.msrb.mxu2 %v1645_v63  ;;  %2333 = vmatpush.msrb.mxu3 %v1677_v3  ;;  %v1811_v20 = vld [vmem:[#allocation6 + $0xeb8] sm:$0xff]  ;;  %v1745_v57 = vld [vmem:[#allocation6 + $0xca8] sm:$0xff] }
 0x1ef   :  { %2274 = vmatpush.msrb.mxu0 %v1579_v5  ;;  %2294 = vmatpush.msrb.mxu1 %v1611_v6  ;;  %v1777_v59 = vld [vmem:[#allocation6 + $0xda8] sm:$0xff]  ;;  %v1711_v2 = vld [vmem:[#allocation6 + $0xb98] sm:$0xff] }
 0x1f0   :  { %2314 = vmatpush.msrb.mxu2 %v1643_v7  ;;  %2334 = vmatpush.msrb.mxu3 %v1675_v8  ;;  %v1809_v61 = vld [vmem:[#allocation6 + $0xea8] sm:$0xff]  ;;  %v1743_v17 = vld [vmem:[#allocation6 + $0xc98] sm:$0xff] }
 0x1f1   :  { %2275 = vmatpush.msrb.mxu0 %v1577_v10  ;;  %2295 = vmatpush.msrb.mxu1 %v1609_v22  ;;  %v1775_v63 = vld [vmem:[#allocation6 + $0xd98] sm:$0xff]  ;;  %v1709_v3 = vld [vmem:[#allocation6 + $0xb88] sm:$0xff] }
 0x1f2   :  { %2315 = vmatpush.msrb.mxu2 %v1641_v11  ;;  %2335 = vmatpush.msrb.mxu3 %v1673_v12  ;;  %v1807_v5 = vld [vmem:[#allocation6 + $0xe98] sm:$0xff]  ;;  %v1741_v6 = vld [vmem:[#allocation6 + $0xc88] sm:$0xff] }
 0x1f3   :  { %2276 = vmatpush.msrb.mxu0 %v1575_v13  ;;  %2296 = vmatpush.msrb.mxu1 %v1607_v15  ;;  %v1773_v7 = vld [vmem:[#allocation6 + $0xd88] sm:$0xff]  ;;  %v1707_v8 = vld [vmem:[#allocation6 + $0xb78] sm:$0xff] }
 0x1f4   :  { %2316 = vmatpush.msrb.mxu2 %v1639_v16  ;;  %2336 = vmatpush.msrb.mxu3 %v1671_v21  ;;  %v1805_v10 = vld [vmem:[#allocation6 + $0xe88] sm:$0xff]  ;;  %v1739_v22 = vld [vmem:[#allocation6 + $0xc78] sm:$0xff] }
 0x1f5   :  { %2277 = vmatpush.msrb.mxu0 %v1573_v23  ;;  %2297 = vmatpush.msrb.mxu1 %v1605_v24  ;;  %v1771_v11 = vld [vmem:[#allocation6 + $0xd78] sm:$0xff]  ;;  %v1705_v12 = vld [vmem:[#allocation6 + $0xb68] sm:$0xff] }
 0x1f6   :  { %2317 = vmatpush.msrb.mxu2 %v1637_v60  ;;  %2337 = vmatpush.msrb.mxu3 %v1669_v26  ;;  %v1803_v13 = vld [vmem:[#allocation6 + $0xe78] sm:$0xff]  ;;  %v1737_v15 = vld [vmem:[#allocation6 + $0xc68] sm:$0xff] }
 0x1f7   :  { %2278 = vmatpush.msrb.mxu0 %v1571_v27  ;;  %2298 = vmatpush.msrb.mxu1 %v1603_v28  ;;  %v1769_v16 = vld [vmem:[#allocation6 + $0xd68] sm:$0xff]  ;;  %v1703_v21 = vld [vmem:[#allocation6 + $0xb58] sm:$0xff] }
 0x1f8   :  { %2318 = vmatpush.msrb.mxu2 %v1635_v30  ;;  %2338 = vmatpush.msrb.mxu3 %v1667_v31  ;;  %v1801_v23 = vld [vmem:[#allocation6 + $0xe68] sm:$0xff]  ;;  %v1735_v24 = vld [vmem:[#allocation6 + $0xc58] sm:$0xff] }
 0x1f9   :  { %2279 = vmatpush.msrb.mxu0 %v1569_v0  ;;  %2299 = vmatpush.msrb.mxu1 %v1601_v46  ;;  %v1767_v60 = vld [vmem:[#allocation6 + $0xd58] sm:$0xff]  ;;  %v1701_v26 = vld [vmem:[#allocation6 + $0xb48] sm:$0xff] }
 0x1fa   :  { %2319 = vmatpush.msrb.mxu2 %v1633_v33  ;;  %2339 = vmatpush.msrb.mxu3 %v1665_v34  ;;  %v1799_v27 = vld [vmem:[#allocation6 + $0xe58] sm:$0xff]  ;;  %v1733_v28 = vld [vmem:[#allocation6 + $0xc48] sm:$0xff] }
 0x1fb   :  { %2280 = vmatpush.msrb.mxu0 %v1567_v35  ;;  %2300 = vmatpush.msrb.mxu1 %v1599_v36  ;;  %v1765_v30 = vld [vmem:[#allocation6 + $0xd48] sm:$0xff]  ;;  %v1699_v31 = vld [vmem:[#allocation6 + $0xb38] sm:$0xff] }
 0x1fc   :  { %2320 = vmatpush.msrb.mxu2 %v1631_v1  ;;  %2340 = vmatpush.msrb.mxu3 %v1663_v37  ;;  %v1797_v0 = vld [vmem:[#allocation6 + $0xe48] sm:$0xff]  ;;  %v1731_v46 = vld [vmem:[#allocation6 + $0xc38] sm:$0xff] }
 0x1fd   :  { %2281 = vmatpush.msrb.mxu0 %v1565_v39  ;;  %2301 = vmatpush.msrb.mxu1 %v1597_v40  ;;  %v1763_v33 = vld [vmem:[#allocation6 + $0xd38] sm:$0xff]  ;;  %v1697_v34 = vld [vmem:[#allocation6 + $0xb28] sm:$0xff] }
 0x1fe   :  { %2321 = vmatpush.msrb.mxu2 %v1629_v41  ;;  %2282 = vmatmul.f32.vlgmr.msrb.gmra.mxu0 %v3038_v9  ;;  %v1751_v9 = vld [vmem:[#allocation6 + $0xcd8] sm:$0xff]  ;;  %v1729_v36 = vld [vmem:[#allocation6 + $0xc28] sm:$0xff] }
 0x1ff   :  { %2302 = vmatmul.f32.vlgmr.msrb.gmra.mxu1 %v3034_v62  ;;  %2322 = vmatmul.f32.vlgmr.msrb.gmra.mxu2 %v3042_v14  ;;  %v1717_v62 = vld [vmem:[#allocation6 + $0xbc8] sm:$0xff]  ;;  %v1815_v14 = vld [vmem:[#allocation6 + $0xed8] sm:$0xff] }
 0x200   :  { %2341 = vmatpush.msrb.mxu3 %v1661_v51  ;;  %2346 = vmatpush.msra.mxu0 %v1723_v42  ;;  %v1795_v35 = vld [vmem:[#allocation6 + $0xe38] sm:$0xff]  ;;  %v1761_v1 = vld [vmem:[#allocation6 + $0xd28] sm:$0xff] }
 0x201   :  { %2366 = vmatpush.msra.mxu1 %v1755_v43  ;;  %2386 = vmatpush.msra.mxu2 %v1787_v29  ;;  %v1695_v37 = vld [vmem:[#allocation6 + $0xb18] sm:$0xff]  ;;  %v1793_v39 = vld [vmem:[#allocation6 + $0xe28] sm:$0xff] }
 0x202   :  { %2342 = vmatmul.f32.vlgmr.msrb.gmra.mxu3 %v3048_v38  ;;  %2347 = vmatpush.msra.mxu0 %v1721_v44  ;;  %v1779_v38 = vld [vmem:[#allocation6 + $0xdb8] sm:$0xff]  ;;  %v1693_v51 = vld [vmem:[#allocation6 + $0xb08] sm:$0xff] }
 0x203   :  { %2406 = vmatpush.msra.mxu3 %v1819_v32  ;;  %2367 = vmatpush.msra.mxu1 %v1753_v45  ;;  %v1727_v40 = vld [vmem:[#allocation6 + $0xc18] sm:$0xff]  ;;  %v1725_v43 = vld [vmem:[#allocation6 + $0xc08] sm:$0xff]  ;;  %v3079_v32 = vld [vmem:[#allocation7] sm:$0x3] }
 0x204   :  { %2387 = vmatpush.msra.mxu2 %v1785_v47  ;;  %2348 = vmatpush.msra.mxu0 %v1719_v49  ;;  %v1759_v41 = vld [vmem:[#allocation6 + $0xd18] sm:$0xff]  ;;  %v1757_v29 = vld [vmem:[#allocation6 + $0xd08] sm:$0xff]  ;;  %v1822_v45 = vperm.slane %v3079_v32, 0  ;;  %v1843_v47 = vpop.f32.mrf.mxu2 }
 0x205   :  { %2407 = vmatpush.msra.mxu3 %v1817_v4  ;;  %2368 = vmatpush.msra.mxu1 %v1751_v9  ;;  %v1791_v42 = vld [vmem:[#allocation6 + $0xe18] sm:$0xff]  ;;  %v1789_v44 = vld [vmem:[#allocation6 + $0xe08] sm:$0xff] }
 0x206   :  { %2388 = vmatpush.msra.mxu2 %v1783_v50  ;;  %2349 = vmatpush.msra.mxu0 %v1717_v62  ;;  %v2451_v49 = vld [vmem:[#allocation9 + $0x78] sm:$0xff]  ;;  %v2450_v4 = vld [vmem:[#allocation9 + $0x70] sm:$0xff]  ;;  %v2449_v9 = vld [vmem:[#allocation9 + $0x68] sm:$0xff]  ;;  %v1844_v50 = vadd.f32 %v1843_v47, %v1822_v45 }
 0x207   :  { %2408 = vmatpush.msra.mxu3 %v1815_v14  ;;  %2369 = vmatpush.msra.mxu1 %v1749_v52  ;;  %v2448_v62 = vld [vmem:[#allocation9 + $0x60] sm:$0xff]  ;;  %v1903_v52 = vpop.f32.mrf.mxu1 }
 0x208   :  { %2389 = vmatpush.msra.mxu2 %v1781_v53  ;;  %2350 = vmatpush.msra.mxu0 %v1715_v54  ;;  %v2464_v45 = vld [vmem:[#allocation9 + $0xe0] sm:$0xff] }
 0x209   :  { %2409 = vmatpush.msra.mxu3 %v1813_v55  ;;  %2370 = vmatpush.msra.mxu1 %v1747_v25 }
 0x20a   :  { %2390 = vmatpush.msra.mxu2 %v1779_v38  ;;  %2351 = vmatpush.msra.mxu0 %v1713_v56  ;;  %v2447_v38 = vld [vmem:[#allocation9 + $0x58] sm:$0xff] }
 0x20b   :  { %2410 = vmatpush.msra.mxu3 %v1811_v20  ;;  %2371 = vmatpush.msra.mxu1 %v1745_v57  ;;  %v2446_v20 = vld [vmem:[#allocation9 + $0x50] sm:$0xff] }
 0x20c   :  { %2391 = vmatpush.msra.mxu2 %v1777_v59  ;;  %2352 = vmatpush.msra.mxu0 %v1711_v2  ;;  %v2445_v2 = vld [vmem:[#allocation9 + $0x48] sm:$0xff] }
 0x20d   :  { %2411 = vmatpush.msra.mxu3 %v1809_v61  ;;  %2372 = vmatpush.msra.mxu1 %v1743_v17  ;;  %v2444_v17 = vld [vmem:[#allocation9 + $0x40] sm:$0xff] }
 0x20e   :  { %2392 = vmatpush.msra.mxu2 %v1775_v63  ;;  %2353 = vmatpush.msra.mxu0 %v1709_v3  ;;  %v2443_v3 = vld [vmem:[#allocation9 + $0x38] sm:$0xff] }
 0x20f   :  { %2412 = vmatpush.msra.mxu3 %v1807_v5  ;;  %2373 = vmatpush.msra.mxu1 %v1741_v6  ;;  %v1983_v59 = vpop.f32.mrf.mxu1  ;;  %v2442_v5 = vld [vmem:[#allocation9 + $0x30] sm:$0xff] }
 0x210   :  { %2393 = vmatpush.msra.mxu2 %v1773_v7  ;;  %2354 = vmatpush.msra.mxu0 %v1707_v8  ;;  %v2441_v8 = vld [vmem:[#allocation9 + $0x28] sm:$0xff] }
 0x211   :  { %2413 = vmatpush.msra.mxu3 %v1805_v10  ;;  %2374 = vmatpush.msra.mxu1 %v1739_v22  ;;  %v2440_v22 = vld [vmem:[#allocation9 + $0x20] sm:$0xff] }
 0x212   :  { %2394 = vmatpush.msra.mxu2 %v1771_v11  ;;  %2355 = vmatpush.msra.mxu0 %v1705_v12  ;;  %v2439_v12 = vld [vmem:[#allocation9 + $0x18] sm:$0xff] }
 0x213   :  { %2414 = vmatpush.msra.mxu3 %v1803_v13  ;;  %2375 = vmatpush.msra.mxu1 %v1737_v15 }
 0x214   :  { %2395 = vmatpush.msra.mxu2 %v1769_v16  ;;  %2356 = vmatpush.msra.mxu0 %v1703_v21  ;;  %v2438_v16 = vld [vmem:[#allocation9 + $0x10] sm:$0xff] }
 0x215   :  { %2415 = vmatpush.msra.mxu3 %v1801_v23  ;;  %2376 = vmatpush.msra.mxu1 %v1735_v24  ;;  %v2437_v23 = vld [vmem:[#allocation9 + $0x8] sm:$0xff] }
 0x216   :  { %2396 = vmatpush.msra.mxu2 %v1767_v60  ;;  %2357 = vmatpush.msra.mxu0 %v1701_v26  ;;  %v2436_v26 = vld [vmem:[#allocation9] sm:$0xff] }
 0x217   :  { %2416 = vmatpush.msra.mxu3 %v1799_v27  ;;  %2377 = vmatpush.msra.mxu1 %v1733_v28 }
 0x218   :  { %2397 = vmatpush.msra.mxu2 %v1765_v30  ;;  %2358 = vmatpush.msra.mxu0 %v1699_v31  ;;  %v2063_v15 = vpop.f32.mrf.mxu1 }
 0x219   :  { %2417 = vmatpush.msra.mxu3 %v1797_v0  ;;  %2378 = vmatpush.msra.mxu1 %v1731_v46 }
 0x21a   :  { %2398 = vmatpush.msra.mxu2 %v1763_v33  ;;  %2359 = vmatpush.msra.mxu0 %v1697_v34 }
 0x21b   :  { %2418 = vmatpush.msra.mxu3 %v1795_v35  ;;  %2379 = vmatpush.msra.mxu1 %v1729_v36  ;;  %v1823_v36 = vperm.slane %v3079_v32, 1  ;;  %v2462_v32 = vld [vmem:[#allocation9 + $0xd0] sm:$0xff] }
 0x21c   :  { %2399 = vmatpush.msra.mxu2 %v1761_v1  ;;  %2360 = vmatpush.msra.mxu0 %v1695_v37 }
 0x21d   :  { %2419 = vmatpush.msra.mxu3 %v1793_v39  ;;  %2380 = vmatpush.msra.mxu1 %v1727_v40  ;;  %v2467_v39 = vld [vmem:[#allocation9 + $0xf8] sm:$0xff] }
 0x21e   :  { %2400 = vmatpush.msra.mxu2 %v1759_v41  ;;  %2361 = vmatpush.msra.mxu0 %v1693_v51  ;;  %v2466_v51 = vld [vmem:[#allocation9 + $0xf0] sm:$0xff] }
 0x21f   :  { %2420 = vmatpush.msra.mxu3 %v1791_v42  ;;  %2381 = vmatpush.msra.mxu1 %v1725_v43  ;;  %v2465_v42 = vld [vmem:[#allocation9 + $0xe8] sm:$0xff] }
 0x220   :  { %2401 = vmatpush.msra.mxu2 %v1757_v29  ;;  %2362 = vmatmul.f32.vlgmr.msra.gmra.mxu0 %v3050_v48  ;;  %v1863_v48 = vpop.f32.mrf.mxu3 }
 0x221   :  { %2382 = vmatmul.f32.vlgmr.msra.gmra.mxu1 %v3055_v58  ;;  %2402 = vmatmul.f32.vlgmr.msra.gmra.mxu2 %v3058_v19  ;;  %v1883_v58 = vpop.f32.mrf.mxu0  ;;  %v1864_v14 = vadd.f32 %v1863_v48, %v1844_v50  ;;  %v2460_v48 = vld [vmem:[#allocation9 + $0xc0] sm:$0xff] }
 0x222   :  { %2421 = vmatpush.msra.mxu3 %v1789_v44  ;;  %2472 = vmatpush.msrb.mxu0 %v2451_v49  ;;  %v2463_v49 = vld [vmem:[#allocation9 + $0xd8] sm:$0xff] }
 0x223   :  { %2422 = vmatmul.f32.vlgmr.msra.gmra.mxu3 %v3064_v18  ;;  %v1884_v19 = vadd.f32 %v1883_v58, %v1864_v14  ;;  %v1923_v18 = vpop.f32.mrf.mxu2  ;;  %2492 = vmatpush.msrb.mxu1 %v2467_v39  ;;  %v2459_v14 = vld [vmem:[#allocation9 + $0xb8] sm:$0xff]  ;;  %v2517_v39 = vld [vmem:[#allocation12] sm:$0xff] }
 0x224   :  { %2473 = vmatpush.msrb.mxu0 %v2450_v4 }
 0x225   :  { %v1904_v53 = vadd.f32 %v1903_v52, %v1884_v19  ;;  %2493 = vmatpush.msrb.mxu1 %v2466_v51 }
 0x226   :  { %2474 = vmatpush.msrb.mxu0 %v2449_v9 }
 0x227   :  { %v1924_v54 = vadd.f32 %v1923_v18, %v1904_v53  ;;  %2494 = vmatpush.msrb.mxu1 %v2465_v42  ;;  %v2458_v18 = vld [vmem:[#allocation9 + $0xb0] sm:$0xff] }
 0x228   :  { %2475 = vmatpush.msrb.mxu0 %v2448_v62  ;;  %v1943_v55 = vpop.f32.mrf.mxu3  ;;  %v2461_v62 = vld [vmem:[#allocation9 + $0xc8] sm:$0xff] }
 0x229   :  { %v1963_v25 = vpop.f32.mrf.mxu0  ;;  %v1944_v56 = vadd.f32 %v1943_v55, %v1924_v54  ;;  %2495 = vmatpush.msrb.mxu1 %v2464_v45  ;;  %v2457_v54 = vld [vmem:[#allocation9 + $0xa8] sm:$0xff] }
 0x22a   :  { %2476 = vmatpush.msrb.mxu0 %v2447_v38 }
 0x22b   :  { %v1964_v57 = vadd.f32 %v1963_v25, %v1944_v56  ;;  %v2003_v61 = vpop.f32.mrf.mxu2  ;;  %2496 = vmatpush.msrb.mxu1 %v2463_v49  ;;  %v2456_v25 = vld [vmem:[#allocation9 + $0xa0] sm:$0xff] }
 0x22c   :  { %2477 = vmatpush.msrb.mxu0 %v2446_v20  ;;  %v2455_v20 = vld [vmem:[#allocation9 + $0x98] sm:$0xff] }
 0x22d   :  { %v1984_v63 = vadd.f32 %v1983_v59, %v1964_v57  ;;  %2497 = vmatpush.msrb.mxu1 %v2462_v32  ;;  %v2454_v57 = vld [vmem:[#allocation9 + $0x90] sm:$0xff] }
 0x22e   :  { %2478 = vmatpush.msrb.mxu0 %v2445_v2  ;;  %v2453_v2 = vld [vmem:[#allocation9 + $0x88] sm:$0xff] }
 0x22f   :  { %v2004_v6 = vadd.f32 %v2003_v61, %v1984_v63  ;;  %2498 = vmatpush.msrb.mxu1 %v2461_v62  ;;  %v2452_v63 = vld [vmem:[#allocation9 + $0x80] sm:$0xff] }
 0x230   :  { %2479 = vmatpush.msrb.mxu0 %v2444_v17  ;;  %v2023_v7 = vpop.f32.mrf.mxu3 }
 0x231   :  { %v2043_v10 = vpop.f32.mrf.mxu0  ;;  %v2024_v11 = vadd.f32 %v2023_v7, %v2004_v6  ;;  %2499 = vmatpush.msrb.mxu1 %v2460_v48 }
 0x232   :  { %2480 = vmatpush.msrb.mxu0 %v2443_v3 }
 0x233   :  { %v2044_v13 = vadd.f32 %v2043_v10, %v2024_v11  ;;  %2500 = vmatpush.msrb.mxu1 %v2459_v14 }
 0x234   :  { %2481 = vmatpush.msrb.mxu0 %v2442_v5 }
 0x235   :  { %v2064_v24 = vadd.f32 %v2063_v15, %v2044_v13  ;;  %2501 = vmatpush.msrb.mxu1 %v2458_v18 }
 0x236   :  { %2482 = vmatpush.msrb.mxu0 %v2441_v8 }
 0x237   :  { %v2083_v21 = vpop.f32.mrf.mxu2  ;;  %v2143_v1 = vpop.f32.mrf.mxu1  ;;  %2502 = vmatpush.msrb.mxu1 %v2457_v54 }
 0x238   :  { %2483 = vmatpush.msrb.mxu0 %v2440_v22  ;;  %v2084_v27 = vadd.f32 %v2083_v21, %v2064_v24  ;;  %v2144_v40 = vadd.f32 %v2143_v1, %v1823_v36  ;;  %v2532_v24 = vld [vmem:[#allocation12 + $0x78] sm:$0xff]  ;;  %v2519_v1 = vld [vmem:[#allocation12 + $0x10] sm:$0xff] }
 0x239   :  { %2503 = vmatpush.msrb.mxu1 %v2456_v25  ;;  %2537 = vmatpush.msrb.mxu2 %v2532_v24  ;;  %v2520_v36 = vld [vmem:[#allocation12 + $0x18] sm:$0xff] }
 0x23a   :  { %2484 = vmatpush.msrb.mxu0 %v2439_v12 }
 0x23b   :  { %2504 = vmatpush.msrb.mxu1 %v2455_v20 }
 0x23c   :  { %2485 = vmatpush.msrb.mxu0 %v2438_v16 }
 0x23d   :  { %2505 = vmatpush.msrb.mxu1 %v2454_v57 }
 0x23e   :  { %2486 = vmatpush.msrb.mxu0 %v2437_v23 }
 0x23f   :  { %v2103_v60 = vpop.f32.mrf.mxu3  ;;  %2506 = vmatpush.msrb.mxu1 %v2453_v2 }
 0x240   :  { %v2104_v28 = vadd.f32 %v2103_v60, %v2084_v27  ;;  %2487 = vmatpush.msrb.mxu0 %v2436_v26  ;;  %v2531_v60 = vld [vmem:[#allocation12 + $0x70] sm:$0xff]  ;;  %v2530_v26 = vld [vmem:[#allocation12 + $0x68] sm:$0xff]  ;;  %v2529_v27 = vld [vmem:[#allocation12 + $0x60] sm:$0xff] }
 0x241   :  { %2507 = vmatpush.msrb.mxu1 %v2452_v63  ;;  %2538 = vmatpush.msrb.mxu2 %v2531_v60 }
 0x242   :  { %v2163_v37 = vpop.f32.mrf.mxu2 }
 0x243   :  { %v2164_v43 = vadd.f32 %v2163_v37, %v2144_v40  ;;  %2539 = vmatpush.msrb.mxu2 %v2530_v26  ;;  %v2518_v37 = vld [vmem:[#allocation12 + $0x8] sm:$0xff]  ;;  %v2581_v40 = vld [vmem:[#allocation10] ss:$0 sm:$0xff] }
 0x245   :  { %2540 = vmatpush.msrb.mxu2 %v2529_v27 }
 0x248   :  { %v2183_v41 = vpop.f32.mrf.mxu3 }
 0x249   :  { %v2184_v44 = vadd.f32 %v2183_v41, %v2164_v43 }
 0x253   :  { %v2123_v30 = vpop.f32.mrf.mxu0 }
 0x254   :  { %v2124_v31 = vadd.f32 %v2123_v30, %v2104_v28  ;;  %v2528_v28 = vld [vmem:[#allocation12 + $0x58] sm:$0xff]  ;;  %v2527_v30 = vld [vmem:[#allocation12 + $0x50] sm:$0xff] }
 0x255   :  { %2541 = vmatpush.msrb.mxu2 %v2528_v28 }
 0x256   :  { %v2426_v0 = vsub.f32 0.0, %v2124_v31  ;;  %v2526_v31 = vld [vmem:[#allocation12 + $0x48] sm:$0xff] }
 0x257   :  { %2542 = vmatpush.msrb.mxu2 %v2527_v30 }
 0x258   :  { %v2428_v46 = vmul.f32 1.442695, %v2426_v0  ;;  %v2525_v0 = vld [vmem:[#allocation12 + $0x40] sm:$0xff] }
 0x259   :  { %v2223_v4 = vpop.f32.mrf.mxu1  ;;  %2543 = vmatpush.msrb.mxu2 %v2526_v31 }
 0x25a   :  { %2643 = vpow2.f32 %v2428_v46  ;;  %v2524_v46 = vld [vmem:[#allocation12 + $0x38] sm:$0xff] }
 0x25b   :  { %2544 = vmatpush.msrb.mxu2 %v2525_v0 }
 0x25d   :  { %2545 = vmatpush.msrb.mxu2 %v2524_v46 }
 0x25f   :  { %v2203_v29 = vpop.f32.mrf.mxu0 }
 0x260   :  { %v2644_v33 = vpop.eup %2643  ;;  %v2204_v47 = vadd.f32 %v2203_v29, %v2184_v44  ;;  %v2243_v50 = vpop.f32.mrf.mxu2 }
 0x261   :  { %v2432_v34 = vadd.f32 1.0, %v2644_v33  ;;  %v2523_v33 = vld [vmem:[#allocation12 + $0x30] sm:$0xff] }
 0x262   :  { %v2224_v9 = vadd.f32 %v2223_v4, %v2204_v47  ;;  %v2263_v19 = vpop.f32.mrf.mxu3  ;;  %2546 = vmatpush.msrb.mxu2 %v2523_v33  ;;  %v2582_v4 = vld [vmem:[#allocation13] ss:$0 sm:$0xff] }
 0x263   :  { %2645 = vrcp.f32 %v2432_v34  ;;  %v2522_v34 = vld [vmem:[#allocation12 + $0x28] sm:$0xff] }
 0x264   :  { %v2244_v58 = vadd.f32 %v2243_v50, %v2224_v9  ;;  %2547 = vmatpush.msrb.mxu2 %v2522_v34 }
 0x266   :  { %v2264_v53 = vadd.f32 %v2263_v19, %v2244_v58 }
 0x269   :  { %v2646_v35 = vpop.eup %2645 }
 0x26a   :  { %2488 = vmatmul.f32.vlgmr.msrb.gmra.mxu0 %v2646_v35  ;;  %v2521_v35 = vld [vmem:[#allocation12 + $0x20] sm:$0xff] }
 0x26b   :  { %2548 = vmatpush.msrb.mxu2 %v2521_v35 }
 0x26d   :  { %2549 = vmatpush.msrb.mxu2 %v2520_v36 }
 0x26f   :  { %2550 = vmatpush.msrb.mxu2 %v2519_v1 }
 0x271   :  { %2551 = vmatpush.msrb.mxu2 %v2518_v37 }
 0x273   :  { %2552 = vmatpush.msrb.mxu2 %v2517_v39 }
 0x27b   :  { %v2283_v52 = vpop.f32.mrf.mxu0 }
 0x27c   :  { %v2284_v55 = vadd.f32 %v2283_v52, %v2264_v53  ;;  %v2303_v38 = vpop.f32.mrf.mxu1 }
 0x27e   :  { %v2304_v59 = vadd.f32 %v2303_v38, %v2284_v55 }
 0x282   :  { %v2323_v56 = vpop.f32.mrf.mxu2 }
 0x283   :  { %v2324_v61 = vadd.f32 %v2323_v56, %v2304_v59 }
 0x285   :  { %v2343_v17 = vpop.f32.mrf.mxu3 }
 0x286   :  { %v2344_v3 = vadd.f32 %v2343_v17, %v2324_v61 }
 0x29d   :  { %v2363_v5 = vpop.f32.mrf.mxu0 }
 0x29e   :  { %v2364_v6 = vadd.f32 %v2363_v5, %v2344_v3  ;;  %v2383_v7 = vpop.f32.mrf.mxu1 }
 0x2a0   :  { %v2384_v8 = vadd.f32 %v2383_v7, %v2364_v6 }
 0x2a4   :  { %v2403_v10 = vpop.f32.mrf.mxu2 }
 0x2a5   :  { %v2404_v22 = vadd.f32 %v2403_v10, %v2384_v8 }
 0x2a6   :  { %v2423_v11 = vpop.f32.mrf.mxu3 }
 0x2a7   :  { %v2424_v12 = vadd.f32 %v2423_v11, %v2404_v22 }
 0x2a9   :  { %v2427_v13 = vsub.f32 0.0, %v2424_v12 }
 0x2ab   :  { %v2430_v15 = vmul.f32 1.442695, %v2427_v13 }
 0x2ad   :  { %2647 = vpow2.f32 %v2430_v15 }
 0x2b3   :  { %v2648_v16 = vpop.eup %2647 }
 0x2b4   :  { %v2433_v21 = vadd.f32 1.0, %v2648_v16 }
 0x2b6   :  { %2649 = vrcp.f32 %v2433_v21 }
 0x2bc   :  { %v2650_v23 = vpop.eup %2649 }
 0x2bd   :  { %2508 = vmatmul.f32.vlgmr.msrb.gmra.mxu1 %v2650_v23 }
 0x2e7   :  { %v2489_v41 = vpop.f32.mrf.mxu0 }
 0x2e8   :  { %v2490_v51 = vadd.f32 %v2581_v40, %v2489_v41 }
 0x33a   :  { %v2509_v42 = vpop.f32.mrf.mxu1 }
 0x33b   :  { %v2510_v43 = vadd.f32 %v2509_v42, %v2490_v51 }
 0x33d   :  { %v2512_v29 = vsub.f32 0.0, %v2510_v43 }
 0x33f   :  { %v2513_v44 = vmul.f32 1.442695, %v2512_v29 }
 0x341   :  { %2651 = vpow2.f32 %v2513_v44 }
 0x347   :  { %v2652_v45 = vpop.eup %2651 }
 0x348   :  { %v2515_v47 = vadd.f32 1.0, %v2652_v45 }
 0x34a   :  { %2653 = vrcp.f32 %v2515_v47 }
 0x350   :  { %v2654_v49 = vpop.eup %2653 }
 0x351   :  { %2553 = vmatmul.f32.vlgmr.msrb.gmra.mxu2 %v2654_v49 }
 0x3d4   :  { %v2554_v32 = vpop.f32.mrf.mxu2 }
 0x3d5   :  { %v2555_v9 = vadd.f32 %v2582_v4, %v2554_v32 }
 0x3d7   :  { %2557 = vst [vmem:[%s3095_s9] sm:$0xff] %v2555_v9 }
 0x3d8   :  { %2562 = vsyncpa [#allocation3], 1 }
 0x3d9   :  { %2563 = vsyncpa [#allocation5], 1 }
 0x3da   :  { %2564 = vsyncpa [#allocation8], 1 }
 0x3db   :  { %2565 = vsyncpa [#allocation11], 1 }
 0x3dc   :  { %2566 = vsyncpa [#allocation14], 1 }

</bundles_post_ra>
